<compile_context>
chip_gen: v7x
topology: tpu7x:2x2x1
jax: 0.10.0
libtpu: 0.0.40
codegen_flags: <defaults>
</compile_context>

<pallas_src>
import functools

import jax
import jax.numpy as jnp
from jax import lax
from jax.experimental import pallas as pl
from jax.experimental.pallas import tpu as pltpu

FC1_PAD = 512   # fc1 width 500 -> 512 lanes (lane-dense hidden)
OUT_PAD = 128   # num_classes -> 128 lanes (lane-dense logits store, sliced afterwards)
LPAD = 8        # left halo width in the VMEM halo scratch: keeps the interior store
                # sublane-aligned (offset 8); only column LPAD-1 acts as the halo.


# ---------------------------------------------------------------------------
# Fused whole-network kernel (one grid step = `nb` images)
# ---------------------------------------------------------------------------
def _fused_cnn_kernel(x_ref, w1_ref, b1_ref, w2_ref, b2_ref, w3_ref, b3_ref,
                      wfc1_ref, bfc1_ref, wfc2_ref, bfc2_ref,
                      out_ref,
                      pad1_ref, pad2_ref, pad3_ref, act3_ref,
                      *, nb, H, W, Cin):
    """conv1/2/3 (+ReLU+2x2 pool) -> flatten -> FC1+ReLU -> FC2 for `nb` images."""

    def fill_halo(pad_ref, act, h, w):
        # pad_ref: (nb, h+2, w+LPAD+1, c).  Interior at rows 1..h, cols LPAD..LPAD+w-1;
        # everything else stays zero (the conv padding=1 halo).
        pad_ref[...] = jnp.zeros_like(pad_ref)
        pad_ref[:, 1:h + 1, LPAD:LPAD + w, :] = act

    def conv_relu_pool(pad_ref, w_ref, b_ref, h, w, cin, cout):
        # In-VMEM im2col: 9 shifted windows, each an accumulating bf16 MXU dot (f32 acc).
        acc = jnp.zeros((nb * h * w, cout), jnp.float32)
        for dy in range(3):
            for dx in range(3):
                c0 = LPAD - 1 + dx
                patch = pad_ref[:, dy:dy + h, c0:c0 + w, :]           # (nb, h, w, cin)
                patch = patch.reshape(nb * h * w, cin).astype(jnp.bfloat16)
                acc = acc + jnp.dot(patch, w_ref[3 * dy + dx],
                                    preferred_element_type=jnp.float32)
        acc = jnp.maximum(acc + b_ref[...], 0.0)                      # bias + ReLU (f32)
        # 2x2 max-pool entirely in vregs (the un-pooled map never leaves VMEM).
        y = acc.reshape(nb * (h // 2), 2, w, cout)
        y = jnp.maximum(y[:, 0], y[:, 1])                             # pool rows
        y = y.reshape(nb * (h // 2), w // 2, 2, cout)
        y = jnp.max(y, axis=2)                                        # pool cols
        return y.reshape(nb, h // 2, w // 2, cout)

    H2, W2 = H // 2, W // 2
    H4, W4 = H2 // 2, W2 // 2
    H8, W8 = H4 // 2, W4 // 2

    fill_halo(pad1_ref, x_ref[...].astype(jnp.float32), H, W)        # stage 1
    y = conv_relu_pool(pad1_ref, w1_ref, b1_ref, H, W, Cin, 16)
    fill_halo(pad2_ref, y, H2, W2)                                    # stage 2
    y = conv_relu_pool(pad2_ref, w2_ref, b2_ref, H2, W2, 16, 32)
    fill_halo(pad3_ref, y, H4, W4)                                    # stage 3
    y = conv_relu_pool(pad3_ref, w3_ref, b3_ref, H4, W4, 32, 64)

    # Flatten (NHWC order; wfc1 pre-permuted from torch's NCHW flatten order) + FC1.
    act3_ref[...] = y                                                 # (nb, H8, W8, 64)
    acc = jnp.zeros((nb, FC1_PAD), jnp.float32)
    for hy in range(H8):
        for wx in range(W8):
            piece = act3_ref[:, hy, wx, :].astype(jnp.bfloat16)       # (nb, 64)
            acc = acc + jnp.dot(piece, wfc1_ref[hy * W8 + wx],
                                preferred_element_type=jnp.float32)
    # nn.Dropout(0.25) is identity in eval/inference mode.
    # TODO(synk): training-mode dropout RNG masking not implemented.
    hfc = jnp.maximum(acc + bfc1_ref[...], 0.0)                       # FC1 + ReLU
    logits = jnp.dot(hfc.astype(jnp.bfloat16), wfc2_ref[...],
                     preferred_element_type=jnp.float32) + bfc2_ref[...]
    out_ref[0] = logits.astype(out_ref.dtype)                         # lane-dense store


# ---------------------------------------------------------------------------
# Wrapper: one pallas_call for the whole forward pass
# ---------------------------------------------------------------------------
def _pick_batch_tile(batch):
    """Images per grid step: big enough to help the MXU M-dim, but keep >=2 grid
    steps whenever batch >= 2 so both v7x TensorCores get work."""
    for nb in (8, 4, 2):
        if batch % nb == 0 and batch // nb >= 2:
            return nb
    return 1


def cnn_forward(x_nchw, params, num_classes=10):
    x = jnp.transpose(x_nchw, (0, 2, 3, 1)).astype(jnp.bfloat16)      # NCHW->NHWC once
    B, H, W, Cin = x.shape
    assert H % 8 == 0 and W % 8 == 0, "3x MaxPool2d(2) path expects H, W divisible by 8"
    nb = _pick_batch_tile(B)
    steps = B // nb
    H2, W2, H4, W4, H8, W8 = H // 2, W // 2, H // 4, W // 4, H // 8, W // 8

    kernel = functools.partial(_fused_cnn_kernel, nb=nb, H=H, W=W, Cin=Cin)
    flops = 2 * B * (H * W * 9 * Cin * 16 + H2 * W2 * 9 * 16 * 32 + H4 * W4 * 9 * 32 * 64
                     + H8 * W8 * 64 * FC1_PAD + FC1_PAD * OUT_PAD)
    w_bytes = sum(int(v.size) * v.dtype.itemsize for v in params.values())
    bytes_accessed = int(x.size) * 2 + w_bytes + B * OUT_PAD * 4

    out = pl.pallas_call(
        kernel,
        out_shape=jax.ShapeDtypeStruct((steps, nb, OUT_PAD), jnp.float32),
        grid=(steps,),
        in_specs=[
            pl.BlockSpec((nb, H, W, Cin), lambda n: (n, 0, 0, 0)),           # x (bf16)
            pl.BlockSpec((9, Cin, 16), lambda n: (0, 0, 0)),                 # w1
            pl.BlockSpec((1, 16), lambda n: (0, 0)),                         # b1
            pl.BlockSpec((9, 16, 32), lambda n: (0, 0, 0)),                  # w2
            pl.BlockSpec((1, 32), lambda n: (0, 0)),                         # b2
            pl.BlockSpec((9, 32, 64), lambda n: (0, 0, 0)),                  # w3
            pl.BlockSpec((1, 64), lambda n: (0, 0)),                         # b3
            pl.BlockSpec((H8 * W8, 64, FC1_PAD), lambda n: (0, 0, 0)),       # wfc1
            pl.BlockSpec((1, FC1_PAD), lambda n: (0, 0)),                    # bfc1
            pl.BlockSpec((FC1_PAD, OUT_PAD), lambda n: (0, 0)),              # wfc2
            pl.BlockSpec((1, OUT_PAD), lambda n: (0, 0)),                    # bfc2
        ],
        out_specs=pl.BlockSpec((1, nb, OUT_PAD), lambda n: (n, 0, 0)),
        scratch_shapes=[
            pltpu.VMEM((nb, H + 2, W + LPAD + 1, Cin), jnp.float32),    # stage-1 halo
            pltpu.VMEM((nb, H2 + 2, W2 + LPAD + 1, 16), jnp.float32),   # stage-2 halo
            pltpu.VMEM((nb, H4 + 2, W4 + LPAD + 1, 32), jnp.float32),   # stage-3 halo
            pltpu.VMEM((nb, H8, W8, 64), jnp.float32),                  # pooled stage-3 act
        ],
        compiler_params=pltpu.CompilerParams(dimension_semantics=("parallel",)),
        cost_estimate=pl.CostEstimate(flops=flops, transcendentals=0,
                                      bytes_accessed=bytes_accessed),
    )(x, params["w1"], params["b1"], params["w2"], params["b2"],
      params["w3"], params["b3"], params["wfc1"], params["bfc1"],
      params["wfc2"], params["bfc2"])
    return out.reshape(B, OUT_PAD)[:, :num_classes]


# ---------------------------------------------------------------------------
# Parameters: torch-like init, then one-time layout preparation
# ---------------------------------------------------------------------------
def init_params(key, in_channels, height, width, num_classes=10):
    def uinit(k, shape, fan_in):
        bound = 1.0 / jnp.sqrt(jnp.float32(fan_in))
        return jax.random.uniform(k, shape, jnp.float32, -bound, bound)

    ks = jax.random.split(key, 10)
    h8, w8 = height // 8, width // 8
    fc_size = 64 * h8 * w8
    return {
        "w1": uinit(ks[0], (3, 3, in_channels, 16), 9 * in_channels),
        "b1": uinit(ks[1], (16,), 9 * in_channels),
        "w2": uinit(ks[2], (3, 3, 16, 32), 9 * 16),
        "b2": uinit(ks[3], (32,), 9 * 16),
        "w3": uinit(ks[4], (3, 3, 32, 64), 9 * 32),
        "b3": uinit(ks[5], (64,), 9 * 32),
        "wfc1": uinit(ks[6], (fc_size, 500), fc_size),
        "bfc1": uinit(ks[7], (500,), fc_size),
        "wfc2": uinit(ks[8], (500, num_classes), 500),
        "bfc2": uinit(ks[9], (num_classes,), 500),
    }


def prepare_params(params, height, width, num_classes=10):
    """One-time layout transforms:
       * conv weights (3,3,Cin,Cout) -> (9,Cin,Cout) bf16 (tap-major, k = 3*dy + dx);
       * wfc1 rows permuted from torch's NCHW-flatten order to NHWC order and grouped
         per spatial position: (H8*W8, 64, FC1_PAD) bf16, zero-padded 500 -> 512;
       * wfc2 zero-padded to (512, 128) bf16; biases reshaped to (1, n) f32."""
    h8, w8, c3 = height // 8, width // 8, 64

    def conv_w(w):
        kh, kw, cin, cout = w.shape
        return w.reshape(kh * kw, cin, cout).astype(jnp.bfloat16)

    wfc1 = params["wfc1"].reshape(c3, h8, w8, 500).transpose(1, 2, 0, 3)   # (h,w,c,500)
    wfc1 = wfc1.reshape(h8 * w8, c3, 500)
    wfc1 = jnp.pad(wfc1, ((0, 0), (0, 0), (0, FC1_PAD - 500))).astype(jnp.bfloat16)
    bfc1 = jnp.pad(params["bfc1"], (0, FC1_PAD - 500)).reshape(1, FC1_PAD)
    wfc2 = jnp.pad(params["wfc2"],
                   ((0, FC1_PAD - 500), (0, OUT_PAD - num_classes))).astype(jnp.bfloat16)
    bfc2 = jnp.pad(params["bfc2"], (0, OUT_PAD - num_classes)).reshape(1, OUT_PAD)
    return {
        "w1": conv_w(params["w1"]), "b1": params["b1"].reshape(1, -1),
        "w2": conv_w(params["w2"]), "b2": params["b2"].reshape(1, -1),
        "w3": conv_w(params["w3"]), "b3": params["b3"].reshape(1, -1),
        "wfc1": wfc1, "bfc1": bfc1, "wfc2": wfc2, "bfc2": bfc2,
    }


# ---------------------------------------------------------------------------
# Pure-JAX float32 reference (CnnModel.forward, eval mode) for a tolerance check
# ---------------------------------------------------------------------------
def _reference_forward(x_nchw, raw):
    x = jnp.transpose(x_nchw, (0, 2, 3, 1))

    def stage(x, w, b):
        y = lax.conv_general_dilated(x, w, (1, 1), "SAME",
                                     dimension_numbers=("NHWC", "HWIO", "NHWC"))
        y = jnp.maximum(y + b, 0.0)
        return lax.reduce_window(y, -jnp.inf, lax.max,
                                 (1, 2, 2, 1), (1, 2, 2, 1), "VALID")

    x = stage(x, raw["w1"], raw["b1"])
    x = stage(x, raw["w2"], raw["b2"])
    x = stage(x, raw["w3"], raw["b3"])
    x = jnp.transpose(x, (0, 3, 1, 2)).reshape(x.shape[0], -1)        # torch NCHW flatten
    h = jnp.maximum(x @ raw["wfc1"] + raw["bfc1"], 0.0)               # dropout = identity
    return h @ raw["wfc2"] + raw["bfc2"]


if __name__ == "__main__":
    key = jax.random.PRNGKey(0)
    k_x, k_p = jax.random.split(key)

    batch, channels, height, width, num_classes = 2, 4, 16, 16, 10
    x = jax.random.normal(k_x, (batch, channels, height, width), jnp.float32)
    raw_params = init_params(k_p, channels, height, width, num_classes)
    params = prepare_params(raw_params, height, width, num_classes)

    forward = jax.jit(cnn_forward, static_argnames=("num_classes",))
    out = jax.block_until_ready(forward(x, params, num_classes=num_classes))
    assert out.shape == (batch, num_classes), out.shape
    assert out.dtype == jnp.float32

    ref = _reference_forward(x, raw_params)
    rel = float(jnp.linalg.norm(out - ref) / (jnp.linalg.norm(ref) + 1e-12))
    assert rel < 0.08, f"kernel vs f32 reference relative error too large: {rel}"

    print("KERNEL_OK")
</pallas_src>

<mosaic_0001>
module attributes {stable_mosaic.version = 11 : i64} {
  func.func @_fused_cnn_kernel(%arg0: i32, %arg1: memref<1x16x16x4xbf16, #tpu.memory_space<vmem>>, %arg2: memref<9x4x16xbf16, #tpu.memory_space<vmem>>, %arg3: memref<1x16xf32, #tpu.memory_space<vmem>>, %arg4: memref<9x16x32xbf16, #tpu.memory_space<vmem>>, %arg5: memref<1x32xf32, #tpu.memory_space<vmem>>, %arg6: memref<9x32x64xbf16, #tpu.memory_space<vmem>>, %arg7: memref<1x64xf32, #tpu.memory_space<vmem>>, %arg8: memref<4x64x512xbf16, #tpu.memory_space<vmem>>, %arg9: memref<1x512xf32, #tpu.memory_space<vmem>>, %arg10: memref<512x128xbf16, #tpu.memory_space<vmem>>, %arg11: memref<1x128xf32, #tpu.memory_space<vmem>>, %arg12: memref<1x1x128xf32, #tpu.memory_space<vmem>>, %arg13: memref<1x18x25x4xf32, #tpu.memory_space<vmem>>, %arg14: memref<1x10x17x16xf32, #tpu.memory_space<vmem>>, %arg15: memref<1x6x13x32xf32, #tpu.memory_space<vmem>>, %arg16: memref<1x2x2x64xf32, #tpu.memory_space<vmem>>) attributes {dimension_semantics = [#tpu.dimension_semantics<parallel>], iteration_bounds = array<i64: 2>, scalar_prefetch = 0 : i64, scratch_operands = 4 : i64, tpu.core_type = #tpu.core_type<tc>, window_params = [{transform_indices = @transform_0, window_bounds = array<i64: 1, 16, 16, 4>}, {pipeline_mode = #tpu.pipeline_mode<synchronous>, transform_indices = @transform_1, window_bounds = array<i64: 9, 4, 16>}, {pipeline_mode = #tpu.pipeline_mode<synchronous>, transform_indices = @transform_2, window_bounds = array<i64: 1, 16>}, {pipeline_mode = #tpu.pipeline_mode<synchronous>, transform_indices = @transform_3, window_bounds = array<i64: 9, 16, 32>}, {pipeline_mode = #tpu.pipeline_mode<synchronous>, transform_indices = @transform_4, window_bounds = array<i64: 1, 32>}, {pipeline_mode = #tpu.pipeline_mode<synchronous>, transform_indices = @transform_5, window_bounds = array<i64: 9, 32, 64>}, {pipeline_mode = #tpu.pipeline_mode<synchronous>, transform_indices = @transform_6, window_bounds = array<i64: 1, 64>}, {pipeline_mode = #tpu.pipeline_mode<synchronous>, transform_indices = @transform_7, window_bounds = array<i64: 4, 64, 512>}, {pipeline_mode = #tpu.pipeline_mode<synchronous>, transform_indices = @transform_8, window_bounds = array<i64: 1, 512>}, {pipeline_mode = #tpu.pipeline_mode<synchronous>, transform_indices = @transform_9, window_bounds = array<i64: 512, 128>}, {pipeline_mode = #tpu.pipeline_mode<synchronous>, transform_indices = @transform_10, window_bounds = array<i64: 1, 128>}, {transform_indices = @transform_11, window_bounds = array<i64: 1, 1, 128>}]} {
    %c0 = arith.constant 0 : index
    %c0_0 = arith.constant 0 : index
    %c0_1 = arith.constant 0 : index
    %c0_2 = arith.constant 0 : index
    %0 = vector.load %arg1[%c0, %c0_0, %c0_1, %c0_2] : memref<1x16x16x4xbf16, #tpu.memory_space<vmem>>, vector<1x16x16x4xbf16>
    %1 = arith.extf %0 : vector<1x16x16x4xbf16> to vector<1x16x16x4xf32>
    %cst = arith.constant 0.000000e+00 : f32
    %2 = vector.broadcast %cst : f32 to vector<1x18x25x4xf32>
    %c0_3 = arith.constant 0 : index
    %c0_4 = arith.constant 0 : index
    %c0_5 = arith.constant 0 : index
    %c0_6 = arith.constant 0 : index
    %3 = vector.load %arg13[%c0_3, %c0_4, %c0_5, %c0_6] : memref<1x18x25x4xf32, #tpu.memory_space<vmem>>, vector<1x18x25x4xf32>
    tpu.vector_store %arg13[%c0_3, %c0_4, %c0_5, %c0_6], %2 {strides = array<i32>} : memref<1x18x25x4xf32, #tpu.memory_space<vmem>>, vector<1x18x25x4xf32>,
    %c0_7 = arith.constant 0 : index
    %c1 = arith.constant 1 : index
    %c8 = arith.constant 8 : index
    %c0_8 = arith.constant 0 : index
    %4 = vector.load %arg13[%c0_7, %c1, %c8, %c0_8] : memref<1x18x25x4xf32, #tpu.memory_space<vmem>>, vector<1x16x16x4xf32>
    tpu.vector_store %arg13[%c0_7, %c1, %c8, %c0_8], %1 {strides = array<i32>} : memref<1x18x25x4xf32, #tpu.memory_space<vmem>>, vector<1x16x16x4xf32>,
    %cst_9 = arith.constant 0.000000e+00 : f32
    %5 = vector.broadcast %cst_9 : f32 to vector<256x16xf32>
    %c0_10 = arith.constant 0 : index
    %c0_11 = arith.constant 0 : index
    %c7 = arith.constant 7 : index
    %c0_12 = arith.constant 0 : index
    %6 = vector.load %arg13[%c0_10, %c0_11, %c7, %c0_12] : memref<1x18x25x4xf32, #tpu.memory_space<vmem>>, vector<1x16x16x4xf32>
    %7 = vector.shape_cast %6 : vector<1x16x16x4xf32> to vector<256x4xf32>
    %8 = arith.truncf %7 : vector<256x4xf32> to vector<256x4xbf16>
    %c0_13 = arith.constant 0 : index
    %c0_14 = arith.constant 0 : index
    %c0_15 = arith.constant 0 : index
    %9 = vector.load %arg2[%c0_13, %c0_14, %c0_15] : memref<9x4x16xbf16, #tpu.memory_space<vmem>>, vector<1x4x16xbf16>
    %10 = vector.shape_cast %9 : vector<1x4x16xbf16> to vector<4x16xbf16>
    %cst_16 = arith.constant dense<0.000000e+00> : vector<256x16xf32>
    %11 = tpu.matmul %8, %10, %cst_16 {dimension_numbers = #tpu.dot_dimension_numbers<[1], [0], [0], [1], [0, 0, 1, 1], [], []>} : vector<256x4xbf16>, vector<4x16xbf16>, vector<256x16xf32> -> vector<256x16xf32>
    %12 = arith.addf %5, %11 : vector<256x16xf32>
    %c0_17 = arith.constant 0 : index
    %c0_18 = arith.constant 0 : index
    %c8_19 = arith.constant 8 : index
    %c0_20 = arith.constant 0 : index
    %13 = vector.load %arg13[%c0_17, %c0_18, %c8_19, %c0_20] : memref<1x18x25x4xf32, #tpu.memory_space<vmem>>, vector<1x16x16x4xf32>
    %14 = vector.shape_cast %13 : vector<1x16x16x4xf32> to vector<256x4xf32>
    %15 = arith.truncf %14 : vector<256x4xf32> to vector<256x4xbf16>
    %c1_21 = arith.constant 1 : index
    %c0_22 = arith.constant 0 : index
    %c0_23 = arith.constant 0 : index
    %16 = vector.load %arg2[%c1_21, %c0_22, %c0_23] : memref<9x4x16xbf16, #tpu.memory_space<vmem>>, vector<1x4x16xbf16>
    %17 = vector.shape_cast %16 : vector<1x4x16xbf16> to vector<4x16xbf16>
    %cst_24 = arith.constant dense<0.000000e+00> : vector<256x16xf32>
    %18 = tpu.matmul %15, %17, %cst_24 {dimension_numbers = #tpu.dot_dimension_numbers<[1], [0], [0], [1], [0, 0, 1, 1], [], []>} : vector<256x4xbf16>, vector<4x16xbf16>, vector<256x16xf32> -> vector<256x16xf32>
    %19 = arith.addf %12, %18 : vector<256x16xf32>
    %c0_25 = arith.constant 0 : index
    %c0_26 = arith.constant 0 : index
    %c9 = arith.constant 9 : index
    %c0_27 = arith.constant 0 : index
    %20 = vector.load %arg13[%c0_25, %c0_26, %c9, %c0_27] : memref<1x18x25x4xf32, #tpu.memory_space<vmem>>, vector<1x16x16x4xf32>
    %21 = vector.shape_cast %20 : vector<1x16x16x4xf32> to vector<256x4xf32>
    %22 = arith.truncf %21 : vector<256x4xf32> to vector<256x4xbf16>
    %c2 = arith.constant 2 : index
    %c0_28 = arith.constant 0 : index
    %c0_29 = arith.constant 0 : index
    %23 = vector.load %arg2[%c2, %c0_28, %c0_29] : memref<9x4x16xbf16, #tpu.memory_space<vmem>>, vector<1x4x16xbf16>
    %24 = vector.shape_cast %23 : vector<1x4x16xbf16> to vector<4x16xbf16>
    %cst_30 = arith.constant dense<0.000000e+00> : vector<256x16xf32>
    %25 = tpu.matmul %22, %24, %cst_30 {dimension_numbers = #tpu.dot_dimension_numbers<[1], [0], [0], [1], [0, 0, 1, 1], [], []>} : vector<256x4xbf16>, vector<4x16xbf16>, vector<256x16xf32> -> vector<256x16xf32>
    %26 = arith.addf %19, %25 : vector<256x16xf32>
    %c0_31 = arith.constant 0 : index
    %c1_32 = arith.constant 1 : index
    %c7_33 = arith.constant 7 : index
    %c0_34 = arith.constant 0 : index
    %27 = vector.load %arg13[%c0_31, %c1_32, %c7_33, %c0_34] : memref<1x18x25x4xf32, #tpu.memory_space<vmem>>, vector<1x16x16x4xf32>
    %28 = vector.shape_cast %27 : vector<1x16x16x4xf32> to vector<256x4xf32>
    %29 = arith.truncf %28 : vector<256x4xf32> to vector<256x4xbf16>
    %c3 = arith.constant 3 : index
    %c0_35 = arith.constant 0 : index
    %c0_36 = arith.constant 0 : index
    %30 = vector.load %arg2[%c3, %c0_35, %c0_36] : memref<9x4x16xbf16, #tpu.memory_space<vmem>>, vector<1x4x16xbf16>
    %31 = vector.shape_cast %30 : vector<1x4x16xbf16> to vector<4x16xbf16>
    %cst_37 = arith.constant dense<0.000000e+00> : vector<256x16xf32>
    %32 = tpu.matmul %29, %31, %cst_37 {dimension_numbers = #tpu.dot_dimension_numbers<[1], [0], [0], [1], [0, 0, 1, 1], [], []>} : vector<256x4xbf16>, vector<4x16xbf16>, vector<256x16xf32> -> vector<256x16xf32>
    %33 = arith.addf %26, %32 : vector<256x16xf32>
    %c0_38 = arith.constant 0 : index
    %c1_39 = arith.constant 1 : index
    %c8_40 = arith.constant 8 : index
    %c0_41 = arith.constant 0 : index
    %34 = vector.load %arg13[%c0_38, %c1_39, %c8_40, %c0_41] : memref<1x18x25x4xf32, #tpu.memory_space<vmem>>, vector<1x16x16x4xf32>
    %35 = vector.shape_cast %34 : vector<1x16x16x4xf32> to vector<256x4xf32>
    %36 = arith.truncf %35 : vector<256x4xf32> to vector<256x4xbf16>
    %c4 = arith.constant 4 : index
    %c0_42 = arith.constant 0 : index
    %c0_43 = arith.constant 0 : index
    %37 = vector.load %arg2[%c4, %c0_42, %c0_43] : memref<9x4x16xbf16, #tpu.memory_space<vmem>>, vector<1x4x16xbf16>
    %38 = vector.shape_cast %37 : vector<1x4x16xbf16> to vector<4x16xbf16>
    %cst_44 = arith.constant dense<0.000000e+00> : vector<256x16xf32>
    %39 = tpu.matmul %36, %38, %cst_44 {dimension_numbers = #tpu.dot_dimension_numbers<[1], [0], [0], [1], [0, 0, 1, 1], [], []>} : vector<256x4xbf16>, vector<4x16xbf16>, vector<256x16xf32> -> vector<256x16xf32>
    %40 = arith.addf %33, %39 : vector<256x16xf32>
    %c0_45 = arith.constant 0 : index
    %c1_46 = arith.constant 1 : index
    %c9_47 = arith.constant 9 : index
    %c0_48 = arith.constant 0 : index
    %41 = vector.load %arg13[%c0_45, %c1_46, %c9_47, %c0_48] : memref<1x18x25x4xf32, #tpu.memory_space<vmem>>, vector<1x16x16x4xf32>
    %42 = vector.shape_cast %41 : vector<1x16x16x4xf32> to vector<256x4xf32>
    %43 = arith.truncf %42 : vector<256x4xf32> to vector<256x4xbf16>
    %c5 = arith.constant 5 : index
    %c0_49 = arith.constant 0 : index
    %c0_50 = arith.constant 0 : index
    %44 = vector.load %arg2[%c5, %c0_49, %c0_50] : memref<9x4x16xbf16, #tpu.memory_space<vmem>>, vector<1x4x16xbf16>
    %45 = vector.shape_cast %44 : vector<1x4x16xbf16> to vector<4x16xbf16>
    %cst_51 = arith.constant dense<0.000000e+00> : vector<256x16xf32>
    %46 = tpu.matmul %43, %45, %cst_51 {dimension_numbers = #tpu.dot_dimension_numbers<[1], [0], [0], [1], [0, 0, 1, 1], [], []>} : vector<256x4xbf16>, vector<4x16xbf16>, vector<256x16xf32> -> vector<256x16xf32>
    %47 = arith.addf %40, %46 : vector<256x16xf32>
    %c0_52 = arith.constant 0 : index
    %c2_53 = arith.constant 2 : index
    %c7_54 = arith.constant 7 : index
    %c0_55 = arith.constant 0 : index
    %48 = vector.load %arg13[%c0_52, %c2_53, %c7_54, %c0_55] : memref<1x18x25x4xf32, #tpu.memory_space<vmem>>, vector<1x16x16x4xf32>
    %49 = vector.shape_cast %48 : vector<1x16x16x4xf32> to vector<256x4xf32>
    %50 = arith.truncf %49 : vector<256x4xf32> to vector<256x4xbf16>
    %c6 = arith.constant 6 : index
    %c0_56 = arith.constant 0 : index
    %c0_57 = arith.constant 0 : index
    %51 = vector.load %arg2[%c6, %c0_56, %c0_57] : memref<9x4x16xbf16, #tpu.memory_space<vmem>>, vector<1x4x16xbf16>
    %52 = vector.shape_cast %51 : vector<1x4x16xbf16> to vector<4x16xbf16>
    %cst_58 = arith.constant dense<0.000000e+00> : vector<256x16xf32>
    %53 = tpu.matmul %50, %52, %cst_58 {dimension_numbers = #tpu.dot_dimension_numbers<[1], [0], [0], [1], [0, 0, 1, 1], [], []>} : vector<256x4xbf16>, vector<4x16xbf16>, vector<256x16xf32> -> vector<256x16xf32>
    %54 = arith.addf %47, %53 : vector<256x16xf32>
    %c0_59 = arith.constant 0 : index
    %c2_60 = arith.constant 2 : index
    %c8_61 = arith.constant 8 : index
    %c0_62 = arith.constant 0 : index
    %55 = vector.load %arg13[%c0_59, %c2_60, %c8_61, %c0_62] : memref<1x18x25x4xf32, #tpu.memory_space<vmem>>, vector<1x16x16x4xf32>
    %56 = vector.shape_cast %55 : vector<1x16x16x4xf32> to vector<256x4xf32>
    %57 = arith.truncf %56 : vector<256x4xf32> to vector<256x4xbf16>
    %c7_63 = arith.constant 7 : index
    %c0_64 = arith.constant 0 : index
    %c0_65 = arith.constant 0 : index
    %58 = vector.load %arg2[%c7_63, %c0_64, %c0_65] : memref<9x4x16xbf16, #tpu.memory_space<vmem>>, vector<1x4x16xbf16>
    %59 = vector.shape_cast %58 : vector<1x4x16xbf16> to vector<4x16xbf16>
    %cst_66 = arith.constant dense<0.000000e+00> : vector<256x16xf32>
    %60 = tpu.matmul %57, %59, %cst_66 {dimension_numbers = #tpu.dot_dimension_numbers<[1], [0], [0], [1], [0, 0, 1, 1], [], []>} : vector<256x4xbf16>, vector<4x16xbf16>, vector<256x16xf32> -> vector<256x16xf32>
    %61 = arith.addf %54, %60 : vector<256x16xf32>
    %c0_67 = arith.constant 0 : index
    %c2_68 = arith.constant 2 : index
    %c9_69 = arith.constant 9 : index
    %c0_70 = arith.constant 0 : index
    %62 = vector.load %arg13[%c0_67, %c2_68, %c9_69, %c0_70] : memref<1x18x25x4xf32, #tpu.memory_space<vmem>>, vector<1x16x16x4xf32>
    %63 = vector.shape_cast %62 : vector<1x16x16x4xf32> to vector<256x4xf32>
    %64 = arith.truncf %63 : vector<256x4xf32> to vector<256x4xbf16>
    %c8_71 = arith.constant 8 : index
    %c0_72 = arith.constant 0 : index
    %c0_73 = arith.constant 0 : index
    %65 = vector.load %arg2[%c8_71, %c0_72, %c0_73] : memref<9x4x16xbf16, #tpu.memory_space<vmem>>, vector<1x4x16xbf16>
    %66 = vector.shape_cast %65 : vector<1x4x16xbf16> to vector<4x16xbf16>
    %cst_74 = arith.constant dense<0.000000e+00> : vector<256x16xf32>
    %67 = tpu.matmul %64, %66, %cst_74 {dimension_numbers = #tpu.dot_dimension_numbers<[1], [0], [0], [1], [0, 0, 1, 1], [], []>} : vector<256x4xbf16>, vector<4x16xbf16>, vector<256x16xf32> -> vector<256x16xf32>
    %68 = arith.addf %61, %67 : vector<256x16xf32>
    %c0_75 = arith.constant 0 : index
    %c0_76 = arith.constant 0 : index
    %69 = vector.load %arg3[%c0_75, %c0_76] : memref<1x16xf32, #tpu.memory_space<vmem>>, vector<1x16xf32>
    %70 = vector.broadcast %69 : vector<1x16xf32> to vector<256x16xf32>
    %71 = arith.addf %68, %70 : vector<256x16xf32>
    %cst_77 = arith.constant 0.000000e+00 : f32
    %72 = vector.broadcast %cst_77 : f32 to vector<256x16xf32>
    %73 = arith.maximumf %71, %72 : vector<256x16xf32>
    %74 = vector.shape_cast %73 : vector<256x16xf32> to vector<8x2x16x16xf32>
    %75 = vector.extract_strided_slice %74 {offsets = [0, 0, 0, 0], sizes = [8, 1, 16, 16], strides = [1, 1, 1, 1]} : vector<8x2x16x16xf32> to vector<8x1x16x16xf32>
    %76 = vector.shape_cast %75 : vector<8x1x16x16xf32> to vector<8x16x16xf32>
    %77 = vector.extract_strided_slice %74 {offsets = [0, 1, 0, 0], sizes = [8, 1, 16, 16], strides = [1, 1, 1, 1]} : vector<8x2x16x16xf32> to vector<8x1x16x16xf32>
    %78 = vector.shape_cast %77 : vector<8x1x16x16xf32> to vector<8x16x16xf32>
    %79 = arith.maximumf %76, %78 : vector<8x16x16xf32>
    %80 = vector.shape_cast %79 : vector<8x16x16xf32> to vector<8x8x2x16xf32>
    %cst_78 = arith.constant dense<0xFF800000> : vector<8x8x16xf32>
    %81 = vector.multi_reduction <maximumf>, %80, %cst_78 [2] : vector<8x8x2x16xf32> to vector<8x8x16xf32>
    %82 = vector.shape_cast %81 : vector<8x8x16xf32> to vector<1x8x8x16xf32>
    %cst_79 = arith.constant 0.000000e+00 : f32
    %83 = vector.broadcast %cst_79 : f32 to vector<1x10x17x16xf32>
    %c0_80 = arith.constant 0 : index
    %c0_81 = arith.constant 0 : index
    %c0_82 = arith.constant 0 : index
    %c0_83 = arith.constant 0 : index
    %84 = vector.load %arg14[%c0_80, %c0_81, %c0_82, %c0_83] : memref<1x10x17x16xf32, #tpu.memory_space<vmem>>, vector<1x10x17x16xf32>
    tpu.vector_store %arg14[%c0_80, %c0_81, %c0_82, %c0_83], %83 {strides = array<i32>} : memref<1x10x17x16xf32, #tpu.memory_space<vmem>>, vector<1x10x17x16xf32>,
    %c0_84 = arith.constant 0 : index
    %c1_85 = arith.constant 1 : index
    %c8_86 = arith.constant 8 : index
    %c0_87 = arith.constant 0 : index
    %85 = vector.load %arg14[%c0_84, %c1_85, %c8_86, %c0_87] : memref<1x10x17x16xf32, #tpu.memory_space<vmem>>, vector<1x8x8x16xf32>
    tpu.vector_store %arg14[%c0_84, %c1_85, %c8_86, %c0_87], %82 {strides = array<i32>} : memref<1x10x17x16xf32, #tpu.memory_space<vmem>>, vector<1x8x8x16xf32>,
    %cst_88 = arith.constant 0.000000e+00 : f32
    %86 = vector.broadcast %cst_88 : f32 to vector<64x32xf32>
    %c0_89 = arith.constant 0 : index
    %c0_90 = arith.constant 0 : index
    %c7_91 = arith.constant 7 : index
    %c0_92 = arith.constant 0 : index
    %87 = vector.load %arg14[%c0_89, %c0_90, %c7_91, %c0_92] : memref<1x10x17x16xf32, #tpu.memory_space<vmem>>, vector<1x8x8x16xf32>
    %88 = vector.shape_cast %87 : vector<1x8x8x16xf32> to vector<64x16xf32>
    %89 = arith.truncf %88 : vector<64x16xf32> to vector<64x16xbf16>
    %c0_93 = arith.constant 0 : index
    %c0_94 = arith.constant 0 : index
    %c0_95 = arith.constant 0 : index
    %90 = vector.load %arg4[%c0_93, %c0_94, %c0_95] : memref<9x16x32xbf16, #tpu.memory_space<vmem>>, vector<1x16x32xbf16>
    %91 = vector.shape_cast %90 : vector<1x16x32xbf16> to vector<16x32xbf16>
    %cst_96 = arith.constant dense<0.000000e+00> : vector<64x32xf32>
    %92 = tpu.matmul %89, %91, %cst_96 {dimension_numbers = #tpu.dot_dimension_numbers<[1], [0], [0], [1], [0, 0, 1, 1], [], []>} : vector<64x16xbf16>, vector<16x32xbf16>, vector<64x32xf32> -> vector<64x32xf32>
    %93 = arith.addf %86, %92 : vector<64x32xf32>
    %c0_97 = arith.constant 0 : index
    %c0_98 = arith.constant 0 : index
    %c8_99 = arith.constant 8 : index
    %c0_100 = arith.constant 0 : index
    %94 = vector.load %arg14[%c0_97, %c0_98, %c8_99, %c0_100] : memref<1x10x17x16xf32, #tpu.memory_space<vmem>>, vector<1x8x8x16xf32>
    %95 = vector.shape_cast %94 : vector<1x8x8x16xf32> to vector<64x16xf32>
    %96 = arith.truncf %95 : vector<64x16xf32> to vector<64x16xbf16>
    %c1_101 = arith.constant 1 : index
    %c0_102 = arith.constant 0 : index
    %c0_103 = arith.constant 0 : index
    %97 = vector.load %arg4[%c1_101, %c0_102, %c0_103] : memref<9x16x32xbf16, #tpu.memory_space<vmem>>, vector<1x16x32xbf16>
    %98 = vector.shape_cast %97 : vector<1x16x32xbf16> to vector<16x32xbf16>
    %cst_104 = arith.constant dense<0.000000e+00> : vector<64x32xf32>
    %99 = tpu.matmul %96, %98, %cst_104 {dimension_numbers = #tpu.dot_dimension_numbers<[1], [0], [0], [1], [0, 0, 1, 1], [], []>} : vector<64x16xbf16>, vector<16x32xbf16>, vector<64x32xf32> -> vector<64x32xf32>
    %100 = arith.addf %93, %99 : vector<64x32xf32>
    %c0_105 = arith.constant 0 : index
    %c0_106 = arith.constant 0 : index
    %c9_107 = arith.constant 9 : index
    %c0_108 = arith.constant 0 : index
    %101 = vector.load %arg14[%c0_105, %c0_106, %c9_107, %c0_108] : memref<1x10x17x16xf32, #tpu.memory_space<vmem>>, vector<1x8x8x16xf32>
    %102 = vector.shape_cast %101 : vector<1x8x8x16xf32> to vector<64x16xf32>
    %103 = arith.truncf %102 : vector<64x16xf32> to vector<64x16xbf16>
    %c2_109 = arith.constant 2 : index
    %c0_110 = arith.constant 0 : index
    %c0_111 = arith.constant 0 : index
    %104 = vector.load %arg4[%c2_109, %c0_110, %c0_111] : memref<9x16x32xbf16, #tpu.memory_space<vmem>>, vector<1x16x32xbf16>
    %105 = vector.shape_cast %104 : vector<1x16x32xbf16> to vector<16x32xbf16>
    %cst_112 = arith.constant dense<0.000000e+00> : vector<64x32xf32>
    %106 = tpu.matmul %103, %105, %cst_112 {dimension_numbers = #tpu.dot_dimension_numbers<[1], [0], [0], [1], [0, 0, 1, 1], [], []>} : vector<64x16xbf16>, vector<16x32xbf16>, vector<64x32xf32> -> vector<64x32xf32>
    %107 = arith.addf %100, %106 : vector<64x32xf32>
    %c0_113 = arith.constant 0 : index
    %c1_114 = arith.constant 1 : index
    %c7_115 = arith.constant 7 : index
    %c0_116 = arith.constant 0 : index
    %108 = vector.load %arg14[%c0_113, %c1_114, %c7_115, %c0_116] : memref<1x10x17x16xf32, #tpu.memory_space<vmem>>, vector<1x8x8x16xf32>
    %109 = vector.shape_cast %108 : vector<1x8x8x16xf32> to vector<64x16xf32>
    %110 = arith.truncf %109 : vector<64x16xf32> to vector<64x16xbf16>
    %c3_117 = arith.constant 3 : index
    %c0_118 = arith.constant 0 : index
    %c0_119 = arith.constant 0 : index
    %111 = vector.load %arg4[%c3_117, %c0_118, %c0_119] : memref<9x16x32xbf16, #tpu.memory_space<vmem>>, vector<1x16x32xbf16>
    %112 = vector.shape_cast %111 : vector<1x16x32xbf16> to vector<16x32xbf16>
    %cst_120 = arith.constant dense<0.000000e+00> : vector<64x32xf32>
    %113 = tpu.matmul %110, %112, %cst_120 {dimension_numbers = #tpu.dot_dimension_numbers<[1], [0], [0], [1], [0, 0, 1, 1], [], []>} : vector<64x16xbf16>, vector<16x32xbf16>, vector<64x32xf32> -> vector<64x32xf32>
    %114 = arith.addf %107, %113 : vector<64x32xf32>
    %c0_121 = arith.constant 0 : index
    %c1_122 = arith.constant 1 : index
    %c8_123 = arith.constant 8 : index
    %c0_124 = arith.constant 0 : index
    %115 = vector.load %arg14[%c0_121, %c1_122, %c8_123, %c0_124] : memref<1x10x17x16xf32, #tpu.memory_space<vmem>>, vector<1x8x8x16xf32>
    %116 = vector.shape_cast %115 : vector<1x8x8x16xf32> to vector<64x16xf32>
    %117 = arith.truncf %116 : vector<64x16xf32> to vector<64x16xbf16>
    %c4_125 = arith.constant 4 : index
    %c0_126 = arith.constant 0 : index
    %c0_127 = arith.constant 0 : index
    %118 = vector.load %arg4[%c4_125, %c0_126, %c0_127] : memref<9x16x32xbf16, #tpu.memory_space<vmem>>, vector<1x16x32xbf16>
    %119 = vector.shape_cast %118 : vector<1x16x32xbf16> to vector<16x32xbf16>
    %cst_128 = arith.constant dense<0.000000e+00> : vector<64x32xf32>
    %120 = tpu.matmul %117, %119, %cst_128 {dimension_numbers = #tpu.dot_dimension_numbers<[1], [0], [0], [1], [0, 0, 1, 1], [], []>} : vector<64x16xbf16>, vector<16x32xbf16>, vector<64x32xf32> -> vector<64x32xf32>
    %121 = arith.addf %114, %120 : vector<64x32xf32>
    %c0_129 = arith.constant 0 : index
    %c1_130 = arith.constant 1 : index
    %c9_131 = arith.constant 9 : index
    %c0_132 = arith.constant 0 : index
    %122 = vector.load %arg14[%c0_129, %c1_130, %c9_131, %c0_132] : memref<1x10x17x16xf32, #tpu.memory_space<vmem>>, vector<1x8x8x16xf32>
    %123 = vector.shape_cast %122 : vector<1x8x8x16xf32> to vector<64x16xf32>
    %124 = arith.truncf %123 : vector<64x16xf32> to vector<64x16xbf16>
    %c5_133 = arith.constant 5 : index
    %c0_134 = arith.constant 0 : index
    %c0_135 = arith.constant 0 : index
    %125 = vector.load %arg4[%c5_133, %c0_134, %c0_135] : memref<9x16x32xbf16, #tpu.memory_space<vmem>>, vector<1x16x32xbf16>
    %126 = vector.shape_cast %125 : vector<1x16x32xbf16> to vector<16x32xbf16>
    %cst_136 = arith.constant dense<0.000000e+00> : vector<64x32xf32>
    %127 = tpu.matmul %124, %126, %cst_136 {dimension_numbers = #tpu.dot_dimension_numbers<[1], [0], [0], [1], [0, 0, 1, 1], [], []>} : vector<64x16xbf16>, vector<16x32xbf16>, vector<64x32xf32> -> vector<64x32xf32>
    %128 = arith.addf %121, %127 : vector<64x32xf32>
    %c0_137 = arith.constant 0 : index
    %c2_138 = arith.constant 2 : index
    %c7_139 = arith.constant 7 : index
    %c0_140 = arith.constant 0 : index
    %129 = vector.load %arg14[%c0_137, %c2_138, %c7_139, %c0_140] : memref<1x10x17x16xf32, #tpu.memory_space<vmem>>, vector<1x8x8x16xf32>
    %130 = vector.shape_cast %129 : vector<1x8x8x16xf32> to vector<64x16xf32>
    %131 = arith.truncf %130 : vector<64x16xf32> to vector<64x16xbf16>
    %c6_141 = arith.constant 6 : index
    %c0_142 = arith.constant 0 : index
    %c0_143 = arith.constant 0 : index
    %132 = vector.load %arg4[%c6_141, %c0_142, %c0_143] : memref<9x16x32xbf16, #tpu.memory_space<vmem>>, vector<1x16x32xbf16>
    %133 = vector.shape_cast %132 : vector<1x16x32xbf16> to vector<16x32xbf16>
    %cst_144 = arith.constant dense<0.000000e+00> : vector<64x32xf32>
    %134 = tpu.matmul %131, %133, %cst_144 {dimension_numbers = #tpu.dot_dimension_numbers<[1], [0], [0], [1], [0, 0, 1, 1], [], []>} : vector<64x16xbf16>, vector<16x32xbf16>, vector<64x32xf32> -> vector<64x32xf32>
    %135 = arith.addf %128, %134 : vector<64x32xf32>
    %c0_145 = arith.constant 0 : index
    %c2_146 = arith.constant 2 : index
    %c8_147 = arith.constant 8 : index
    %c0_148 = arith.constant 0 : index
    %136 = vector.load %arg14[%c0_145, %c2_146, %c8_147, %c0_148] : memref<1x10x17x16xf32, #tpu.memory_space<vmem>>, vector<1x8x8x16xf32>
    %137 = vector.shape_cast %136 : vector<1x8x8x16xf32> to vector<64x16xf32>
    %138 = arith.truncf %137 : vector<64x16xf32> to vector<64x16xbf16>
    %c7_149 = arith.constant 7 : index
    %c0_150 = arith.constant 0 : index
    %c0_151 = arith.constant 0 : index
    %139 = vector.load %arg4[%c7_149, %c0_150, %c0_151] : memref<9x16x32xbf16, #tpu.memory_space<vmem>>, vector<1x16x32xbf16>
    %140 = vector.shape_cast %139 : vector<1x16x32xbf16> to vector<16x32xbf16>
    %cst_152 = arith.constant dense<0.000000e+00> : vector<64x32xf32>
    %141 = tpu.matmul %138, %140, %cst_152 {dimension_numbers = #tpu.dot_dimension_numbers<[1], [0], [0], [1], [0, 0, 1, 1], [], []>} : vector<64x16xbf16>, vector<16x32xbf16>, vector<64x32xf32> -> vector<64x32xf32>
    %142 = arith.addf %135, %141 : vector<64x32xf32>
    %c0_153 = arith.constant 0 : index
    %c2_154 = arith.constant 2 : index
    %c9_155 = arith.constant 9 : index
    %c0_156 = arith.constant 0 : index
    %143 = vector.load %arg14[%c0_153, %c2_154, %c9_155, %c0_156] : memref<1x10x17x16xf32, #tpu.memory_space<vmem>>, vector<1x8x8x16xf32>
    %144 = vector.shape_cast %143 : vector<1x8x8x16xf32> to vector<64x16xf32>
    %145 = arith.truncf %144 : vector<64x16xf32> to vector<64x16xbf16>
    %c8_157 = arith.constant 8 : index
    %c0_158 = arith.constant 0 : index
    %c0_159 = arith.constant 0 : index
    %146 = vector.load %arg4[%c8_157, %c0_158, %c0_159] : memref<9x16x32xbf16, #tpu.memory_space<vmem>>, vector<1x16x32xbf16>
    %147 = vector.shape_cast %146 : vector<1x16x32xbf16> to vector<16x32xbf16>
    %cst_160 = arith.constant dense<0.000000e+00> : vector<64x32xf32>
    %148 = tpu.matmul %145, %147, %cst_160 {dimension_numbers = #tpu.dot_dimension_numbers<[1], [0], [0], [1], [0, 0, 1, 1], [], []>} : vector<64x16xbf16>, vector<16x32xbf16>, vector<64x32xf32> -> vector<64x32xf32>
    %149 = arith.addf %142, %148 : vector<64x32xf32>
    %c0_161 = arith.constant 0 : index
    %c0_162 = arith.constant 0 : index
    %150 = vector.load %arg5[%c0_161, %c0_162] : memref<1x32xf32, #tpu.memory_space<vmem>>, vector<1x32xf32>
    %151 = vector.broadcast %150 : vector<1x32xf32> to vector<64x32xf32>
    %152 = arith.addf %149, %151 : vector<64x32xf32>
    %cst_163 = arith.constant 0.000000e+00 : f32
    %153 = vector.broadcast %cst_163 : f32 to vector<64x32xf32>
    %154 = arith.maximumf %152, %153 : vector<64x32xf32>
    %155 = vector.shape_cast %154 : vector<64x32xf32> to vector<4x2x8x32xf32>
    %156 = vector.extract_strided_slice %155 {offsets = [0, 0, 0, 0], sizes = [4, 1, 8, 32], strides = [1, 1, 1, 1]} : vector<4x2x8x32xf32> to vector<4x1x8x32xf32>
    %157 = vector.shape_cast %156 : vector<4x1x8x32xf32> to vector<4x8x32xf32>
    %158 = vector.extract_strided_slice %155 {offsets = [0, 1, 0, 0], sizes = [4, 1, 8, 32], strides = [1, 1, 1, 1]} : vector<4x2x8x32xf32> to vector<4x1x8x32xf32>
    %159 = vector.shape_cast %158 : vector<4x1x8x32xf32> to vector<4x8x32xf32>
    %160 = arith.maximumf %157, %159 : vector<4x8x32xf32>
    %161 = vector.shape_cast %160 : vector<4x8x32xf32> to vector<4x4x2x32xf32>
    %cst_164 = arith.constant dense<0xFF800000> : vector<4x4x32xf32>
    %162 = vector.multi_reduction <maximumf>, %161, %cst_164 [2] : vector<4x4x2x32xf32> to vector<4x4x32xf32>
    %163 = vector.shape_cast %162 : vector<4x4x32xf32> to vector<1x4x4x32xf32>
    %cst_165 = arith.constant 0.000000e+00 : f32
    %164 = vector.broadcast %cst_165 : f32 to vector<1x6x13x32xf32>
    %c0_166 = arith.constant 0 : index
    %c0_167 = arith.constant 0 : index
    %c0_168 = arith.constant 0 : index
    %c0_169 = arith.constant 0 : index
    %165 = vector.load %arg15[%c0_166, %c0_167, %c0_168, %c0_169] : memref<1x6x13x32xf32, #tpu.memory_space<vmem>>, vector<1x6x13x32xf32>
    tpu.vector_store %arg15[%c0_166, %c0_167, %c0_168, %c0_169], %164 {strides = array<i32>} : memref<1x6x13x32xf32, #tpu.memory_space<vmem>>, vector<1x6x13x32xf32>,
    %c0_170 = arith.constant 0 : index
    %c1_171 = arith.constant 1 : index
    %c8_172 = arith.constant 8 : index
    %c0_173 = arith.constant 0 : index
    %166 = vector.load %arg15[%c0_170, %c1_171, %c8_172, %c0_173] : memref<1x6x13x32xf32, #tpu.memory_space<vmem>>, vector<1x4x4x32xf32>
    tpu.vector_store %arg15[%c0_170, %c1_171, %c8_172, %c0_173], %163 {strides = array<i32>} : memref<1x6x13x32xf32, #tpu.memory_space<vmem>>, vector<1x4x4x32xf32>,
    %cst_174 = arith.constant 0.000000e+00 : f32
    %167 = vector.broadcast %cst_174 : f32 to vector<16x64xf32>
    %c0_175 = arith.constant 0 : index
    %c0_176 = arith.constant 0 : index
    %c7_177 = arith.constant 7 : index
    %c0_178 = arith.constant 0 : index
    %168 = vector.load %arg15[%c0_175, %c0_176, %c7_177, %c0_178] : memref<1x6x13x32xf32, #tpu.memory_space<vmem>>, vector<1x4x4x32xf32>
    %169 = vector.shape_cast %168 : vector<1x4x4x32xf32> to vector<16x32xf32>
    %170 = arith.truncf %169 : vector<16x32xf32> to vector<16x32xbf16>
    %c0_179 = arith.constant 0 : index
    %c0_180 = arith.constant 0 : index
    %c0_181 = arith.constant 0 : index
    %171 = vector.load %arg6[%c0_179, %c0_180, %c0_181] : memref<9x32x64xbf16, #tpu.memory_space<vmem>>, vector<1x32x64xbf16>
    %172 = vector.shape_cast %171 : vector<1x32x64xbf16> to vector<32x64xbf16>
    %cst_182 = arith.constant dense<0.000000e+00> : vector<16x64xf32>
    %173 = tpu.matmul %170, %172, %cst_182 {dimension_numbers = #tpu.dot_dimension_numbers<[1], [0], [0], [1], [0, 0, 1, 1], [], []>} : vector<16x32xbf16>, vector<32x64xbf16>, vector<16x64xf32> -> vector<16x64xf32>
    %174 = arith.addf %167, %173 : vector<16x64xf32>
    %c0_183 = arith.constant 0 : index
    %c0_184 = arith.constant 0 : index
    %c8_185 = arith.constant 8 : index
    %c0_186 = arith.constant 0 : index
    %175 = vector.load %arg15[%c0_183, %c0_184, %c8_185, %c0_186] : memref<1x6x13x32xf32, #tpu.memory_space<vmem>>, vector<1x4x4x32xf32>
    %176 = vector.shape_cast %175 : vector<1x4x4x32xf32> to vector<16x32xf32>
    %177 = arith.truncf %176 : vector<16x32xf32> to vector<16x32xbf16>
    %c1_187 = arith.constant 1 : index
    %c0_188 = arith.constant 0 : index
    %c0_189 = arith.constant 0 : index
    %178 = vector.load %arg6[%c1_187, %c0_188, %c0_189] : memref<9x32x64xbf16, #tpu.memory_space<vmem>>, vector<1x32x64xbf16>
    %179 = vector.shape_cast %178 : vector<1x32x64xbf16> to vector<32x64xbf16>
    %cst_190 = arith.constant dense<0.000000e+00> : vector<16x64xf32>
    %180 = tpu.matmul %177, %179, %cst_190 {dimension_numbers = #tpu.dot_dimension_numbers<[1], [0], [0], [1], [0, 0, 1, 1], [], []>} : vector<16x32xbf16>, vector<32x64xbf16>, vector<16x64xf32> -> vector<16x64xf32>
    %181 = arith.addf %174, %180 : vector<16x64xf32>
    %c0_191 = arith.constant 0 : index
    %c0_192 = arith.constant 0 : index
    %c9_193 = arith.constant 9 : index
    %c0_194 = arith.constant 0 : index
    %182 = vector.load %arg15[%c0_191, %c0_192, %c9_193, %c0_194] : memref<1x6x13x32xf32, #tpu.memory_space<vmem>>, vector<1x4x4x32xf32>
    %183 = vector.shape_cast %182 : vector<1x4x4x32xf32> to vector<16x32xf32>
    %184 = arith.truncf %183 : vector<16x32xf32> to vector<16x32xbf16>
    %c2_195 = arith.constant 2 : index
    %c0_196 = arith.constant 0 : index
    %c0_197 = arith.constant 0 : index
    %185 = vector.load %arg6[%c2_195, %c0_196, %c0_197] : memref<9x32x64xbf16, #tpu.memory_space<vmem>>, vector<1x32x64xbf16>
    %186 = vector.shape_cast %185 : vector<1x32x64xbf16> to vector<32x64xbf16>
    %cst_198 = arith.constant dense<0.000000e+00> : vector<16x64xf32>
    %187 = tpu.matmul %184, %186, %cst_198 {dimension_numbers = #tpu.dot_dimension_numbers<[1], [0], [0], [1], [0, 0, 1, 1], [], []>} : vector<16x32xbf16>, vector<32x64xbf16>, vector<16x64xf32> -> vector<16x64xf32>
    %188 = arith.addf %181, %187 : vector<16x64xf32>
    %c0_199 = arith.constant 0 : index
    %c1_200 = arith.constant 1 : index
    %c7_201 = arith.constant 7 : index
    %c0_202 = arith.constant 0 : index
    %189 = vector.load %arg15[%c0_199, %c1_200, %c7_201, %c0_202] : memref<1x6x13x32xf32, #tpu.memory_space<vmem>>, vector<1x4x4x32xf32>
    %190 = vector.shape_cast %189 : vector<1x4x4x32xf32> to vector<16x32xf32>
    %191 = arith.truncf %190 : vector<16x32xf32> to vector<16x32xbf16>
    %c3_203 = arith.constant 3 : index
    %c0_204 = arith.constant 0 : index
    %c0_205 = arith.constant 0 : index
    %192 = vector.load %arg6[%c3_203, %c0_204, %c0_205] : memref<9x32x64xbf16, #tpu.memory_space<vmem>>, vector<1x32x64xbf16>
    %193 = vector.shape_cast %192 : vector<1x32x64xbf16> to vector<32x64xbf16>
    %cst_206 = arith.constant dense<0.000000e+00> : vector<16x64xf32>
    %194 = tpu.matmul %191, %193, %cst_206 {dimension_numbers = #tpu.dot_dimension_numbers<[1], [0], [0], [1], [0, 0, 1, 1], [], []>} : vector<16x32xbf16>, vector<32x64xbf16>, vector<16x64xf32> -> vector<16x64xf32>
    %195 = arith.addf %188, %194 : vector<16x64xf32>
    %c0_207 = arith.constant 0 : index
    %c1_208 = arith.constant 1 : index
    %c8_209 = arith.constant 8 : index
    %c0_210 = arith.constant 0 : index
    %196 = vector.load %arg15[%c0_207, %c1_208, %c8_209, %c0_210] : memref<1x6x13x32xf32, #tpu.memory_space<vmem>>, vector<1x4x4x32xf32>
    %197 = vector.shape_cast %196 : vector<1x4x4x32xf32> to vector<16x32xf32>
    %198 = arith.truncf %197 : vector<16x32xf32> to vector<16x32xbf16>
    %c4_211 = arith.constant 4 : index
    %c0_212 = arith.constant 0 : index
    %c0_213 = arith.constant 0 : index
    %199 = vector.load %arg6[%c4_211, %c0_212, %c0_213] : memref<9x32x64xbf16, #tpu.memory_space<vmem>>, vector<1x32x64xbf16>
    %200 = vector.shape_cast %199 : vector<1x32x64xbf16> to vector<32x64xbf16>
    %cst_214 = arith.constant dense<0.000000e+00> : vector<16x64xf32>
    %201 = tpu.matmul %198, %200, %cst_214 {dimension_numbers = #tpu.dot_dimension_numbers<[1], [0], [0], [1], [0, 0, 1, 1], [], []>} : vector<16x32xbf16>, vector<32x64xbf16>, vector<16x64xf32> -> vector<16x64xf32>
    %202 = arith.addf %195, %201 : vector<16x64xf32>
    %c0_215 = arith.constant 0 : index
    %c1_216 = arith.constant 1 : index
    %c9_217 = arith.constant 9 : index
    %c0_218 = arith.constant 0 : index
    %203 = vector.load %arg15[%c0_215, %c1_216, %c9_217, %c0_218] : memref<1x6x13x32xf32, #tpu.memory_space<vmem>>, vector<1x4x4x32xf32>
    %204 = vector.shape_cast %203 : vector<1x4x4x32xf32> to vector<16x32xf32>
    %205 = arith.truncf %204 : vector<16x32xf32> to vector<16x32xbf16>
    %c5_219 = arith.constant 5 : index
    %c0_220 = arith.constant 0 : index
    %c0_221 = arith.constant 0 : index
    %206 = vector.load %arg6[%c5_219, %c0_220, %c0_221] : memref<9x32x64xbf16, #tpu.memory_space<vmem>>, vector<1x32x64xbf16>
    %207 = vector.shape_cast %206 : vector<1x32x64xbf16> to vector<32x64xbf16>
    %cst_222 = arith.constant dense<0.000000e+00> : vector<16x64xf32>
    %208 = tpu.matmul %205, %207, %cst_222 {dimension_numbers = #tpu.dot_dimension_numbers<[1], [0], [0], [1], [0, 0, 1, 1], [], []>} : vector<16x32xbf16>, vector<32x64xbf16>, vector<16x64xf32> -> vector<16x64xf32>
    %209 = arith.addf %202, %208 : vector<16x64xf32>
    %c0_223 = arith.constant 0 : index
    %c2_224 = arith.constant 2 : index
    %c7_225 = arith.constant 7 : index
    %c0_226 = arith.constant 0 : index
    %210 = vector.load %arg15[%c0_223, %c2_224, %c7_225, %c0_226] : memref<1x6x13x32xf32, #tpu.memory_space<vmem>>, vector<1x4x4x32xf32>
    %211 = vector.shape_cast %210 : vector<1x4x4x32xf32> to vector<16x32xf32>
    %212 = arith.truncf %211 : vector<16x32xf32> to vector<16x32xbf16>
    %c6_227 = arith.constant 6 : index
    %c0_228 = arith.constant 0 : index
    %c0_229 = arith.constant 0 : index
    %213 = vector.load %arg6[%c6_227, %c0_228, %c0_229] : memref<9x32x64xbf16, #tpu.memory_space<vmem>>, vector<1x32x64xbf16>
    %214 = vector.shape_cast %213 : vector<1x32x64xbf16> to vector<32x64xbf16>
    %cst_230 = arith.constant dense<0.000000e+00> : vector<16x64xf32>
    %215 = tpu.matmul %212, %214, %cst_230 {dimension_numbers = #tpu.dot_dimension_numbers<[1], [0], [0], [1], [0, 0, 1, 1], [], []>} : vector<16x32xbf16>, vector<32x64xbf16>, vector<16x64xf32> -> vector<16x64xf32>
    %216 = arith.addf %209, %215 : vector<16x64xf32>
    %c0_231 = arith.constant 0 : index
    %c2_232 = arith.constant 2 : index
    %c8_233 = arith.constant 8 : index
    %c0_234 = arith.constant 0 : index
    %217 = vector.load %arg15[%c0_231, %c2_232, %c8_233, %c0_234] : memref<1x6x13x32xf32, #tpu.memory_space<vmem>>, vector<1x4x4x32xf32>
    %218 = vector.shape_cast %217 : vector<1x4x4x32xf32> to vector<16x32xf32>
    %219 = arith.truncf %218 : vector<16x32xf32> to vector<16x32xbf16>
    %c7_235 = arith.constant 7 : index
    %c0_236 = arith.constant 0 : index
    %c0_237 = arith.constant 0 : index
    %220 = vector.load %arg6[%c7_235, %c0_236, %c0_237] : memref<9x32x64xbf16, #tpu.memory_space<vmem>>, vector<1x32x64xbf16>
    %221 = vector.shape_cast %220 : vector<1x32x64xbf16> to vector<32x64xbf16>
    %cst_238 = arith.constant dense<0.000000e+00> : vector<16x64xf32>
    %222 = tpu.matmul %219, %221, %cst_238 {dimension_numbers = #tpu.dot_dimension_numbers<[1], [0], [0], [1], [0, 0, 1, 1], [], []>} : vector<16x32xbf16>, vector<32x64xbf16>, vector<16x64xf32> -> vector<16x64xf32>
    %223 = arith.addf %216, %222 : vector<16x64xf32>
    %c0_239 = arith.constant 0 : index
    %c2_240 = arith.constant 2 : index
    %c9_241 = arith.constant 9 : index
    %c0_242 = arith.constant 0 : index
    %224 = vector.load %arg15[%c0_239, %c2_240, %c9_241, %c0_242] : memref<1x6x13x32xf32, #tpu.memory_space<vmem>>, vector<1x4x4x32xf32>
    %225 = vector.shape_cast %224 : vector<1x4x4x32xf32> to vector<16x32xf32>
    %226 = arith.truncf %225 : vector<16x32xf32> to vector<16x32xbf16>
    %c8_243 = arith.constant 8 : index
    %c0_244 = arith.constant 0 : index
    %c0_245 = arith.constant 0 : index
    %227 = vector.load %arg6[%c8_243, %c0_244, %c0_245] : memref<9x32x64xbf16, #tpu.memory_space<vmem>>, vector<1x32x64xbf16>
    %228 = vector.shape_cast %227 : vector<1x32x64xbf16> to vector<32x64xbf16>
    %cst_246 = arith.constant dense<0.000000e+00> : vector<16x64xf32>
    %229 = tpu.matmul %226, %228, %cst_246 {dimension_numbers = #tpu.dot_dimension_numbers<[1], [0], [0], [1], [0, 0, 1, 1], [], []>} : vector<16x32xbf16>, vector<32x64xbf16>, vector<16x64xf32> -> vector<16x64xf32>
    %230 = arith.addf %223, %229 : vector<16x64xf32>
    %c0_247 = arith.constant 0 : index
    %c0_248 = arith.constant 0 : index
    %231 = vector.load %arg7[%c0_247, %c0_248] : memref<1x64xf32, #tpu.memory_space<vmem>>, vector<1x64xf32>
    %232 = vector.broadcast %231 : vector<1x64xf32> to vector<16x64xf32>
    %233 = arith.addf %230, %232 : vector<16x64xf32>
    %cst_249 = arith.constant 0.000000e+00 : f32
    %234 = vector.broadcast %cst_249 : f32 to vector<16x64xf32>
    %235 = arith.maximumf %233, %234 : vector<16x64xf32>
    %236 = vector.shape_cast %235 : vector<16x64xf32> to vector<2x2x4x64xf32>
    %237 = vector.extract_strided_slice %236 {offsets = [0, 0, 0, 0], sizes = [2, 1, 4, 64], strides = [1, 1, 1, 1]} : vector<2x2x4x64xf32> to vector<2x1x4x64xf32>
    %238 = vector.shape_cast %237 : vector<2x1x4x64xf32> to vector<2x4x64xf32>
    %239 = vector.extract_strided_slice %236 {offsets = [0, 1, 0, 0], sizes = [2, 1, 4, 64], strides = [1, 1, 1, 1]} : vector<2x2x4x64xf32> to vector<2x1x4x64xf32>
    %240 = vector.shape_cast %239 : vector<2x1x4x64xf32> to vector<2x4x64xf32>
    %241 = arith.maximumf %238, %240 : vector<2x4x64xf32>
    %242 = vector.shape_cast %241 : vector<2x4x64xf32> to vector<2x2x2x64xf32>
    %cst_250 = arith.constant dense<0xFF800000> : vector<2x2x64xf32>
    %243 = vector.multi_reduction <maximumf>, %242, %cst_250 [2] : vector<2x2x2x64xf32> to vector<2x2x64xf32>
    %244 = vector.shape_cast %243 : vector<2x2x64xf32> to vector<1x2x2x64xf32>
    %c0_251 = arith.constant 0 : index
    %c0_252 = arith.constant 0 : index
    %c0_253 = arith.constant 0 : index
    %c0_254 = arith.constant 0 : index
    %245 = vector.load %arg16[%c0_251, %c0_252, %c0_253, %c0_254] : memref<1x2x2x64xf32, #tpu.memory_space<vmem>>, vector<1x2x2x64xf32>
    tpu.vector_store %arg16[%c0_251, %c0_252, %c0_253, %c0_254], %244 {strides = array<i32>} : memref<1x2x2x64xf32, #tpu.memory_space<vmem>>, vector<1x2x2x64xf32>,
    %cst_255 = arith.constant 0.000000e+00 : f32
    %246 = vector.broadcast %cst_255 : f32 to vector<1x512xf32>
    %c0_256 = arith.constant 0 : index
    %c0_257 = arith.constant 0 : index
    %c0_258 = arith.constant 0 : index
    %c0_259 = arith.constant 0 : index
    %247 = vector.load %arg16[%c0_256, %c0_257, %c0_258, %c0_259] : memref<1x2x2x64xf32, #tpu.memory_space<vmem>>, vector<1x1x1x64xf32>
    %248 = vector.shape_cast %247 : vector<1x1x1x64xf32> to vector<1x64xf32>
    %249 = arith.truncf %248 : vector<1x64xf32> to vector<1x64xbf16>
    %c0_260 = arith.constant 0 : index
    %c0_261 = arith.constant 0 : index
    %c0_262 = arith.constant 0 : index
    %250 = vector.load %arg8[%c0_260, %c0_261, %c0_262] : memref<4x64x512xbf16, #tpu.memory_space<vmem>>, vector<1x64x512xbf16>
    %251 = vector.shape_cast %250 : vector<1x64x512xbf16> to vector<64x512xbf16>
    %cst_263 = arith.constant dense<0.000000e+00> : vector<1x512xf32>
    %252 = tpu.matmul %249, %251, %cst_263 {dimension_numbers = #tpu.dot_dimension_numbers<[1], [0], [0], [1], [0, 0, 1, 1], [], []>} : vector<1x64xbf16>, vector<64x512xbf16>, vector<1x512xf32> -> vector<1x512xf32>
    %253 = arith.addf %246, %252 : vector<1x512xf32>
    %c0_264 = arith.constant 0 : index
    %c0_265 = arith.constant 0 : index
    %c1_266 = arith.constant 1 : index
    %c0_267 = arith.constant 0 : index
    %254 = vector.load %arg16[%c0_264, %c0_265, %c1_266, %c0_267] : memref<1x2x2x64xf32, #tpu.memory_space<vmem>>, vector<1x1x1x64xf32>
    %255 = vector.shape_cast %254 : vector<1x1x1x64xf32> to vector<1x64xf32>
    %256 = arith.truncf %255 : vector<1x64xf32> to vector<1x64xbf16>
    %c1_268 = arith.constant 1 : index
    %c0_269 = arith.constant 0 : index
    %c0_270 = arith.constant 0 : index
    %257 = vector.load %arg8[%c1_268, %c0_269, %c0_270] : memref<4x64x512xbf16, #tpu.memory_space<vmem>>, vector<1x64x512xbf16>
    %258 = vector.shape_cast %257 : vector<1x64x512xbf16> to vector<64x512xbf16>
    %cst_271 = arith.constant dense<0.000000e+00> : vector<1x512xf32>
    %259 = tpu.matmul %256, %258, %cst_271 {dimension_numbers = #tpu.dot_dimension_numbers<[1], [0], [0], [1], [0, 0, 1, 1], [], []>} : vector<1x64xbf16>, vector<64x512xbf16>, vector<1x512xf32> -> vector<1x512xf32>
    %260 = arith.addf %253, %259 : vector<1x512xf32>
    %c0_272 = arith.constant 0 : index
    %c1_273 = arith.constant 1 : index
    %c0_274 = arith.constant 0 : index
    %c0_275 = arith.constant 0 : index
    %261 = vector.load %arg16[%c0_272, %c1_273, %c0_274, %c0_275] : memref<1x2x2x64xf32, #tpu.memory_space<vmem>>, vector<1x1x1x64xf32>
    %262 = vector.shape_cast %261 : vector<1x1x1x64xf32> to vector<1x64xf32>
    %263 = arith.truncf %262 : vector<1x64xf32> to vector<1x64xbf16>
    %c2_276 = arith.constant 2 : index
    %c0_277 = arith.constant 0 : index
    %c0_278 = arith.constant 0 : index
    %264 = vector.load %arg8[%c2_276, %c0_277, %c0_278] : memref<4x64x512xbf16, #tpu.memory_space<vmem>>, vector<1x64x512xbf16>
    %265 = vector.shape_cast %264 : vector<1x64x512xbf16> to vector<64x512xbf16>
    %cst_279 = arith.constant dense<0.000000e+00> : vector<1x512xf32>
    %266 = tpu.matmul %263, %265, %cst_279 {dimension_numbers = #tpu.dot_dimension_numbers<[1], [0], [0], [1], [0, 0, 1, 1], [], []>} : vector<1x64xbf16>, vector<64x512xbf16>, vector<1x512xf32> -> vector<1x512xf32>
    %267 = arith.addf %260, %266 : vector<1x512xf32>
    %c0_280 = arith.constant 0 : index
    %c1_281 = arith.constant 1 : index
    %c1_282 = arith.constant 1 : index
    %c0_283 = arith.constant 0 : index
    %268 = vector.load %arg16[%c0_280, %c1_281, %c1_282, %c0_283] : memref<1x2x2x64xf32, #tpu.memory_space<vmem>>, vector<1x1x1x64xf32>
    %269 = vector.shape_cast %268 : vector<1x1x1x64xf32> to vector<1x64xf32>
    %270 = arith.truncf %269 : vector<1x64xf32> to vector<1x64xbf16>
    %c3_284 = arith.constant 3 : index
    %c0_285 = arith.constant 0 : index
    %c0_286 = arith.constant 0 : index
    %271 = vector.load %arg8[%c3_284, %c0_285, %c0_286] : memref<4x64x512xbf16, #tpu.memory_space<vmem>>, vector<1x64x512xbf16>
    %272 = vector.shape_cast %271 : vector<1x64x512xbf16> to vector<64x512xbf16>
    %cst_287 = arith.constant dense<0.000000e+00> : vector<1x512xf32>
    %273 = tpu.matmul %270, %272, %cst_287 {dimension_numbers = #tpu.dot_dimension_numbers<[1], [0], [0], [1], [0, 0, 1, 1], [], []>} : vector<1x64xbf16>, vector<64x512xbf16>, vector<1x512xf32> -> vector<1x512xf32>
    %274 = arith.addf %267, %273 : vector<1x512xf32>
    %c0_288 = arith.constant 0 : index
    %c0_289 = arith.constant 0 : index
    %275 = vector.load %arg9[%c0_288, %c0_289] : memref<1x512xf32, #tpu.memory_space<vmem>>, vector<1x512xf32>
    %276 = arith.addf %274, %275 : vector<1x512xf32>
    %cst_290 = arith.constant 0.000000e+00 : f32
    %277 = vector.broadcast %cst_290 : f32 to vector<1x512xf32>
    %278 = arith.maximumf %276, %277 : vector<1x512xf32>
    %279 = arith.truncf %278 : vector<1x512xf32> to vector<1x512xbf16>
    %c0_291 = arith.constant 0 : index
    %c0_292 = arith.constant 0 : index
    %280 = vector.load %arg10[%c0_291, %c0_292] : memref<512x128xbf16, #tpu.memory_space<vmem>>, vector<512x128xbf16>
    %cst_293 = arith.constant dense<0.000000e+00> : vector<1x128xf32>
    %281 = tpu.matmul %279, %280, %cst_293 {dimension_numbers = #tpu.dot_dimension_numbers<[1], [0], [0], [1], [0, 0, 1, 1], [], []>} : vector<1x512xbf16>, vector<512x128xbf16>, vector<1x128xf32> -> vector<1x128xf32>
    %c0_294 = arith.constant 0 : index
    %c0_295 = arith.constant 0 : index
    %282 = vector.load %arg11[%c0_294, %c0_295] : memref<1x128xf32, #tpu.memory_space<vmem>>, vector<1x128xf32>
    %283 = arith.addf %281, %282 : vector<1x128xf32>
    %c0_296 = arith.constant 0 : index
    %c0_297 = arith.constant 0 : index
    %c0_298 = arith.constant 0 : index
    %284 = vector.load %arg12[%c0_296, %c0_297, %c0_298] : memref<1x1x128xf32, #tpu.memory_space<vmem>>, vector<1x1x128xf32>
    %285 = vector.shape_cast %284 : vector<1x1x128xf32> to vector<1x128xf32>
    %286 = vector.shape_cast %283 : vector<1x128xf32> to vector<1x1x128xf32>
    tpu.vector_store %arg12[%c0_296, %c0_297, %c0_298], %286 {strides = array<i32>} : memref<1x1x128xf32, #tpu.memory_space<vmem>>, vector<1x1x128xf32>,
    return
  }
  func.func @transform_0(%arg0: i32) -> (i32, i32, i32, i32) {
    %c0_i32 = arith.constant 0 : i32
    %c0_i32_0 = arith.constant 0 : i32
    %c0_i32_1 = arith.constant 0 : i32
    %c0_i32_2 = arith.constant 0 : i32
    return %arg0, %c0_i32, %c0_i32_0, %c0_i32_1 : i32, i32, i32, i32
  }
  func.func @transform_1(%arg0: i32) -> (i32, i32, i32) {
    %c0_i32 = arith.constant 0 : i32
    %c0_i32_0 = arith.constant 0 : i32
    %c0_i32_1 = arith.constant 0 : i32
    %c0_i32_2 = arith.constant 0 : i32
    return %c0_i32, %c0_i32_0, %c0_i32_1 : i32, i32, i32
  }
  func.func @transform_2(%arg0: i32) -> (i32, i32) {
    %c0_i32 = arith.constant 0 : i32
    %c0_i32_0 = arith.constant 0 : i32
    %c0_i32_1 = arith.constant 0 : i32
    return %c0_i32, %c0_i32_0 : i32, i32
  }
  func.func @transform_3(%arg0: i32) -> (i32, i32, i32) {
    %c0_i32 = arith.constant 0 : i32
    %c0_i32_0 = arith.constant 0 : i32
    %c0_i32_1 = arith.constant 0 : i32
    %c0_i32_2 = arith.constant 0 : i32
    return %c0_i32, %c0_i32_0, %c0_i32_1 : i32, i32, i32
  }
  func.func @transform_4(%arg0: i32) -> (i32, i32) {
    %c0_i32 = arith.constant 0 : i32
    %c0_i32_0 = arith.constant 0 : i32
    %c0_i32_1 = arith.constant 0 : i32
    return %c0_i32, %c0_i32_0 : i32, i32
  }
  func.func @transform_5(%arg0: i32) -> (i32, i32, i32) {
    %c0_i32 = arith.constant 0 : i32
    %c0_i32_0 = arith.constant 0 : i32
    %c0_i32_1 = arith.constant 0 : i32
    %c0_i32_2 = arith.constant 0 : i32
    return %c0_i32, %c0_i32_0, %c0_i32_1 : i32, i32, i32
  }
  func.func @transform_6(%arg0: i32) -> (i32, i32) {
    %c0_i32 = arith.constant 0 : i32
    %c0_i32_0 = arith.constant 0 : i32
    %c0_i32_1 = arith.constant 0 : i32
    return %c0_i32, %c0_i32_0 : i32, i32
  }
  func.func @transform_7(%arg0: i32) -> (i32, i32, i32) {
    %c0_i32 = arith.constant 0 : i32
    %c0_i32_0 = arith.constant 0 : i32
    %c0_i32_1 = arith.constant 0 : i32
    %c0_i32_2 = arith.constant 0 : i32
    return %c0_i32, %c0_i32_0, %c0_i32_1 : i32, i32, i32
  }
  func.func @transform_8(%arg0: i32) -> (i32, i32) {
    %c0_i32 = arith.constant 0 : i32
    %c0_i32_0 = arith.constant 0 : i32
    %c0_i32_1 = arith.constant 0 : i32
    return %c0_i32, %c0_i32_0 : i32, i32
  }
  func.func @transform_9(%arg0: i32) -> (i32, i32) {
    %c0_i32 = arith.constant 0 : i32
    %c0_i32_0 = arith.constant 0 : i32
    %c0_i32_1 = arith.constant 0 : i32
    return %c0_i32, %c0_i32_0 : i32, i32
  }
  func.func @transform_10(%arg0: i32) -> (i32, i32) {
    %c0_i32 = arith.constant 0 : i32
    %c0_i32_0 = arith.constant 0 : i32
    %c0_i32_1 = arith.constant 0 : i32
    return %c0_i32, %c0_i32_0 : i32, i32
  }
  func.func @transform_11(%arg0: i32) -> (i32, i32, i32) {
    %c0_i32 = arith.constant 0 : i32
    %c0_i32_0 = arith.constant 0 : i32
    %c0_i32_1 = arith.constant 0 : i32
    return %arg0, %c0_i32, %c0_i32_0 : i32, i32, i32
  }
}

</mosaic_0001>

<bundles_post_ra>
// kernel: cnn_forward.1
= control target key start
LH: loop header
LB: loop body
LE: loop exit
PB: predicated region body
PF: predicated region fallthrough
CT: control target
= control target key end

     0   :  { %s11224_s0 = inlined_call_operand.vmem [shape: bf16[2,16,16,4], index: 0, kind: input, shape index: {}]   ;;  %s11225_s1 = inlined_call_operand.vmem [shape: bf16[9,4,16], index: 1, kind: input, shape index: {}]   ;;  %s11226_s2 = inlined_call_operand.vmem [shape: f32[1,16], index: 2, kind: input, shape index: {}]   ;;  %s11227_s3 = inlined_call_operand.hbm [shape: bf16[9,16,32], index: 3, kind: input, shape index: {}]   ;;  %s11228_s4 = inlined_call_operand.vmem [shape: f32[1,32], index: 4, kind: input, shape index: {}]   ;;  %s11229_s5 = inlined_call_operand.hbm [shape: bf16[9,32,64], index: 5, kind: input, shape index: {}]   ;;  %s11230_s6 = inlined_call_operand.vmem [shape: f32[1,64], index: 6, kind: input, shape index: {}]   ;;  %s11231_s7 = inlined_call_operand.vmem [shape: bf16[4,64,512], index: 7, kind: input, shape index: {}]   ;;  %s11232_s8 = inlined_call_operand.vmem [shape: f32[1,512], index: 8, kind: input, shape index: {}]   ;;  %s11233_s9 = inlined_call_operand.hbm [shape: bf16[512,128], index: 9, kind: input, shape index: {}]   ;;  %s11234_s10 = inlined_call_operand.vmem [shape: f32[1,128], index: 10, kind: input, shape index: {}]   ;;  %s11235_s11 = inlined_call_operand.hbm [shape: f32[2,1,128], index: 11, kind: output, shape index: {}]  }
   0x1   :  { %11250 = sst [smem:[#allocation30_spill]] %s11235_s11 }
   0x2   :  { %16 = vsyncpa [#allocation7], 0 }
   0x3   :  { %17 = vsyncpa [#allocation10], 0 }
   0x4   :  { %18 = vsyncpa [#allocation8], 0 }
   0x5   :  { %20 = vsyncpa [#allocation8 + $0x1], 0  ;;  %s9461_s17 = smov 0   ;;  %s9463_s18 = smov 0  }
   0x6   :  { %s9465_s19 = smov 0   ;;  %s9467_s20 = smov 0  }
   0x7 LB: > { %11251 = sst [smem:[#allocation16_spill]] %s9377_s17  ;;  %s9482_s21 = sadd.s32 4294967295, %s9389_s20   ;;  %s9389_s20 = sphi %s9467_s20, %s11291_s20   ;;  %s9385_s19 = sphi %s9465_s19, %s11293_s19   ;;  %s9381_s18 = sphi %s9463_s18, %s11295_s18   ;;  %s9377_s17 = sphi %s9461_s17, %s11294_s17  }
   0x8   : > { %11252 = sst [smem:[#allocation17_spill]] %s9385_s19  ;;  %s7441_s22 = sadd.s32 4294967294, %s9389_s20  }
   0x9   : > { %11253 = sst [smem:[#allocation18_spill]] %s9389_s20  ;;  %s9486_s23 = sadd.s32 1, %s9389_s20  }
   0xa   : > { %11254 = sst [smem:[#allocation19_spill]] %s9486_s23  ;;  %s269_s24 = sadd.s32 1, %s9385_s19 }
   0xb   : > { %s266_s25 = ssub.s32 %s9389_s20, %s9486_s23  ;;  %p279_p0 = scmp.ne.s32.totalorder %s9385_s19, %s9381_s18 }
   0xc   : > { %p267_p1 = scmp.eq.s32.totalorder %s266_s25, 0  ;;  %p280_p2 = scmp.eq.s32.totalorder %s9482_s21, 1 }
   0xd   : > { %p285_p3 = scmp.ne.s32.totalorder %s9381_s18, %s9377_s17  ;;  %p286_p4 = scmp.eq.s32.totalorder %s7441_s22, 1 }
   0xe   : > { %s9497_s26 = scalar_select %p267_p1, %s9385_s19, %s269_s24  }
   0xf   : > { %p9499_p5 = por %p280_p2, %p279_p0  ;;  %p9503_p6 = por %p286_p4, %p285_p3 }
  0x10   : > { %11255 = sst [smem:[#allocation20_spill]] %s9497_s26  ;;  %p7442_p7 = scmp.ge.s32.totalorder %s9389_s20, 1 }
  0x11   : > { %s11256_s27 = scalar_select %p9499_p5, 1, 0 }
  0x12   : > { %s11257_s28 = scalar_select %p9503_p6, 1, 0 }
  0x13   : > { %p293_p8 = scmp.lt.s32.totalorder %s9389_s20, 3  ;;  %p11239_p9 = scmp.eq.s32.totalorder %s9482_s21, 0 }
  0x14   : > { %11258 = sst [smem:[#allocation21_spill]] %s11257_s28  ;;  %s9391_s30 = smov [#allocation9]  }
  0x15   : > { %p9510_p10 = pnand %p7442_p7, %p293_p8  ;;  %s327_s12 = sshll.u32 %s9391_s30, 4  ;;  %s9516_s12 = int_to_ptr.vmem [resolvable:$true] %s327_s12 }
  0x16   : > { %s9392_s14 = smov [#allocation6]   ;;  %s9393_s16 = smov [#allocation11]  }
  0x17   : > { %s11259_s29 = scalar_select %p9510_p10, 1, 0 }
  0x18   : > { %p8998_p11 = pneg %p9510_p10  ;;  %s311_s15 = sshll.u32 %s9392_s14, 4  ;;  %s9524_s15 = int_to_ptr.vmem [resolvable:$true] %s311_s15 }
  0x19   : > { %s9526_s22 = sshll.u32 %s9393_s16, 4  ;;  %s9235_s26 = scalar_lea.hbm %s11229_s5, 2304  ;;  %s350_s22 = int_to_ptr.vmem [resolvable:$true] %s9526_s22 }
  0x1a   : > { %p9520_p12 = pnand %p11239_p9, %p8998_p11  ;;  %p9236_p13 = scmp.ne.s32.totalorder %s11229_s5, %s9235_s26 }
  0x1b   : > { %p9242_p3 = scmp.lt.u32.totalorder %s9235_s26, %s11229_s5 }
  0x1c   : > { %p9536_p0 = pneg %p9520_p12 }
  0x1e   : > { %p9238_p1 = pnand %p9536_p0, %p9236_p13 }
  0x20   : > { %p9239_p2 = pneg %p9238_p1 }
  0x22   : > { %p9244_p4 = pnand %p9242_p3, %p9239_p2 }
  0x24   : > { %9247 = shalt.err (!%p9244_p4)
}
  0x25   : > { %s9248_s19 = scalar_lea.vmem %s9516_s12, 2304  ;;  %p9256_p9 = scmp.lt.s32.totalorder %s9516_s12, %s9516_s12 }
  0x26   : > { %p9249_p7 = scmp.ne.s32.totalorder %s9516_s12, %s9248_s19  ;;  %p9257_p6 = scmp.lt.s32.totalorder %s9248_s19, %s9248_s19 }
  0x28   : > { %p9251_p8 = pnand %p9249_p7, %p9536_p0  ;;  %p9258_p13 = por %p9257_p6, %p9256_p9 }
  0x2a   : > { %p9252_p11 = pneg %p9251_p8 }
  0x2c   : > { %p9259_p1 = pnand %p9258_p13, %p9252_p11 }
  0x2e   : > { %9262 = shalt.err (!%p9259_p1)
}
  0x2f   : > { %s9394_s24 = smov 64   ;;  %s9395_s26 = smov 4  }
  0x30   : > { %9004 = dma.hbm_to_vmem [thread:$0]  (!%p9520_p12), %s11229_s5, 2304, %s9516_s12, [#allocation10], %s9394_s24, %s9394_s24, %s9395_s26  }
  0x31   : > { %s9263_s19 = scalar_lea.hbm %s11227_s3, 1152 }
  0x32   : > { %p9264_p6 = scmp.ne.s32.totalorder %s11227_s3, %s9263_s19  ;;  %p9270_p3 = scmp.lt.u32.totalorder %s9263_s19, %s11227_s3 }
  0x34   : > { %p9266_p9 = pnand %p9264_p6, %p9536_p0 }
  0x36   : > { %p9267_p2 = pneg %p9266_p9 }
  0x38   : > { %p9272_p4 = pnand %p9270_p3, %p9267_p2 }
  0x3a   : > { %9275 = shalt.err (!%p9272_p4)
}
  0x3b   : > { %s9276_s12 = scalar_lea.vmem %s9524_s15, 1152  ;;  %p9284_p13 = scmp.lt.s32.totalorder %s9524_s15, %s9524_s15 }
  0x3c   : > { %p9277_p7 = scmp.ne.s32.totalorder %s9524_s15, %s9276_s12  ;;  %p9285_p1 = scmp.lt.s32.totalorder %s9276_s12, %s9276_s12 }
  0x3e   : > { %p9279_p8 = pnand %p9277_p7, %p9536_p0  ;;  %p9286_p6 = por %p9285_p1, %p9284_p13 }
  0x40   : > { %p9280_p11 = pneg %p9279_p8 }
  0x42   : > { %p9287_p9 = pnand %p9286_p6, %p9280_p11 }
  0x44   : > { %9290 = shalt.err (!%p9287_p9)
}
  0x45   : > { %9001 = dma.hbm_to_vmem [thread:$0]  (!%p9520_p12), %s11227_s3, 1152, %s9524_s15, [#allocation7], %s9394_s24, %s9394_s24, %s9395_s26  }
  0x46   : > { %s9291_s25 = scalar_lea.hbm %s11233_s9, 4096 }
  0x47   : > { %p9292_p2 = scmp.ne.s32.totalorder %s11233_s9, %s9291_s25  ;;  %p9298_p7 = scmp.lt.u32.totalorder %s9291_s25, %s11233_s9 }
  0x49   : > { %p9294_p3 = pnand %p9292_p2, %p9536_p0 }
  0x4b   : > { %p9295_p4 = pneg %p9294_p3 }
  0x4d   : > { %p9300_p8 = pnand %p9298_p7, %p9295_p4 }
  0x4f   : > { %9303 = shalt.err (!%p9300_p8)
}
  0x50   : > { %s9304_s12 = scalar_lea.vmem %s350_s22, 4096  ;;  %p9312_p6 = scmp.lt.s32.totalorder %s350_s22, %s350_s22 }
  0x51   : > { %p9305_p11 = scmp.ne.s32.totalorder %s350_s22, %s9304_s12  ;;  %p9313_p9 = scmp.lt.s32.totalorder %s9304_s12, %s9304_s12 }
  0x53   : > { %p9307_p13 = pnand %p9305_p11, %p9536_p0  ;;  %p9314_p5 = por %p9313_p9, %p9312_p6 }
  0x55   : > { %p9308_p1 = pneg %p9307_p13 }
  0x57   : > { %p9315_p10 = pnand %p9314_p5, %p9308_p1 }
  0x59   : > { %9318 = shalt.err (!%p9315_p10)
}
  0x5a   : > { %9007 = dma.hbm_to_vmem [thread:$0]  (!%p9520_p12), %s11233_s9, 4096, %s350_s22, [#allocation10], %s9394_s24, %s9394_s24, %s9395_s26  }
  0x5b   : > { %p11262_p2 = scmp.ne.s32.totalorder %s11259_s29, 0 }
  0x5d   : > { %376 = sbr.rel (%p11262_p2) target bundleno = 2267 (0x8db), region = 64 }
  0x64   : > { %p11263_p0 = scmp.eq.s32.totalorder %s9482_s21, 0 }
  0x66   : > { %9364 = dma.done.wait (%p11263_p0), [#allocation7], 1152   ;;  %p11264_p3 = pmov %p11263_p0 }
  0x67   : > { %p11265_p5 = pmov %p11263_p0 }
  0x68   : > { %9366 = vsyncadd (%p11264_p3), [#allocation7], 4294966144 }
  0x69   : > { %9368 = dma.done.wait (%p11265_p5), [#allocation10], 6400   ;;  %p11266_p10 = pmov %p11263_p0 }
  0x6a   : > { %vm493_vm0 = vcmask 31744   ;;  %p423_p4 = scmp.lt.s32.totalorder %s9482_s21, 1  ;;  %v11246_v0 = vmov 0.0   ;;  %vm497_vm1 = vcmask 24576   ;;  %vm747_vm2 = vcmask 1041408   ;;  %s421_s30 = sand.u32 1, %s9381_s18  }
  0x6b   : > { %9370 = vsyncadd (%p11266_p10), [#allocation10], 4294960896  ;;  %494 = vst.msk [vmem:[#allocation2] sm:$0xff] %vm493_vm0, %v11246_v0  ;;  %v648_v1 = vld [vmem:[%s11225_s1] sm:$0x3]  ;;  %vm4071_vm3 = vcmask 130048  }
  0x6c   : > { %495 = vst.msk [vmem:[#allocation2 + $0x8] sm:$0xff] %vm493_vm0, %v11246_v0  ;;  %496 = vst.msk [vmem:[#allocation2 + $0x10] sm:$0xff] %vm493_vm0, %v11246_v0  ;;  %s424_s23 = scalar_select %p423_p4, %s9482_s21, 1  ;;  %v9777_v2 = vld [vmem:[%s11225_s1 + $0x4] sm:$0x3]  ;;  %8975 = vmatprep.subr.msk.bf16.mxu0 %vm747_vm2, %v648_v1  ;;  %v9782_v4 = vsel %vm747_vm2, %v648_v1, 0 }
  0x6d   : > { %499 = vst.msk [vmem:[#allocation2 + $0x20] sm:$0xff] %vm493_vm0, %v11246_v0  ;;  %500 = vst.msk [vmem:[#allocation2 + $0x28] sm:$0xff] %vm493_vm0, %v11246_v0  ;;  %8219 = vmatpush3.bf16.msra.mxu0 %v9782_v4  ;;  %v1223_v55 = vsel %vm747_vm2, %v9777_v2, 0  ;;  %v7503_v59 = vld [vmem:[%s11225_s1 + $0x6] sm:$0x3]  ;;  %vm3622_vm4 = vcmask 123904  }
  0x6e   : > { %501 = vst.msk [vmem:[#allocation2 + $0x30] sm:$0xff] %vm493_vm0, %v11246_v0  ;;  %503 = vst.msk [vmem:[#allocation2 + $0x40] sm:$0xff] %vm493_vm0, %v11246_v0  ;;  %s7835_s29 = sshll.u32 %s424_s23, 7  ;;  %8977 = vmatprep.subr.msk.bf16.mxu0 %vm747_vm2, %v9777_v2  ;;  %vm4167_vm5 = vcmask 1041409   ;;  %vm4169_vm6 = vcmask 1042434   ;;  %vm4171_vm7 = vcmask 1043459  }
  0x6f   : > { %504 = vst.msk [vmem:[#allocation2 + $0x48] sm:$0xff] %vm493_vm0, %v11246_v0  ;;  %505 = vst.msk [vmem:[#allocation2 + $0x50] sm:$0xff] %vm493_vm0, %v11246_v0  ;;  %s9769_s24 = scalar_lea.vmem %s11224_s0, %s7835_s29  ;;  %vm4173_vm8 = vcmask 1044484   ;;  %vm4175_vm9 = vcmask 1045509   ;;  %vm4177_vm10 = vcmask 1046534   ;;  %vm4179_vm11 = vcmask 1047559  }
  0x70   : > { %507 = vst.msk [vmem:[#allocation2 + $0x60] sm:$0xff] %vm493_vm0, %v11246_v0  ;;  %508 = vst.msk [vmem:[#allocation2 + $0x68] sm:$0xff] %vm493_vm0, %v11246_v0  ;;  %v7837_v3 = vld [vmem:[%s9769_s24] sm:$0xff]   ;;  %v7900_v9 = vld [vmem:[%s9769_s24 + $0x8] sm:$0xff]   ;;  %vm4074_vm12 = vcmask 122880   ;;  %vm5415_vm13 = vcmask 258048  }
  0x71   : > { %509 = vst.msk [vmem:[#allocation2 + $0x70] sm:$0xff] %vm493_vm0, %v11246_v0  ;;  %511 = vst.msk [vmem:[#allocation2 + $0x80] sm:$0xff] %vm493_vm0, %v11246_v0  ;;  %v7838_v7 = vunpack.c.l.bf16 %v7837_v3  ;;  %v7839_v8 = vunpack.c.h.bf16 %v7837_v3  ;;  %v7842_v11 = vunpack.c.l.bf16 %v7900_v9  ;;  %v7843_v12 = vunpack.c.h.bf16 %v7900_v9  ;;  %v7901_v13 = vld [vmem:[%s9769_s24 + $0x10] sm:$0xff]   ;;  %v7902_v14 = vld [vmem:[%s9769_s24 + $0x18] sm:$0xff]   ;;  %s7832_s19 = sshll.u32 %s9482_s21, 4  ;;  %s422_s12 = scalar_lea.vmem [#allocation12], %s421_s30 }
  0x72   : > { %512 = vst.msk [vmem:[#allocation2 + $0x88] sm:$0xff] %vm493_vm0, %v11246_v0  ;;  %513 = vst.msk [vmem:[#allocation2 + $0x90] sm:$0xff] %vm493_vm0, %v11246_v0  ;;  %v7903_v15 = vld [vmem:[%s9769_s24 + $0x20] sm:$0xff]   ;;  %v7846_v16 = vunpack.c.l.bf16 %v7901_v13  ;;  %v7847_v17 = vunpack.c.h.bf16 %v7901_v13  ;;  %v7850_v18 = vunpack.c.l.bf16 %v7902_v14  ;;  %v7851_v19 = vunpack.c.h.bf16 %v7902_v14  ;;  %v7904_v20 = vld [vmem:[%s9769_s24 + $0x28] sm:$0xff]   ;;  %s7355_s15 = sshll.u32 %s422_s12, 4  ;;  %s11285_s29 = sld [smem:[#allocation30_spill]]  ;;  %s11184_s15 = int_to_ptr.vmem [resolvable:$true] %s7355_s15 }
  0x73   : > { %515 = vst.msk [vmem:[#allocation2 + $0xa0] sm:$0xff] %vm493_vm0, %v11246_v0  ;;  %516 = vst.msk [vmem:[#allocation2 + $0xa8] sm:$0xff] %vm493_vm0, %v11246_v0  ;;  %v600_v5 = vld [vmem:[#allocation2 + $0x7] sm:$0xff]  ;;  %v601_v6 = vld [vmem:[#allocation2 + $0xf] sm:$0xff]  ;;  %v7854_v23 = vunpack.c.l.bf16 %v7903_v15  ;;  %v7855_v24 = vunpack.c.h.bf16 %v7903_v15  ;;  %v7858_v25 = vunpack.c.l.bf16 %v7904_v20  ;;  %v7859_v26 = vunpack.c.h.bf16 %v7904_v20  ;;  %s7343_s22 = scalar_lea.sflag [#allocation8], %s421_s30  ;;  %s9319_s21 = scalar_lea.vmem %s11184_s15, 16 }
  0x74   : > { %517 = vst.msk [vmem:[#allocation2 + $0xb0] sm:$0xff] %vm493_vm0, %v11246_v0  ;;  %519 = vst.msk [vmem:[#allocation2 + $0xc0] sm:$0xff] %vm493_vm0, %v11246_v0  ;;  %v632_v10 = vpack.c.bf16 %v601_v6, %v600_v5  ;;  %v7905_v21 = vld [vmem:[%s9769_s24 + $0x30] sm:$0xff]   ;;  %v7906_v22 = vld [vmem:[%s9769_s24 + $0x38] sm:$0xff]   ;;  %vm5413_vm14 = vcmask 261120   ;;  %vm9398_vm15 = vmmov 0   ;;  %p9320_p12 = scmp.ne.s32.totalorder %s11184_s15, %s9319_s21 }
  0x75   : > { %520 = vst.msk [vmem:[#allocation2 + $0xc8] sm:$0xff] %vm493_vm0, %v11246_v0  ;;  %521 = vst.msk [vmem:[#allocation2 + $0xd0] sm:$0xff] %vm493_vm0, %v11246_v0  ;;  %v7907_v27 = vld [vmem:[%s9769_s24 + $0x40] sm:$0xff]   ;;  %v7908_v28 = vld [vmem:[%s9769_s24 + $0x48] sm:$0xff]   ;;  %v7862_v30 = vunpack.c.l.bf16 %v7905_v21  ;;  %v7863_v31 = vunpack.c.h.bf16 %v7905_v21  ;;  %v7866_v32 = vunpack.c.l.bf16 %v7906_v22  ;;  %v7867_v33 = vunpack.c.h.bf16 %v7906_v22  ;;  %p11286_p7 = scmp.ne.s32.totalorder %s11256_s27, 0 }
  0x76   : > { %523 = vst.msk [vmem:[#allocation2 + $0xe0] sm:$0xff] %vm493_vm0, %v11246_v0  ;;  %524 = vst.msk [vmem:[#allocation2 + $0xe8] sm:$0xff] %vm493_vm0, %v11246_v0  ;;  %8220 = vmatprep.mubr.msk.bf16.mxu0 %vm493_vm0, %v632_v10  ;;  %v7909_v29 = vld [vmem:[%s9769_s24 + $0x50] sm:$0xff]   ;;  %v7870_v34 = vunpack.c.l.bf16 %v7907_v27  ;;  %v7871_v35 = vunpack.c.h.bf16 %v7907_v27  ;;  %v7874_v36 = vunpack.c.l.bf16 %v7908_v28  ;;  %v7875_v37 = vunpack.c.h.bf16 %v7908_v28  ;;  %v7910_v38 = vld [vmem:[%s9769_s24 + $0x58] sm:$0xff]  }
  0x77   : > { %525 = vst.msk [vmem:[#allocation2 + $0xf0] sm:$0xff] %vm493_vm0, %v11246_v0  ;;  %527 = vst.msk [vmem:[#allocation2 + $0x100] sm:$0xff] %vm493_vm0, %v11246_v0  ;;  %v7911_v39 = vld [vmem:[%s9769_s24 + $0x60] sm:$0xff]   ;;  %v7912_v40 = vld [vmem:[%s9769_s24 + $0x68] sm:$0xff]   ;;  %v7878_v41 = vunpack.c.l.bf16 %v7909_v29  ;;  %v7879_v42 = vunpack.c.h.bf16 %v7909_v29  ;;  %v7882_v44 = vunpack.c.l.bf16 %v7910_v38  ;;  %v7883_v45 = vunpack.c.h.bf16 %v7910_v38  ;;  %p9321_p8 = pnand %p9320_p12, %p11286_p7 }
  0x78   : > { %528 = vst.msk [vmem:[#allocation2 + $0x108] sm:$0xff] %vm493_vm0, %v11246_v0  ;;  %529 = vst.msk [vmem:[#allocation2 + $0x110] sm:$0xff] %vm493_vm0, %v11246_v0  ;;  %v7913_v43 = vld [vmem:[%s9769_s24 + $0x70] sm:$0xff]   ;;  %v7886_v46 = vunpack.c.l.bf16 %v7911_v39  ;;  %v7887_v47 = vunpack.c.h.bf16 %v7911_v39  ;;  %v7890_v48 = vunpack.c.l.bf16 %v7912_v40  ;;  %v7891_v49 = vunpack.c.h.bf16 %v7912_v40  ;;  %v7914_v20 = vld [vmem:[%s9769_s24 + $0x78] sm:$0xff]   ;;  %s11182_s13 = scalar_lea.hbm %s11285_s29, %s7832_s19  ;;  %s9400_s24 = smov [#allocation12]  }
  0x79   : > { %531 = vst.msk [vmem:[#allocation2 + $0x120] sm:$0xff] %vm493_vm0, %v11246_v0  ;;  %532 = vst.msk [vmem:[#allocation2 + $0x128] sm:$0xff] %vm493_vm0, %v11246_v0  ;;  %v7894_v50 = vunpack.c.l.bf16 %v7913_v43  ;;  %v7895_v51 = vunpack.c.h.bf16 %v7913_v43  ;;  %v7898_v22 = vunpack.c.l.bf16 %v7914_v20  ;;  %v1124_v27 = vld [vmem:[#allocation2 + $0x9] sm:$0xff]  ;;  %v1517_v38 = vsel %vm747_vm2, %v7503_v59, 0  ;;  %p9322_p11 = pneg %p9321_p8  ;;  %s9323_s26 = sshll.u32 %s9400_s24, 4  ;;  %s9324_s26 = int_to_ptr.vmem [resolvable:$false] %s9323_s26 }
  0x7a   : > { %533 = vst.msk [vmem:[#allocation2 + $0x130] sm:$0xff] %vm493_vm0, %v11246_v0  ;;  %535 = vst.msk [vmem:[#allocation2 + $0x140] sm:$0xff] %vm493_vm0, %v11246_v0  ;;  %s9325_s17 = scalar_lea.vmem %s9324_s26, 32  ;;  %p9326_p13 = scmp.lt.s32.totalorder %s11184_s15, %s9324_s26 }
  0x7b   : > { %536 = vst.msk [vmem:[#allocation2 + $0x148] sm:$0xff] %vm493_vm0, %v11246_v0  ;;  %537 = vst.msk [vmem:[#allocation2 + $0x150] sm:$0xff] %vm493_vm0, %v11246_v0  ;;  %p9327_p1 = scmp.lt.s32.totalorder %s9325_s17, %s9319_s21 }
  0x7c   : > { %539 = vst.msk [vmem:[#allocation2 + $0x160] sm:$0xff] %vm493_vm0, %v11246_v0  ;;  %540 = vst.msk [vmem:[#allocation2 + $0x168] sm:$0xff] %vm493_vm0, %v11246_v0 }
  0x7d   : > { %541 = vst.msk [vmem:[#allocation2 + $0x170] sm:$0xff] %vm493_vm0, %v11246_v0  ;;  %543 = vst.msk [vmem:[#allocation2 + $0x180] sm:$0xff] %vm493_vm0, %v11246_v0  ;;  %p9328_p6 = por %p9327_p1, %p9326_p13 }
  0x7e   : > { %544 = vst.msk [vmem:[#allocation2 + $0x188] sm:$0xff] %vm493_vm0, %v11246_v0  ;;  %545 = vst.msk [vmem:[#allocation2 + $0x190] sm:$0xff] %vm493_vm0, %v11246_v0 }
  0x7f   : > { %547 = vst.msk [vmem:[#allocation2 + $0x1a0] sm:$0xff] %vm493_vm0, %v11246_v0  ;;  %548 = vst.msk [vmem:[#allocation2 + $0x1a8] sm:$0xff] %vm493_vm0, %v11246_v0  ;;  %p9329_p9 = pnand %p9328_p6, %p9322_p11 }
  0x80   : > { %549 = vst.msk [vmem:[#allocation2 + $0x1b0] sm:$0xff] %vm493_vm0, %v11246_v0  ;;  %551 = vst.msk [vmem:[#allocation2 + $0x1c0] sm:$0xff] %vm493_vm0, %v11246_v0 }
  0x81   : > { %552 = vst.msk [vmem:[#allocation2 + $0x1c8] sm:$0xff] %vm493_vm0, %v11246_v0  ;;  %553 = vst.msk [vmem:[#allocation2 + $0x1d0] sm:$0xff] %vm493_vm0, %v11246_v0 }
  0x82   : > { %555 = vst.msk [vmem:[#allocation2 + $0x1e0] sm:$0xff] %vm493_vm0, %v11246_v0  ;;  %556 = vst.msk [vmem:[#allocation2 + $0x1e8] sm:$0xff] %vm493_vm0, %v11246_v0 }
  0x83   : > { %557 = vst.msk [vmem:[#allocation2 + $0x1f0] sm:$0xff] %vm493_vm0, %v11246_v0  ;;  %559 = vst.msk [vmem:[#allocation2 + $0x200] sm:$0xff] %vm493_vm0, %v11246_v0 }
  0x84   : > { %560 = vst.msk [vmem:[#allocation2 + $0x208] sm:$0xff] %vm493_vm0, %v11246_v0  ;;  %561 = vst.msk [vmem:[#allocation2 + $0x210] sm:$0xff] %vm493_vm0, %v11246_v0 }
  0x85   : > { %563 = vst.msk [vmem:[#allocation2 + $0x220] sm:$0xff] %vm493_vm0, %v11246_v0  ;;  %564 = vst.msk [vmem:[#allocation2 + $0x228] sm:$0xff] %vm493_vm0, %v11246_v0 }
  0x86   : > { %565 = vst.msk [vmem:[#allocation2 + $0x230] sm:$0xff] %vm493_vm0, %v11246_v0  ;;  %568 = vst.msk [vmem:[#allocation2 + $0x28] sm:$0xff] %vm493_vm0, %v7838_v7 }
  0x87   : > { %498 = vst.msk [vmem:[#allocation2 + $0x18] sm:$0x1] %vm497_vm1, %v11246_v0  ;;  %502 = vst.msk [vmem:[#allocation2 + $0x38] sm:$0x1] %vm497_vm1, %v11246_v0 }
  0x88   : > { %506 = vst.msk [vmem:[#allocation2 + $0x58] sm:$0x1] %vm497_vm1, %v11246_v0  ;;  %510 = vst.msk [vmem:[#allocation2 + $0x78] sm:$0x1] %vm497_vm1, %v11246_v0 }
  0x89   : > { %514 = vst.msk [vmem:[#allocation2 + $0x98] sm:$0x1] %vm497_vm1, %v11246_v0  ;;  %518 = vst.msk [vmem:[#allocation2 + $0xb8] sm:$0x1] %vm497_vm1, %v11246_v0 }
  0x8a   : > { %522 = vst.msk [vmem:[#allocation2 + $0xd8] sm:$0x1] %vm497_vm1, %v11246_v0  ;;  %526 = vst.msk [vmem:[#allocation2 + $0xf8] sm:$0x1] %vm497_vm1, %v11246_v0 }
  0x8b   : > { %530 = vst.msk [vmem:[#allocation2 + $0x118] sm:$0x1] %vm497_vm1, %v11246_v0  ;;  %534 = vst.msk [vmem:[#allocation2 + $0x138] sm:$0x1] %vm497_vm1, %v11246_v0 }
  0x8c   : > { %538 = vst.msk [vmem:[#allocation2 + $0x158] sm:$0x1] %vm497_vm1, %v11246_v0  ;;  %542 = vst.msk [vmem:[#allocation2 + $0x178] sm:$0x1] %vm497_vm1, %v11246_v0 }
  0x8d   : > { %546 = vst.msk [vmem:[#allocation2 + $0x198] sm:$0x1] %vm497_vm1, %v11246_v0  ;;  %550 = vst.msk [vmem:[#allocation2 + $0x1b8] sm:$0x1] %vm497_vm1, %v11246_v0  ;;  %v602_v52 = vld [vmem:[#allocation2 + $0x27] sm:$0xff] }
  0x8e   : > { %554 = vst.msk [vmem:[#allocation2 + $0x1d8] sm:$0x1] %vm497_vm1, %v11246_v0  ;;  %558 = vst.msk [vmem:[#allocation2 + $0x1f8] sm:$0x1] %vm497_vm1, %v11246_v0  ;;  %v1125_v28 = vld [vmem:[#allocation2 + $0x11] sm:$0xff] }
  0x8f   : > { %562 = vst.msk [vmem:[#allocation2 + $0x218] sm:$0x1] %vm497_vm1, %v11246_v0  ;;  %566 = vst.msk [vmem:[#allocation2 + $0x238] sm:$0x1] %vm497_vm1, %v11246_v0  ;;  %vm5460_vm1 = vcmask 257024  }
  0x90   : > { %569 = vst.msk [vmem:[#allocation2 + $0x30] sm:$0xff] %vm493_vm0, %v7839_v8  ;;  %570 = vst.msk [vmem:[#allocation2 + $0x48] sm:$0xff] %vm493_vm0, %v7842_v11 }
  0x91   : > { %571 = vst.msk [vmem:[#allocation2 + $0x50] sm:$0xff] %vm493_vm0, %v7843_v12  ;;  %572 = vst.msk [vmem:[#allocation2 + $0x68] sm:$0xff] %vm493_vm0, %v7846_v16 }
  0x92   : > { %573 = vst.msk [vmem:[#allocation2 + $0x70] sm:$0xff] %vm493_vm0, %v7847_v17  ;;  %574 = vst.msk [vmem:[#allocation2 + $0x88] sm:$0xff] %vm493_vm0, %v7850_v18 }
  0x93   : > { %575 = vst.msk [vmem:[#allocation2 + $0x90] sm:$0xff] %vm493_vm0, %v7851_v19  ;;  %576 = vst.msk [vmem:[#allocation2 + $0xa8] sm:$0xff] %vm493_vm0, %v7854_v23  ;;  %v7899_v23 = vunpack.c.h.bf16 %v7914_v20 }
  0x94   : > { %577 = vst.msk [vmem:[#allocation2 + $0xb0] sm:$0xff] %vm493_vm0, %v7855_v24  ;;  %578 = vst.msk [vmem:[#allocation2 + $0xc8] sm:$0xff] %vm493_vm0, %v7858_v25 }
  0x95   : > { %579 = vst.msk [vmem:[#allocation2 + $0xd0] sm:$0xff] %vm493_vm0, %v7859_v26  ;;  %580 = vst.msk [vmem:[#allocation2 + $0xe8] sm:$0xff] %vm493_vm0, %v7862_v30  ;;  %v1156_v30 = vpack.c.bf16 %v1125_v28, %v1124_v27  ;;  %v7537_v27 = vld [vmem:[%s11225_s1 + $0xa] sm:$0x3] }
  0x96   : > { %581 = vst.msk [vmem:[#allocation2 + $0xf0] sm:$0xff] %vm493_vm0, %v7863_v31  ;;  %582 = vst.msk [vmem:[#allocation2 + $0x108] sm:$0xff] %vm493_vm0, %v7866_v32 }
  0x97   : > { %583 = vst.msk [vmem:[#allocation2 + $0x110] sm:$0xff] %vm493_vm0, %v7867_v33  ;;  %584 = vst.msk [vmem:[#allocation2 + $0x128] sm:$0xff] %vm493_vm0, %v7870_v34  ;;  %v603_v53 = vld [vmem:[#allocation2 + $0x2f] sm:$0xff]  ;;  %v604_v56 = vld [vmem:[#allocation2 + $0x47] sm:$0xff] }
  0x98   : > { %585 = vst.msk [vmem:[#allocation2 + $0x130] sm:$0xff] %vm493_vm0, %v7871_v35  ;;  %586 = vst.msk [vmem:[#allocation2 + $0x148] sm:$0xff] %vm493_vm0, %v7874_v36  ;;  %v9828_v54 = vpack.c.bf16 %v603_v53, %v602_v52  ;;  %v605_v57 = vld [vmem:[#allocation2 + $0x4f] sm:$0xff]  ;;  %v606_v60 = vld [vmem:[#allocation2 + $0x67] sm:$0xff] }
  0x99   : > { %587 = vst.msk [vmem:[#allocation2 + $0x150] sm:$0xff] %vm493_vm0, %v7875_v37  ;;  %588 = vst.msk [vmem:[#allocation2 + $0x168] sm:$0xff] %vm493_vm0, %v7878_v41  ;;  %v9836_v58 = vpack.c.bf16 %v605_v57, %v604_v56  ;;  %v607_v61 = vld [vmem:[#allocation2 + $0x6f] sm:$0xff]  ;;  %v608_v62 = vld [vmem:[#allocation2 + $0x87] sm:$0xff] }
  0x9a   : > { %589 = vst.msk [vmem:[#allocation2 + $0x170] sm:$0xff] %vm493_vm0, %v7879_v42  ;;  %590 = vst.msk [vmem:[#allocation2 + $0x188] sm:$0xff] %vm493_vm0, %v7882_v44  ;;  %8221 = vmatmul.mubr.msk.bf16.vlgmr.msra.gmra.mrb[0].mxu0 %vm493_vm0, %v9828_v54  ;;  %v609_v63 = vld [vmem:[#allocation2 + $0x8f] sm:$0xff]  ;;  %v9846_v1 = vpack.c.bf16 %v607_v61, %v606_v60  ;;  %v610_v3 = vld [vmem:[#allocation2 + $0xa7] sm:$0xff] }
  0x9b   : > { %591 = vst.msk [vmem:[#allocation2 + $0x190] sm:$0xff] %vm493_vm0, %v7883_v45  ;;  %592 = vst.msk [vmem:[#allocation2 + $0x1a8] sm:$0xff] %vm493_vm0, %v7886_v46  ;;  %8253 = vmatpush3.bf16.msra.mxu0 %v1223_v55  ;;  %8224 = vmatprep.mubr.msk.bf16.mxu0 %vm493_vm0, %v9836_v58  ;;  %v9848_v2 = vpack.c.bf16 %v609_v63, %v608_v62  ;;  %v611_v5 = vld [vmem:[#allocation2 + $0xaf] sm:$0xff]  ;;  %v612_v6 = vld [vmem:[#allocation2 + $0xc7] sm:$0xff] }
  0x9c   : > { %593 = vst.msk [vmem:[#allocation2 + $0x1b0] sm:$0xff] %vm493_vm0, %v7887_v47  ;;  %594 = vst.msk [vmem:[#allocation2 + $0x1c8] sm:$0xff] %vm493_vm0, %v7890_v48  ;;  %8978 = vmatprep.subr.msk.bf16.mxu0 %vm747_vm2, %v7503_v59  ;;  %v613_v7 = vld [vmem:[#allocation2 + $0xcf] sm:$0xff]  ;;  %v9854_v8 = vpack.c.bf16 %v611_v5, %v610_v3  ;;  %v614_v10 = vld [vmem:[#allocation2 + $0xe7] sm:$0xff] }
  0x9d   : > { %595 = vst.msk [vmem:[#allocation2 + $0x1d0] sm:$0xff] %vm493_vm0, %v7891_v49  ;;  %596 = vst.msk [vmem:[#allocation2 + $0x1e8] sm:$0xff] %vm493_vm0, %v7894_v50  ;;  %v9856_v9 = vpack.c.bf16 %v613_v7, %v612_v6  ;;  %v615_v11 = vld [vmem:[#allocation2 + $0xef] sm:$0xff]  ;;  %v616_v12 = vld [vmem:[#allocation2 + $0x107] sm:$0xff] }
  0x9e   : > { %597 = vst.msk [vmem:[#allocation2 + $0x1f0] sm:$0xff] %vm493_vm0, %v7895_v51  ;;  %v617_v13 = vld [vmem:[#allocation2 + $0x10f] sm:$0xff]  ;;  %v9862_v14 = vpack.c.bf16 %v615_v11, %v614_v10  ;;  %v618_v16 = vld [vmem:[#allocation2 + $0x127] sm:$0xff]  ;;  %598 = vst.msk [vmem:[#allocation2 + $0x208] sm:$0xff] %vm493_vm0, %v7898_v22 }
  0x9f   : > { %v9864_v15 = vpack.c.bf16 %v617_v13, %v616_v12  ;;  %v619_v17 = vld [vmem:[#allocation2 + $0x12f] sm:$0xff]  ;;  %v620_v18 = vld [vmem:[#allocation2 + $0x147] sm:$0xff]  ;;  %599 = vst.msk [vmem:[#allocation2 + $0x210] sm:$0xff] %vm493_vm0, %v7899_v23 }
  0xa0   : > { %v621_v19 = vld [vmem:[#allocation2 + $0x14f] sm:$0xff]  ;;  %v9871_v21 = vpack.c.bf16 %v619_v17, %v618_v16  ;;  %v622_v25 = vld [vmem:[#allocation2 + $0x167] sm:$0xff]  ;;  %4077 = vst.msk [vmem:[#allocation3 + $0x20] sm:$0xff] %vm4071_vm3, %v11246_v0  ;;  %4072 = vst.msk [vmem:[#allocation3] sm:$0xff] %vm4071_vm3, %v11246_v0 }
  0xa1   : > { %v9873_v24 = vpack.c.bf16 %v621_v19, %v620_v18  ;;  %v623_v26 = vld [vmem:[#allocation2 + $0x16f] sm:$0xff]  ;;  %v7520_v37 = vld [vmem:[%s11225_s1 + $0x8] sm:$0x3]  ;;  %4073 = vst.msk [vmem:[#allocation3 + $0x8] sm:$0xff] %vm4071_vm3, %v11246_v0  ;;  %4076 = vst.msk [vmem:[#allocation3 + $0x18] sm:$0xff] %vm4071_vm3, %v11246_v0 }
  0xa2   : > { %8225 = vmatmul.mubr.msk.bf16.gmra.mrb[4].mxu0 %vm493_vm0, %v9846_v1  ;;  %v9881_v29 = vpack.c.bf16 %v623_v26, %v622_v25  ;;  %v1126_v31 = vld [vmem:[#allocation2 + $0x29] sm:$0xff]  ;;  %v1127_v32 = vld [vmem:[#allocation2 + $0x31] sm:$0xff]  ;;  %v1811_v26 = vsel %vm747_vm2, %v7520_v37, 0  ;;  %4079 = vst.msk [vmem:[#allocation3 + $0x30] sm:$0xff] %vm4071_vm3, %v11246_v0  ;;  %4080 = vst.msk [vmem:[#allocation3 + $0x38] sm:$0xff] %vm4071_vm3, %v11246_v0 }
  0xa3   : > { %8228 = vmatprep.mubr.msk.bf16.mxu0 %vm493_vm0, %v9848_v2  ;;  %v1128_v33 = vld [vmem:[#allocation2 + $0x49] sm:$0xff]  ;;  %v1129_v34 = vld [vmem:[#allocation2 + $0x51] sm:$0xff]  ;;  %v9886_v35 = vpack.c.bf16 %v1127_v32, %v1126_v31  ;;  %4082 = vst.msk [vmem:[#allocation3 + $0x48] sm:$0xff] %vm4071_vm3, %v11246_v0  ;;  %4083 = vst.msk [vmem:[#allocation3 + $0x50] sm:$0xff] %vm4071_vm3, %v11246_v0 }
  0xa4   : > { %v9888_v36 = vpack.c.bf16 %v1129_v34, %v1128_v33  ;;  %v1130_v39 = vld [vmem:[#allocation2 + $0x69] sm:$0xff]  ;;  %v1131_v40 = vld [vmem:[#allocation2 + $0x71] sm:$0xff]  ;;  %4085 = vst.msk [vmem:[#allocation3 + $0x60] sm:$0xff] %vm4071_vm3, %v11246_v0  ;;  %4086 = vst.msk [vmem:[#allocation3 + $0x68] sm:$0xff] %vm4071_vm3, %v11246_v0 }
  0xa5   : > { %v1132_v41 = vld [vmem:[#allocation2 + $0x89] sm:$0xff]  ;;  %v1133_v42 = vld [vmem:[#allocation2 + $0x91] sm:$0xff]  ;;  %v9899_v43 = vpack.c.bf16 %v1131_v40, %v1130_v39  ;;  %4088 = vst.msk [vmem:[#allocation3 + $0x78] sm:$0xff] %vm4071_vm3, %v11246_v0  ;;  %4089 = vst.msk [vmem:[#allocation3 + $0x80] sm:$0xff] %vm4071_vm3, %v11246_v0 }
  0xa6   : > { %v9901_v44 = vpack.c.bf16 %v1133_v42, %v1132_v41  ;;  %v1134_v45 = vld [vmem:[#allocation2 + $0xa9] sm:$0xff]  ;;  %v1135_v46 = vld [vmem:[#allocation2 + $0xb1] sm:$0xff]  ;;  %4091 = vst.msk [vmem:[#allocation3 + $0x90] sm:$0xff] %vm4071_vm3, %v11246_v0  ;;  %4092 = vst.msk [vmem:[#allocation3 + $0x98] sm:$0xff] %vm4071_vm3, %v11246_v0 }
  0xa7   : > { %v1136_v47 = vld [vmem:[#allocation2 + $0xc9] sm:$0xff]  ;;  %v1137_v48 = vld [vmem:[#allocation2 + $0xd1] sm:$0xff]  ;;  %v9907_v49 = vpack.c.bf16 %v1135_v46, %v1134_v45  ;;  %4094 = vst.msk [vmem:[#allocation3 + $0xa8] sm:$0xff] %vm4071_vm3, %v11246_v0  ;;  %4095 = vst.msk [vmem:[#allocation3 + $0xb0] sm:$0xff] %vm4071_vm3, %v11246_v0 }
  0xa8   : > { %v9909_v50 = vpack.c.bf16 %v1137_v48, %v1136_v47  ;;  %v1138_v51 = vld [vmem:[#allocation2 + $0xe9] sm:$0xff]  ;;  %v1139_v52 = vld [vmem:[#allocation2 + $0xf1] sm:$0xff]  ;;  %4097 = vst.msk [vmem:[#allocation3 + $0xc0] sm:$0xff] %vm4071_vm3, %v11246_v0  ;;  %4098 = vst.msk [vmem:[#allocation3 + $0xc8] sm:$0xff] %vm4071_vm3, %v11246_v0 }
  0xa9   : > { %v1140_v53 = vld [vmem:[#allocation2 + $0x109] sm:$0xff]  ;;  %v1141_v55 = vld [vmem:[#allocation2 + $0x111] sm:$0xff]  ;;  %v9915_v56 = vpack.c.bf16 %v1139_v52, %v1138_v51  ;;  %4100 = vst.msk [vmem:[#allocation3 + $0xd8] sm:$0xff] %vm4071_vm3, %v11246_v0  ;;  %4101 = vst.msk [vmem:[#allocation3 + $0xe0] sm:$0xff] %vm4071_vm3, %v11246_v0 }
  0xaa   : > { %8229 = vmatmul.mubr.msk.bf16.gmra.mrb[8].mxu0 %vm493_vm0, %v9854_v8  ;;  %v9917_v57 = vpack.c.bf16 %v1141_v55, %v1140_v53  ;;  %v1142_v59 = vld [vmem:[#allocation2 + $0x129] sm:$0xff]  ;;  %v1143_v60 = vld [vmem:[#allocation2 + $0x131] sm:$0xff] }
  0xab   : > { %8232 = vmatprep.mubr.msk.bf16.mxu0 %vm493_vm0, %v9856_v9  ;;  %v1144_v61 = vld [vmem:[#allocation2 + $0x149] sm:$0xff]  ;;  %v1145_v62 = vld [vmem:[#allocation2 + $0x151] sm:$0xff]  ;;  %v9923_v63 = vpack.c.bf16 %v1143_v60, %v1142_v59 }
  0xac   : > { %v9925_v3 = vpack.c.bf16 %v1145_v62, %v1144_v61  ;;  %v1146_v5 = vld [vmem:[#allocation2 + $0x169] sm:$0xff]  ;;  %v1147_v6 = vld [vmem:[#allocation2 + $0x171] sm:$0xff]  ;;  %v2105_v62 = vsel %vm747_vm2, %v7537_v27, 0 }
  0xad   : > { %v1148_v7 = vld [vmem:[#allocation2 + $0x189] sm:$0xff]  ;;  %v1149_v10 = vld [vmem:[#allocation2 + $0x191] sm:$0xff]  ;;  %v9931_v11 = vpack.c.bf16 %v1147_v6, %v1146_v5 }
  0xae   : > { %v9933_v12 = vpack.c.bf16 %v1149_v10, %v1148_v7  ;;  %v1150_v13 = vld [vmem:[#allocation2 + $0x1a9] sm:$0xff]  ;;  %v1151_v16 = vld [vmem:[#allocation2 + $0x1b1] sm:$0xff] }
  0xaf   : > { %v1152_v17 = vld [vmem:[#allocation2 + $0x1c9] sm:$0xff]  ;;  %v1153_v18 = vld [vmem:[#allocation2 + $0x1d1] sm:$0xff]  ;;  %v9939_v19 = vpack.c.bf16 %v1151_v16, %v1150_v13 }
  0xb0   : > { %v9941_v20 = vpack.c.bf16 %v1153_v18, %v1152_v17  ;;  %v1154_v22 = vld [vmem:[#allocation2 + $0x1e9] sm:$0xff]  ;;  %v1155_v23 = vld [vmem:[#allocation2 + $0x1f1] sm:$0xff] }
  0xb1   : > { %v9947_v25 = vpack.c.bf16 %v1155_v23, %v1154_v22  ;;  %v1441_v28 = vld [vmem:[#allocation2 + $0x18f] sm:$0xff]  ;;  %v1444_v34 = vld [vmem:[#allocation2 + $0x1c7] sm:$0xff] }
  0xb2   : > { %8233 = vmatmul.mubr.msk.bf16.gmra.mrb[12].mxu0 %vm493_vm0, %v9862_v14  ;;  %v1443_v31 = vld [vmem:[#allocation2 + $0x1af] sm:$0xff]  ;;  %v1448_v42 = vld [vmem:[#allocation2 + $0x207] sm:$0xff] }
  0xb3   : > { %8236 = vmatprep.mubr.msk.bf16.mxu0 %vm493_vm0, %v9864_v15  ;;  %v1447_v39 = vld [vmem:[#allocation2 + $0x1ef] sm:$0xff]  ;;  %v7554_v5 = vld [vmem:[%s11225_s1 + $0xc] sm:$0x3] }
  0xb4   : > { %v1449_v45 = vld [vmem:[#allocation2 + $0x20f] sm:$0xff] }
  0xb5   : > { %v1712_v46 = vld [vmem:[#allocation2 + $0x28] sm:$0xff]  ;;  %v1713_v47 = vld [vmem:[#allocation2 + $0x30] sm:$0xff]  ;;  %v9994_v48 = vpack.c.bf16 %v1449_v45, %v1448_v42 }
  0xb6   : > { %v9996_v51 = vpack.c.bf16 %v1713_v47, %v1712_v46  ;;  %v1714_v52 = vld [vmem:[#allocation2 + $0x48] sm:$0xff]  ;;  %v1715_v53 = vld [vmem:[#allocation2 + $0x50] sm:$0xff] }
  0xb7   : > { %v1716_v55 = vld [vmem:[#allocation2 + $0x68] sm:$0xff]  ;;  %v1717_v59 = vld [vmem:[#allocation2 + $0x70] sm:$0xff]  ;;  %v10002_v60 = vpack.c.bf16 %v1715_v53, %v1714_v52 }
  0xb8   : > { %v10004_v61 = vpack.c.bf16 %v1717_v59, %v1716_v55  ;;  %v1718_v6 = vld [vmem:[#allocation2 + $0x88] sm:$0xff]  ;;  %v1719_v7 = vld [vmem:[#allocation2 + $0x90] sm:$0xff] }
  0xb9   : > { %v1720_v10 = vld [vmem:[#allocation2 + $0xa8] sm:$0xff]  ;;  %v1721_v13 = vld [vmem:[#allocation2 + $0xb0] sm:$0xff]  ;;  %v10015_v16 = vpack.c.bf16 %v1719_v7, %v1718_v6 }
  0xba   : > { %8237 = vmatmul.mubr.msk.bf16.gmra.mrb[16].mxu0 %vm493_vm0, %v9871_v21  ;;  %v10017_v17 = vpack.c.bf16 %v1721_v13, %v1720_v10  ;;  %v1722_v18 = vld [vmem:[#allocation2 + $0xc8] sm:$0xff]  ;;  %v1723_v22 = vld [vmem:[#allocation2 + $0xd0] sm:$0xff] }
  0xbb   : > { %8240 = vmatprep.mubr.msk.bf16.mxu0 %vm493_vm0, %v9873_v24  ;;  %v1724_v23 = vld [vmem:[#allocation2 + $0xe8] sm:$0xff]  ;;  %v1731_v42 = vld [vmem:[#allocation2 + $0x150] sm:$0xff] }
  0xbc   : > { %v1732_v45 = vld [vmem:[#allocation2 + $0x168] sm:$0xff]  ;;  %v1733_v46 = vld [vmem:[#allocation2 + $0x170] sm:$0xff] }
  0xbd   : > { %v10041_v52 = vpack.c.bf16 %v1733_v46, %v1732_v45  ;;  %v1734_v53 = vld [vmem:[#allocation2 + $0x188] sm:$0xff]  ;;  %v1735_v55 = vld [vmem:[#allocation2 + $0x190] sm:$0xff] }
  0xbe   : > { %v1736_v59 = vld [vmem:[#allocation2 + $0x1a8] sm:$0xff]  ;;  %v10047_v6 = vpack.c.bf16 %v1735_v55, %v1734_v53  ;;  %v1739_v13 = vld [vmem:[#allocation2 + $0x1d0] sm:$0xff]  ;;  %v9233_v53 = vld [vmem:[%s11225_s1] sm:$0x3] }
  0xbf   : > { %v1738_v10 = vld [vmem:[#allocation2 + $0x1c8] sm:$0xff] }
  0xc2   : > { %8241 = vmatmul.mubr.msk.bf16.gmra.mrb[20].mxu0 %vm493_vm0, %v9881_v29 }
  0xc3   : > { %8254 = vmatprep.mubr.msk.bf16.mxu0 %vm493_vm0, %v1156_v30  ;;  %v1442_v30 = vld [vmem:[#allocation2 + $0x1a7] sm:$0xff] }
  0xc4   : > { %v9980_v33 = vpack.c.bf16 %v1443_v31, %v1442_v30  ;;  %v1727_v30 = vld [vmem:[#allocation2 + $0x110] sm:$0xff]  ;;  %v1728_v31 = vld [vmem:[#allocation2 + $0x128] sm:$0xff] }
  0xca   : > { %8255 = vmatmul.mubr.msk.bf16.vlgmr.msra.gmra.mrb[0].mxu0 %vm493_vm0, %v9886_v35 }
  0xcb   : > { %8287 = vmatpush3.bf16.msra.mxu0 %v1517_v38  ;;  %8258 = vmatprep.mubr.msk.bf16.mxu0 %vm493_vm0, %v9888_v36  ;;  %v1446_v38 = vld [vmem:[#allocation2 + $0x1e7] sm:$0xff] }
  0xcc   : > { %8979 = vmatprep.subr.msk.bf16.mxu0 %vm747_vm2, %v7520_v37  ;;  %v1445_v37 = vld [vmem:[#allocation2 + $0x1cf] sm:$0xff]  ;;  %v9988_v41 = vpack.c.bf16 %v1447_v39, %v1446_v38 }
  0xcd   : > { %v9986_v40 = vpack.c.bf16 %v1445_v37, %v1444_v34  ;;  %v1729_v34 = vld [vmem:[#allocation2 + $0x130] sm:$0xff]  ;;  %v1730_v39 = vld [vmem:[#allocation2 + $0x148] sm:$0xff] }
  0xce   : > { %v10033_v38 = vpack.c.bf16 %v1729_v34, %v1728_v31  ;;  %v10039_v47 = vpack.c.bf16 %v1731_v42, %v1730_v39  ;;  %v2400_v34 = vsel %vm747_vm2, %v7554_v5, 0  ;;  %v7571_v39 = vld [vmem:[%s11225_s1 + $0xe] sm:$0x3]  ;;  %v650_v42 = vld [vmem:[#allocation2 + $0x10] sm:$0xff] }
  0xd2   : > { %8259 = vmatmul.mubr.msk.bf16.gmra.mrb[4].mxu0 %vm493_vm0, %v9899_v43 }
  0xd3   : > { %8262 = vmatprep.mubr.msk.bf16.mxu0 %vm493_vm0, %v9901_v44 }
  0xda   : > { %8263 = vmatmul.mubr.msk.bf16.gmra.mrb[8].mxu0 %vm493_vm0, %v9907_v49 }
  0xdb   : > { %8266 = vmatprep.mubr.msk.bf16.mxu0 %vm493_vm0, %v9909_v50 }
  0xe2   : > { %8267 = vmatmul.mubr.msk.bf16.gmra.mrb[12].mxu0 %vm493_vm0, %v9915_v56 }
  0xe3   : > { %8270 = vmatprep.mubr.msk.bf16.mxu0 %vm493_vm0, %v9917_v57 }
  0xea   : > { %8271 = vmatmul.mubr.msk.bf16.gmra.mrb[16].mxu0 %vm493_vm0, %v9923_v63 }
  0xeb   : > { %8274 = vmatprep.mubr.msk.bf16.mxu0 %vm493_vm0, %v9925_v3 }
  0xf2   : > { %8275 = vmatmul.mubr.msk.bf16.gmra.mrb[20].mxu0 %vm493_vm0, %v9931_v11 }
  0xf3   : > { %8278 = vmatprep.mubr.msk.bf16.mxu0 %vm493_vm0, %v9933_v12 }
  0xfa   : > { %8279 = vmatmul.mubr.msk.bf16.gmra.mrb[24].mxu0 %vm493_vm0, %v9939_v19 }
  0xfb   : > { %8282 = vmatprep.mubr.msk.bf16.mxu0 %vm493_vm0, %v9941_v20 }
 0x102   : > { %8283 = vmatmul.mubr.msk.bf16.gmra.mrb[28].mxu0 %vm493_vm0, %v9947_v25 }
 0x103   : > { %8288 = vmatprep.mubr.msk.bf16.mxu0 %vm493_vm0, %v9828_v54  ;;  %v1440_v54 = vld [vmem:[#allocation2 + $0x187] sm:$0xff] }
 0x104   : > { %v9978_v32 = vpack.c.bf16 %v1441_v28, %v1440_v54  ;;  %v1726_v28 = vld [vmem:[#allocation2 + $0x108] sm:$0xff] }
 0x105   : > { %v10031_v37 = vpack.c.bf16 %v1727_v30, %v1726_v28  ;;  %v1742_v28 = vld [vmem:[#allocation2 + $0x208] sm:$0xff]  ;;  %v1743_v30 = vld [vmem:[#allocation2 + $0x210] sm:$0xff] }
 0x106   : > { %v10063_v31 = vpack.c.bf16 %v1743_v30, %v1742_v28 }
 0x10a   : > { %8289 = vmatmul.mubr.msk.bf16.vlgmr.msra.gmra.mrb[0].mxu0 %vm493_vm0, %v9836_v58 }
 0x10b   : > { %8321 = vmatpush3.bf16.msra.mxu0 %v1811_v26  ;;  %8292 = vmatprep.mubr.msk.bf16.mxu0 %vm493_vm0, %v9846_v1  ;;  %v1725_v26 = vld [vmem:[#allocation2 + $0xf0] sm:$0xff] }
 0x10c   : > { %8980 = vmatprep.subr.msk.bf16.mxu0 %vm747_vm2, %v7537_v27  ;;  %v10023_v27 = vpack.c.bf16 %v1723_v22, %v1722_v18  ;;  %v10025_v54 = vpack.c.bf16 %v1725_v26, %v1724_v23  ;;  %v1740_v18 = vld [vmem:[#allocation2 + $0x1e8] sm:$0xff]  ;;  %v1741_v22 = vld [vmem:[#allocation2 + $0x1f0] sm:$0xff]  ;;  %v10055_v23 = vpack.c.bf16 %v1739_v13, %v1738_v10  ;;  %v9397_v13 = vmov 1983009808  }
 0x10d   : > { %v10057_v26 = vpack.c.bf16 %v1741_v22, %v1740_v18  ;;  %v3288_v18 = vunpack.c.l.s4 %v9397_v13  ;;  %v3290_v22 = vlaneseq }
 0x112   : > { %8293 = vmatmul.mubr.msk.bf16.gmra.mrb[4].mxu0 %vm493_vm0, %v9848_v2 }
 0x113   : > { %8296 = vmatprep.mubr.msk.bf16.mxu0 %vm493_vm0, %v9854_v8 }
 0x11a   : > { %8297 = vmatmul.mubr.msk.bf16.gmra.mrb[8].mxu0 %vm493_vm0, %v9856_v9 }
 0x11b   : > { %8300 = vmatprep.mubr.msk.bf16.mxu0 %vm493_vm0, %v9862_v14 }
 0x122   : > { %8301 = vmatmul.mubr.msk.bf16.gmra.mrb[12].mxu0 %vm493_vm0, %v9864_v15 }
 0x123   : > { %8304 = vmatprep.mubr.msk.bf16.mxu0 %vm493_vm0, %v9871_v21 }
 0x12a   : > { %8305 = vmatmul.mubr.msk.bf16.gmra.mrb[16].mxu0 %vm493_vm0, %v9873_v24 }
 0x12b   : > { %8308 = vmatprep.mubr.msk.bf16.mxu0 %vm493_vm0, %v9881_v29 }
 0x132   : > { %8309 = vmatmul.mubr.msk.bf16.gmra.mrb[20].mxu0 %vm493_vm0, %v9978_v32 }
 0x133   : > { %8312 = vmatprep.mubr.msk.bf16.mxu0 %vm493_vm0, %v9980_v33 }
 0x13a   : > { %8313 = vmatmul.mubr.msk.bf16.gmra.mrb[24].mxu0 %vm493_vm0, %v9986_v40 }
 0x13b   : > { %8316 = vmatprep.mubr.msk.bf16.mxu0 %vm493_vm0, %v9988_v41 }
 0x142   : > { %8317 = vmatmul.mubr.msk.bf16.gmra.mrb[28].mxu0 %vm493_vm0, %v9994_v48 }
 0x143   : > { %8322 = vmatprep.mubr.msk.bf16.mxu0 %vm493_vm0, %v9996_v51 }
 0x14a   : > { %8323 = vmatmul.mubr.msk.bf16.vlgmr.msra.gmra.mrb[0].mxu0 %vm493_vm0, %v10002_v60 }
 0x14b   : > { %8355 = vmatpush3.bf16.msra.mxu0 %v2105_v62  ;;  %8326 = vmatprep.mubr.msk.bf16.mxu0 %vm493_vm0, %v10004_v61  ;;  %v1737_v62 = vld [vmem:[#allocation2 + $0x1b0] sm:$0xff] }
 0x14c   : > { %8981 = vmatprep.subr.msk.bf16.mxu0 %vm747_vm2, %v7554_v5  ;;  %v10049_v7 = vpack.c.bf16 %v1737_v62, %v1736_v59  ;;  %v649_v5 = vld [vmem:[#allocation2 + $0x8] sm:$0xff]  ;;  %v2694_v59 = vsel %vm747_vm2, %v7571_v39, 0  ;;  %v7588_v62 = vld [vmem:[%s11225_s1 + $0x10] sm:$0x3] }
 0x14d   : > { %v681_v46 = vpack.c.bf16 %v650_v42, %v649_v5 }
 0x14f   : > { %8186 = vmatprep.mubr.msk.bf16.mxu1 %vm493_vm0, %v681_v46 }
 0x152   : > { %8327 = vmatmul.mubr.msk.bf16.gmra.mrb[4].mxu0 %vm493_vm0, %v10015_v16 }
 0x153   : > { %8330 = vmatprep.mubr.msk.bf16.mxu0 %vm493_vm0, %v10017_v17 }
 0x15a   : > { %8331 = vmatmul.mubr.msk.bf16.gmra.mrb[8].mxu0 %vm493_vm0, %v10023_v27 }
 0x15b   : > { %8334 = vmatprep.mubr.msk.bf16.mxu0 %vm493_vm0, %v10025_v54 }
 0x162   : > { %8335 = vmatmul.mubr.msk.bf16.gmra.mrb[12].mxu0 %vm493_vm0, %v10031_v37 }
 0x163   : > { %8338 = vmatprep.mubr.msk.bf16.mxu0 %vm493_vm0, %v10033_v38 }
 0x16a   : > { %8339 = vmatmul.mubr.msk.bf16.gmra.mrb[16].mxu0 %vm493_vm0, %v10039_v47 }
 0x16b   : > { %8342 = vmatprep.mubr.msk.bf16.mxu0 %vm493_vm0, %v10041_v52 }
 0x172   : > { %8343 = vmatmul.mubr.msk.bf16.gmra.mrb[20].mxu0 %vm493_vm0, %v10047_v6 }
 0x173   : > { %8346 = vmatprep.mubr.msk.bf16.mxu0 %vm493_vm0, %v10049_v7 }
 0x17a   : > { %8347 = vmatmul.mubr.msk.bf16.gmra.mrb[24].mxu0 %vm493_vm0, %v10055_v23 }
 0x17b   : > { %8350 = vmatprep.mubr.msk.bf16.mxu0 %vm493_vm0, %v10057_v26 }
 0x182   : > { %8351 = vmatmul.mubr.msk.bf16.gmra.mrb[28].mxu0 %vm493_vm0, %v10063_v31 }
 0x183   : > { %8356 = vmatprep.mubr.msk.bf16.mxu0 %vm493_vm0, %v9886_v35  ;;  %v7453_v35 = vld [vmem:[%s11225_s1 + $0x2] sm:$0x3] }
 0x184   : > { %8974 = vmatprep.subr.msk.bf16.mxu1 %vm747_vm2, %v7453_v35  ;;  %v749_v45 = vsel %vm747_vm2, %v7453_v35, 0 }
 0x185   : > { %8185 = vmatpush3.bf16.msra.mxu1 %v749_v45 }
 0x186   : > { %8976 = vmatprep.subr.msk.bf16.mxu1 %vm747_vm2, %v9233_v53 }
 0x188   : > { %8187 = vmatmul.mubr.msk.bf16.vlgmr.msra.gmra.mrb[0].mxu1 %vm493_vm0, %v9996_v51  ;;  %v2037_v51 = vld [vmem:[#allocation2 + $0x211] sm:$0xff] }
 0x189   : > { %8190 = vmatprep.mubr.msk.bf16.mxu1 %vm493_vm0, %v10002_v60  ;;  %8653 = vmatpush3.bf16.msra.mxu1 %v9782_v4  ;;  %v2036_v4 = vld [vmem:[#allocation2 + $0x209] sm:$0xff] }
 0x18a   : > { %8357 = vmatmul.mubr.msk.bf16.vlgmr.msra.gmra.mrb[0].mxu0 %vm493_vm0, %v9888_v36  ;;  %v10125_v55 = vpack.c.bf16 %v2037_v51, %v2036_v4 }
 0x18b   : > { %8389 = vmatpush3.bf16.msra.mxu0 %v2400_v34  ;;  %8360 = vmatprep.mubr.msk.bf16.mxu0 %vm493_vm0, %v9899_v43  ;;  %v3289_v34 = vunpack.c.0.s8 %v3288_v18 }
 0x18c   : > { %8982 = vmatprep.subr.msk.bf16.mxu0 %vm747_vm2, %v7571_v39  ;;  %v10362_v39 = vshrl.u32 %v3290_v22, 7 }
 0x18e   : > { %11272 = vst [vmem:[#allocation27_spill] sm:$0xff] %v10362_v39 }
 0x190   : > { %8191 = vmatmul.mubr.msk.bf16.gmra.mrb[4].mxu1 %vm493_vm0, %v10004_v61 }
 0x191   : > { %8194 = vmatprep.mubr.msk.bf16.mxu1 %vm493_vm0, %v10015_v16 }
 0x192   : > { %8361 = vmatmul.mubr.msk.bf16.gmra.mrb[4].mxu0 %vm493_vm0, %v9901_v44 }
 0x193   : > { %8364 = vmatprep.mubr.msk.bf16.mxu0 %vm493_vm0, %v9907_v49 }
 0x198   : > { %8195 = vmatmul.mubr.msk.bf16.gmra.mrb[8].mxu1 %vm493_vm0, %v10017_v17 }
 0x199   : > { %8198 = vmatprep.mubr.msk.bf16.mxu1 %vm493_vm0, %v10023_v27 }
 0x19a   : > { %8365 = vmatmul.mubr.msk.bf16.gmra.mrb[8].mxu0 %vm493_vm0, %v9909_v50 }
 0x19b   : > { %8368 = vmatprep.mubr.msk.bf16.mxu0 %vm493_vm0, %v9915_v56 }
 0x1a0   : > { %8199 = vmatmul.mubr.msk.bf16.gmra.mrb[12].mxu1 %vm493_vm0, %v10025_v54 }
 0x1a1   : > { %8202 = vmatprep.mubr.msk.bf16.mxu1 %vm493_vm0, %v10031_v37 }
 0x1a2   : > { %8369 = vmatmul.mubr.msk.bf16.gmra.mrb[12].mxu0 %vm493_vm0, %v9917_v57 }
 0x1a3   : > { %8372 = vmatprep.mubr.msk.bf16.mxu0 %vm493_vm0, %v9923_v63 }
 0x1a8   : > { %8203 = vmatmul.mubr.msk.bf16.gmra.mrb[16].mxu1 %vm493_vm0, %v10033_v38 }
 0x1a9   : > { %8206 = vmatprep.mubr.msk.bf16.mxu1 %vm493_vm0, %v10039_v47 }
 0x1aa   : > { %8373 = vmatmul.mubr.msk.bf16.gmra.mrb[16].mxu0 %vm493_vm0, %v9925_v3 }
 0x1ab   : > { %8376 = vmatprep.mubr.msk.bf16.mxu0 %vm493_vm0, %v9931_v11 }
 0x1b0   : > { %8207 = vmatmul.mubr.msk.bf16.gmra.mrb[20].mxu1 %vm493_vm0, %v10041_v52 }
 0x1b1   : > { %8210 = vmatprep.mubr.msk.bf16.mxu1 %vm493_vm0, %v10047_v6 }
 0x1b2   : > { %8377 = vmatmul.mubr.msk.bf16.gmra.mrb[20].mxu0 %vm493_vm0, %v9933_v12 }
 0x1b3   : > { %8380 = vmatprep.mubr.msk.bf16.mxu0 %vm493_vm0, %v9939_v19 }
 0x1b8   : > { %8211 = vmatmul.mubr.msk.bf16.gmra.mrb[24].mxu1 %vm493_vm0, %v10049_v7 }
 0x1b9   : > { %8214 = vmatprep.mubr.msk.bf16.mxu1 %vm493_vm0, %v10055_v23 }
 0x1ba   : > { %8381 = vmatmul.mubr.msk.bf16.gmra.mrb[24].mxu0 %vm493_vm0, %v9941_v20 }
 0x1bb   : > { %8384 = vmatprep.mubr.msk.bf16.mxu0 %vm493_vm0, %v9947_v25 }
 0x1c0   : > { %8215 = vmatmul.mubr.msk.bf16.gmra.mrb[28].mxu1 %vm493_vm0, %v10057_v26 }
 0x1c1   : > { %8244 = vmatprep.mubr.msk.bf16.mxu1 %vm493_vm0, %v9978_v32 }
 0x1c2   : > { %8385 = vmatmul.mubr.msk.bf16.gmra.mrb[28].mxu0 %vm493_vm0, %v10125_v55 }
 0x1c3   : > { %8390 = vmatprep.mubr.msk.bf16.mxu0 %vm493_vm0, %v9836_v58  ;;  %v2331_v58 = vld [vmem:[#allocation2 + $0x227] sm:$0xff] }
 0x1c8   : > { %8245 = vmatmul.mubr.msk.bf16.vlgmr.msra.gmra.mrb[24].mxu1 %vm493_vm0, %v9980_v33 }
 0x1c9   : > { %8248 = vmatprep.mubr.msk.bf16.mxu1 %vm493_vm0, %v9986_v40 }
 0x1ca   : > { %8391 = vmatmul.mubr.msk.bf16.vlgmr.msra.gmra.mrb[0].mxu0 %vm493_vm0, %v9846_v1  ;;  %v2332_v1 = vld [vmem:[#allocation2 + $0x22f] sm:$0xff] }
 0x1cb   : > { %8423 = vmatpush3.bf16.msra.mxu0 %v2694_v59  ;;  %8394 = vmatprep.mubr.msk.bf16.mxu0 %vm493_vm0, %v9848_v2  ;;  %v2348_v2 = vpack.c.bf16 %v2332_v1, %v2331_v58  ;;  %v10370_v59 = vsub.s32 %v3289_v34, %v10362_v39 }
 0x1cc   : > { %8983 = vmatprep.subr.msk.bf16.mxu0 %vm747_vm2, %v7588_v62 }
 0x1d0   : > { %8249 = vmatmul.mubr.msk.bf16.gmra.mrb[28].mxu1 %vm493_vm0, %v9988_v41 }
 0x1d2   : > { %8395 = vmatmul.mubr.msk.bf16.gmra.mrb[4].mxu0 %vm493_vm0, %v9854_v8  ;;  %v2988_v8 = vsel %vm747_vm2, %v7588_v62, 0  ;;  %vm6186_vm2 = vcmask 517120  }
 0x1d3   : > { %8398 = vmatprep.mubr.msk.bf16.mxu0 %vm493_vm0, %v9856_v9  ;;  %v2625_v9 = vld [vmem:[#allocation2 + $0x228] sm:$0xff] }
 0x1da   : > { %8399 = vmatmul.mubr.msk.bf16.gmra.mrb[8].mxu0 %vm493_vm0, %v9862_v14  ;;  %v2626_v14 = vld [vmem:[#allocation2 + $0x230] sm:$0xff] }
 0x1db   : > { %8402 = vmatprep.mubr.msk.bf16.mxu0 %vm493_vm0, %v9864_v15  ;;  %v2642_v15 = vpack.c.bf16 %v2626_v14, %v2625_v9 }
 0x1e2   : > { %8403 = vmatmul.mubr.msk.bf16.gmra.mrb[12].mxu0 %vm493_vm0, %v9871_v21 }
 0x1e3   : > { %8406 = vmatprep.mubr.msk.bf16.mxu0 %vm493_vm0, %v9873_v24  ;;  %v2919_v24 = vld [vmem:[#allocation2 + $0x229] sm:$0xff] }
 0x1ea   : > { %8407 = vmatmul.mubr.msk.bf16.gmra.mrb[16].mxu0 %vm493_vm0, %v9881_v29  ;;  %v2920_v29 = vld [vmem:[#allocation2 + $0x231] sm:$0xff] }
 0x1eb   : > { %8410 = vmatprep.mubr.msk.bf16.mxu0 %vm493_vm0, %v9978_v32 }
 0x1f2   : > { %8411 = vmatmul.mubr.msk.bf16.gmra.mrb[20].mxu0 %vm493_vm0, %v9980_v33 }
 0x1f3   : > { %8414 = vmatprep.mubr.msk.bf16.mxu0 %vm493_vm0, %v9986_v40 }
 0x1fa   : > { %8415 = vmatmul.mubr.msk.bf16.gmra.mrb[24].mxu0 %vm493_vm0, %v9988_v41 }
 0x1fb   : > { %8418 = vmatprep.mubr.msk.bf16.mxu0 %vm493_vm0, %v9994_v48 }
 0x202   : > { %8419 = vmatmul.mubr.msk.bf16.gmra.mrb[28].mxu0 %vm493_vm0, %v2348_v2 }
 0x203   : > { %8424 = vmatprep.mubr.msk.bf16.mxu0 %vm493_vm0, %v10002_v60 }
 0x20a   : > { %8425 = vmatmul.mubr.msk.bf16.vlgmr.msra.gmra.mrb[0].mxu0 %vm493_vm0, %v10004_v61 }
 0x20b   : > { %8457 = vmatpush3.bf16.msra.mxu0 %v2988_v8  ;;  %8428 = vmatprep.mubr.msk.bf16.mxu0 %vm493_vm0, %v10015_v16 }
 0x212   : > { %8429 = vmatmul.mubr.msk.bf16.gmra.mrb[4].mxu0 %vm493_vm0, %v10017_v17 }
 0x213   : > { %8432 = vmatprep.mubr.msk.bf16.mxu0 %vm493_vm0, %v10023_v27 }
 0x21a   : > { %8433 = vmatmul.mubr.msk.bf16.gmra.mrb[8].mxu0 %vm493_vm0, %v10025_v54 }
 0x21b   : > { %8436 = vmatprep.mubr.msk.bf16.mxu0 %vm493_vm0, %v10031_v37 }
 0x222   : > { %8437 = vmatmul.mubr.msk.bf16.gmra.mrb[12].mxu0 %vm493_vm0, %v10033_v38 }
 0x223   : > { %8440 = vmatprep.mubr.msk.bf16.mxu0 %vm493_vm0, %v10039_v47 }
 0x22a   : > { %8441 = vmatmul.mubr.msk.bf16.gmra.mrb[16].mxu0 %vm493_vm0, %v10041_v52 }
 0x22b   : > { %8444 = vmatprep.mubr.msk.bf16.mxu0 %vm493_vm0, %v10047_v6 }
 0x232   : > { %8445 = vmatmul.mubr.msk.bf16.gmra.mrb[20].mxu0 %vm493_vm0, %v10049_v7 }
 0x233   : > { %8448 = vmatprep.mubr.msk.bf16.mxu0 %vm493_vm0, %v10055_v23 }
 0x23a   : > { %8449 = vmatmul.mubr.msk.bf16.gmra.mrb[24].mxu0 %vm493_vm0, %v10057_v26  ;;  %v10359_v26 = vld [vmem:[%s11226_s2] ss:$0 sm:$0xff] }
 0x23b   : > { %8452 = vmatprep.mubr.msk.bf16.mxu0 %vm493_vm0, %v10063_v31 }
 0x242   : > { %8453 = vmatmul.mubr.msk.bf16.gmra.mrb[28].mxu0 %vm493_vm0, %v2642_v15 }
 0x243   : > { %8458 = vmatprep.mubr.msk.bf16.mxu0 %vm493_vm0, %v9888_v36 }
 0x24a   : > { %8459 = vmatmul.mubr.msk.bf16.vlgmr.msra.gmra.mrb[0].mxu0 %vm493_vm0, %v9899_v43 }
 0x24b   : > { %8462 = vmatprep.mubr.msk.bf16.mxu0 %vm493_vm0, %v9901_v44 }
 0x252   : > { %8463 = vmatmul.mubr.msk.bf16.gmra.mrb[4].mxu0 %vm493_vm0, %v9907_v49  ;;  %v2936_v49 = vpack.c.bf16 %v2920_v29, %v2919_v24 }
 0x253   : > { %8466 = vmatprep.mubr.msk.bf16.mxu0 %vm493_vm0, %v9909_v50 }
 0x25a   : > { %8467 = vmatmul.mubr.msk.bf16.gmra.mrb[8].mxu0 %vm493_vm0, %v9915_v56 }
 0x25b   : > { %8470 = vmatprep.mubr.msk.bf16.mxu0 %vm493_vm0, %v9917_v57  ;;  %v10251_v21 = vpop.f32.mrb[0].mxu1 }
 0x25c   : > { %v785_v36 = vpop.f32.mrb[1].mxu1 }
 0x25d   : > { %v10255_v43 = vpop.f32.mrb[2].mxu1 }
 0x25e   : > { %v10257_v44 = vpop.f32.mrb[3].mxu1 }
 0x262   : > { %8471 = vmatmul.mubr.msk.bf16.gmra.mrb[12].mxu0 %vm493_vm0, %v9923_v63 }
 0x263   : > { %8474 = vmatprep.mubr.msk.bf16.mxu0 %vm493_vm0, %v9925_v3  ;;  %v10260_v50 = vpop.f32.mrb[4].mxu1 }
 0x264   : > { %v10262_v56 = vpop.f32.mrb[5].mxu1 }
 0x265   : > { %v10264_v57 = vpop.f32.mrb[6].mxu1 }
 0x266   : > { %v10266_v63 = vpop.f32.mrb[7].mxu1 }
 0x26a   : > { %8475 = vmatmul.mubr.msk.bf16.gmra.mrb[16].mxu0 %vm493_vm0, %v9931_v11 }
 0x26b   : > { %8478 = vmatprep.mubr.msk.bf16.mxu0 %vm493_vm0, %v9933_v12  ;;  %v10268_v3 = vpop.f32.mrb[8].mxu1 }
 0x26c   : > { %v10270_v11 = vpop.f32.mrb[9].mxu1 }
 0x26d   : > { %v10272_v12 = vpop.f32.mrb[10].mxu1 }
 0x272   : > { %8479 = vmatmul.mubr.msk.bf16.gmra.mrb[20].mxu0 %vm493_vm0, %v9939_v19  ;;  %v10274_v19 = vpop.f32.mrb[11].mxu1 }
 0x273   : > { %8482 = vmatprep.mubr.msk.bf16.mxu0 %vm493_vm0, %v9941_v20  ;;  %v10276_v20 = vpop.f32.mrb[12].mxu1 }
 0x27a   : > { %8483 = vmatmul.mubr.msk.bf16.gmra.mrb[24].mxu0 %vm493_vm0, %v9947_v25  ;;  %v10278_v25 = vpop.f32.mrb[13].mxu1 }
 0x27b   : > { %8486 = vmatprep.mubr.msk.bf16.mxu0 %vm493_vm0, %v10125_v55  ;;  %v10280_v32 = vpop.f32.mrb[14].mxu1 }
 0x27c   : > { %v10282_v33 = vpop.f32.mrb[15].mxu1 }
 0x27d   : > { %v10324_v40 = vpop.f32.mrb[16].mxu1 }
 0x27e   : > { %v10326_v41 = vpop.f32.mrb[17].mxu1 }
 0x27f   : > { %v10328_v48 = vpop.f32.mrb[18].mxu1 }
 0x280   : > { %v10330_v60 = vpop.f32.mrb[19].mxu1 }
 0x282   : > { %8487 = vmatmul.mubr.msk.bf16.gmra.mrb[28].mxu0 %vm493_vm0, %v2936_v49  ;;  %vm5300_vm0 = vcmask 254976  }
 0x283   : > { %v10332_v61 = vpop.f32.mrb[20].mxu1 }
 0x284   : > { %v10334_v16 = vpop.f32.mrb[21].mxu1 }
 0x285   : > { %v10336_v17 = vpop.f32.mrb[22].mxu1 }
 0x286   : > { %v10338_v27 = vpop.f32.mrb[23].mxu1 }
 0x29b   : > { %v10340_v54 = vpop.f32.mrb[24].mxu1 }
 0x29c   : > { %v10342_v37 = vpop.f32.mrb[25].mxu1 }
 0x29d   : > { %v10344_v38 = vpop.f32.mrb[26].mxu1 }
 0x29e   : > { %v10346_v47 = vpop.f32.mrb[27].mxu1 }
 0x29f   : > { %11267 = vst [vmem:[#allocation22_spill] sm:$0xff] %v10346_v47 }
 0x2a3   : > { %v10348_v52 = vpop.f32.mrb[28].mxu1 }
 0x2a4   : > { %11268 = vst [vmem:[#allocation23_spill] sm:$0xff] %v10348_v52  ;;  %v10350_v6 = vpop.f32.mrb[29].mxu1 }
 0x2a5   : > { %11269 = vst [vmem:[#allocation24_spill] sm:$0xff] %v10350_v6  ;;  %v10352_v7 = vpop.f32.mrb[30].mxu1 }
 0x2a6   : > { %11270 = vst [vmem:[#allocation25_spill] sm:$0xff] %v10352_v7  ;;  %v10354_v10 = vpop.f32.mrb[31].mxu1 }
 0x2a7   : > { %11271 = vst [vmem:[#allocation26_spill] sm:$0xff] %v10354_v10 }
 0x31d   : > { %v8460_v23 = vpop.f32.mrb[0].mxu0 }
 0x31e   : > { %v8654_v28 = vadd.f32 %v8460_v23, %v10251_v21  ;;  %v3024_v30 = vpop.f32.mrb[1].mxu0 }
 0x31f   : > { %v8655_v31 = vadd.f32 %v3024_v30, %v785_v36  ;;  %v8461_v35 = vpop.f32.mrb[2].mxu0 }
 0x320   : > { %v3192_v5 = vadd.f32 %v8654_v28, %v10359_v26  ;;  %v8656_v42 = vadd.f32 %v8461_v35, %v10255_v43  ;;  %v3027_v45 = vpop.f32.mrb[3].mxu0 }
 0x321   : > { %v3190_v46 = vadd.f32 %v8655_v31, %v10359_v26  ;;  %v8657_v53 = vadd.f32 %v3027_v45, %v10257_v44 }
 0x322   : > { %v3224_v4 = vmax.f32 %v3192_v5, 0.0  ;;  %v3193_v51 = vadd.f32 %v8656_v42, %v10359_v26 }
 0x323   : > { %v3222_v55 = vmax.f32 %v3190_v46, 0.0  ;;  %v3191_v62 = vadd.f32 %v8657_v53, %v10359_v26 }
 0x324   : > { %v3225_v58 = vmax.f32 %v3193_v51, 0.0 }
 0x325   : > { %v3254_v1 = vmax.f32 %v3222_v55, %v3224_v4  ;;  %v3223_v2 = vmax.f32 %v3191_v62, 0.0  ;;  %v8464_v8 = vpop.f32.mrb[4].mxu0 }
 0x326   : > { %v8658_v9 = vadd.f32 %v8464_v8, %v10260_v50  ;;  %v3040_v14 = vpop.f32.mrb[5].mxu0 }
 0x327   : > { %v3286_v15 = vcombine.high %v3254_v1, %v3254_v1  ;;  %v3293_v21 = vrot.slane %v3254_v1, %v10370_v59  ;;  %v3255_v24 = vmax.f32 %v3223_v2, %v3225_v58  ;;  %v8659_v29 = vadd.f32 %v3040_v14, %v10262_v56  ;;  %v8465_v36 = vpop.f32.mrb[6].mxu0  ;;  %v9060_v58 = vld [vmem:[#allocation6 + $0x8] sm:$0xff]  }
 0x328   : > { %v10377_v43 = vadd.f32 %v8658_v9, %v10359_v26  ;;  %v10380_v44 = vadd.f32 %v8465_v36, %v10264_v57  ;;  %v10382_v49 = vpop.f32.mrb[7].mxu0  ;;  %8490 = vmatprep.subr.bf16.mxu1 %v9060_v58 }
 0x329   : > { %v3300_v13 = vrot.slane %v3286_v15, %v10370_v59  ;;  %v3301_v18 = vcombine.high %v3293_v21, %v3293_v21  ;;  %v3623_v50 = vsel %vm3622_vm4, %v3293_v21, -inf  ;;  %v3303_v22 = vcombine.high %v3255_v24, %v3255_v24  ;;  %8491 = vmatpush3.bf16.msra.mxu1 %v9060_v58 }
 0x32a   : > { %v3624_v23 = vrot.slane %v3623_v50, 4  ;;  %v3310_v28 = vrot.slane %v3255_v24, %v10370_v59  ;;  %v10389_v30 = vadd.f32 %v8659_v29, %v10359_v26 }
 0x32b   : > { %v3302_v31 = vcombine.high %v3300_v13, %v3300_v13  ;;  %v3630_v57 = vsel %vm3622_vm4, %v3301_v18, -inf  ;;  %v3637_v34 = vsel %vm3622_vm4, %v3300_v13, -inf  ;;  %v3317_v35 = vrot.slane %v3303_v22, %v10370_v59 }
 0x32c   : > { %v3625_v5 = vmax.f32 %v3623_v50, %v3624_v23  ;;  %v3631_v42 = vrot.slane %v3630_v57, 4  ;;  %v3638_v45 = vrot.slane %v3637_v34, 4  ;;  %v3318_v46 = vcombine.high %v3310_v28, %v3310_v28 }
 0x32d   : > { %v3644_v53 = vsel %vm3622_vm4, %v3302_v31, -inf  ;;  %v3319_v4 = vcombine.high %v3317_v35, %v3317_v35  ;;  %v3651_v51 = vsel %vm3622_vm4, %v3310_v28, -inf  ;;  %v3665_v55 = vsel %vm3622_vm4, %v3317_v35, -inf  ;;  %v10397_v62 = vpop.f32.mrb[8].mxu0 }
 0x32e   : > { %v3626_v1 = vrot.slane %v3625_v5, 2  ;;  %v3632_v2 = vmax.f32 %v3630_v57, %v3631_v42  ;;  %v3639_v8 = vmax.f32 %v3637_v34, %v3638_v45  ;;  %v3645_v9 = vrot.slane %v3644_v53, 4  ;;  %v10399_v14 = vpop.f32.mrb[9].mxu0 }
 0x32f   : > { %v3652_v15 = vrot.slane %v3651_v51, 4  ;;  %v3658_v21 = vsel %vm3622_vm4, %v3318_v46, -inf  ;;  %v3666_v24 = vrot.slane %v3665_v55, 4  ;;  %v3672_v29 = vsel %vm3622_vm4, %v3319_v4, -inf  ;;  %v10403_v36 = vpop.f32.mrb[10].mxu0 }
 0x330   : > { %v3627_v13 = vmax.f32 %v3625_v5, %v3626_v1  ;;  %v3633_v18 = vrot.slane %v3632_v2, 2  ;;  %v3640_v50 = vrot.slane %v3639_v8, 2  ;;  %v3646_v22 = vmax.f32 %v3644_v53, %v3645_v9  ;;  %v10405_v23 = vpop.f32.mrb[11].mxu0 }
 0x331   : > { %v3653_v28 = vmax.f32 %v3651_v51, %v3652_v15  ;;  %v3659_v31 = vrot.slane %v3658_v21, 4  ;;  %v3667_v57 = vmax.f32 %v3665_v55, %v3666_v24  ;;  %v3673_v34 = vrot.slane %v3672_v29, 4 }
 0x332   : > { %v3628_v35 = vrot.slane %v3627_v13, 1  ;;  %v3634_v42 = vmax.f32 %v3632_v2, %v3633_v18  ;;  %v3641_v45 = vmax.f32 %v3639_v8, %v3640_v50  ;;  %v3647_v46 = vrot.slane %v3646_v22, 2 }
 0x333   : > { %v3654_v4 = vrot.slane %v3653_v28, 2  ;;  %v3660_v0 = vmax.f32 %v3658_v21, %v3659_v31  ;;  %v3668_v56 = vrot.slane %v3667_v57, 2  ;;  %v3674_v5 = vmax.f32 %v3672_v29, %v3673_v34 }
 0x334   : > { %v3629_v1 = vmax.f32 %v3627_v13, %v3628_v35  ;;  %v3635_v53 = vrot.slane %v3634_v42, 1  ;;  %v3642_v9 = vrot.slane %v3641_v45, 1  ;;  %v3648_v39 = vmax.f32 %v3646_v22, %v3647_v46 }
 0x335   : > { %v3655_v58 = vmax.f32 %v3653_v28, %v3654_v4  ;;  %v3661_v51 = vrot.slane %v3660_v0, 2  ;;  %v3669_v15 = vmax.f32 %v3667_v57, %v3668_v56  ;;  %v3675_v55 = vrot.slane %v3674_v5, 2  ;;  %v10407_v24 = vpop.f32.mrb[12].mxu0 }
 0x336   : > { %v3636_v2 = vmax.f32 %v3634_v42, %v3635_v53  ;;  %v3643_v8 = vmax.f32 %v3641_v45, %v3642_v9  ;;  %v3649_v18 = vrot.slane %v3648_v39, 1  ;;  %v3226_v50 = vmax.f32 %v10389_v30, 0.0  ;;  %v10410_v21 = vpop.f32.mrb[13].mxu0 }
 0x337   : > { %v3656_v29 = vrot.slane %v3655_v58, 1  ;;  %v3662_v31 = vmax.f32 %v3660_v0, %v3661_v51  ;;  %v3670_v13 = vrot.slane %v3669_v15, 1  ;;  %v3676_v34 = vmax.f32 %v3674_v5, %v3675_v55  ;;  %v10412_v35 = vpop.f32.mrb[14].mxu0 }
 0x338   : > { %v3650_v22 = vmax.f32 %v3648_v39, %v3649_v18  ;;  %v4168_v28 = vsel %vm4167_vm5, %v3636_v2, %v3629_v1  ;;  %v11273_v56 = vmax.f32 %v10377_v43, 0.0  ;;  %v3197_v42 = vadd.f32 %v10380_v44, %v10359_v26  ;;  %v10419_v45 = vpop.f32.mrb[15].mxu0 }
 0x339   : > { %v4170_v30 = vsel %vm4169_vm6, %v3643_v8, %v4168_v28  ;;  %v3657_v46 = vmax.f32 %v3655_v58, %v3656_v29  ;;  %v3663_v4 = vrot.slane %v3662_v31, 1  ;;  %v3671_v0 = vmax.f32 %v3669_v15, %v3670_v13 }
 0x33a   : > { %v3256_v57 = vmax.f32 %v3226_v50, %v11273_v56  ;;  %v3677_v53 = vrot.slane %v3676_v34, 1  ;;  %v4172_v5 = vsel %vm4171_vm7, %v3650_v22, %v4170_v30  ;;  %v3229_v51 = vmax.f32 %v3197_v42, 0.0 }
 0x33b   : > { %v3664_v1 = vmax.f32 %v3662_v31, %v3663_v4  ;;  %v4174_v43 = vsel %vm4173_vm8, %v3657_v46, %v4172_v5  ;;  %v8661_v44 = vadd.f32 %v10382_v49, %v10266_v63  ;;  %v8662_v29 = vadd.f32 %v10397_v62, %v10268_v3 }
 0x33c   : > { %v3320_v9 = vcombine.high %v3256_v57, %v3256_v57  ;;  %v3327_v39 = vrot.slane %v3256_v57, %v10370_v59  ;;  %v3678_v55 = vmax.f32 %v3676_v34, %v3677_v53  ;;  %v8663_v4 = vadd.f32 %v10399_v14, %v10270_v11 }
 0x33d   : > { %v4176_v15 = vsel %vm4175_vm9, %v3664_v1, %v4174_v43  ;;  %v3195_v50 = vadd.f32 %v8661_v44, %v10359_v26  ;;  %v10433_v31 = vpop.f32.mrb[16].mxu0  ;;  %v3200_v46 = vadd.f32 %v8662_v29, %v10359_v26 }
 0x33e   : > { %v3334_v2 = vrot.slane %v3320_v9, %v10370_v59  ;;  %v3335_v8 = vcombine.high %v3327_v39, %v3327_v39  ;;  %v3679_v58 = vsel %vm3622_vm4, %v3327_v39, -inf  ;;  %v4178_v13 = vsel %vm4177_vm10, %v3671_v0, %v4176_v15  ;;  %v10438_v34 = vpop.f32.mrb[17].mxu0 }
 0x33f   : > { %v3680_v18 = vrot.slane %v3679_v58, 4  ;;  %v4180_v28 = vsel %vm4179_vm11, %v3678_v55, %v4178_v13  ;;  %v10441_v30 = vpop.f32.mrb[18].mxu0  ;;  %v3227_v62 = vmax.f32 %v3195_v50, 0.0  ;;  %v3232_v43 = vmax.f32 %v3200_v46, 0.0 }
 0x340   : > { %v3336_v22 = vcombine.high %v3334_v2, %v3334_v2  ;;  %v3686_v63 = vsel %vm3622_vm4, %v3335_v8, -inf  ;;  %v3693_v49 = vsel %vm3622_vm4, %v3334_v2, -inf  ;;  %4239 = vst.msk [vmem:[#allocation3 + $0x20] sm:$0xff] %vm4071_vm3, %v4180_v28  ;;  %v10448_v0 = vpop.f32.mrb[19].mxu0  ;;  %v3198_v44 = vadd.f32 %v8663_v4, %v10359_v26 }
 0x341   : > { %v3681_v56 = vmax.f32 %v3679_v58, %v3680_v18  ;;  %v3687_v57 = vrot.slane %v3686_v63, 4  ;;  %v3694_v42 = vrot.slane %v3693_v49, 4  ;;  %v3257_v1 = vmax.f32 %v3227_v62, %v3229_v51 }
 0x342   : > { %v3700_v3 = vsel %vm3622_vm4, %v3336_v22, -inf  ;;  %v8664_v55 = vadd.f32 %v10403_v36, %v10272_v12  ;;  %v3230_v14 = vmax.f32 %v3198_v44, 0.0 }
 0x343   : > { %v3682_v53 = vrot.slane %v3681_v56, 2  ;;  %v3688_v5 = vmax.f32 %v3686_v63, %v3687_v57  ;;  %v3695_v9 = vmax.f32 %v3693_v49, %v3694_v42  ;;  %v3701_v39 = vrot.slane %v3700_v3, 4 }
 0x344   : > { %v3337_v18 = vcombine.high %v3257_v1, %v3257_v1  ;;  %v3344_v11 = vrot.slane %v3257_v1, %v10370_v59  ;;  %v10455_v50 = vadd.f32 %v8664_v55, %v10359_v26  ;;  %v3258_v28 = vmax.f32 %v3230_v14, %v3232_v43 }
 0x345   : > { %v3683_v2 = vmax.f32 %v3681_v56, %v3682_v53  ;;  %v3689_v8 = vrot.slane %v3688_v5, 2  ;;  %v3696_v58 = vrot.slane %v3695_v9, 2  ;;  %v3702_v15 = vmax.f32 %v3700_v3, %v3701_v39  ;;  %v10457_v63 = vpop.f32.mrb[20].mxu0 }
 0x346   : > { %v3351_v49 = vrot.slane %v3337_v18, %v10370_v59  ;;  %v3352_v12 = vcombine.high %v3344_v11, %v3344_v11  ;;  %v3707_v36 = vsel %vm3622_vm4, %v3344_v11, -inf  ;;  %v10461_v56 = vpop.f32.mrb[21].mxu0  ;;  %v3354_v18 = vcombine.high %v3258_v28, %v3258_v28 }
 0x347   : > { %v3684_v29 = vrot.slane %v3683_v2, 1  ;;  %v3690_v13 = vmax.f32 %v3688_v5, %v3689_v8  ;;  %v3697_v51 = vmax.f32 %v3695_v9, %v3696_v58  ;;  %v3703_v22 = vrot.slane %v3702_v15, 2  ;;  %v10463_v46 = vpop.f32.mrb[22].mxu0 }
 0x348   : > { %v3353_v4 = vcombine.high %v3351_v49, %v3351_v49  ;;  %v3708_v53 = vrot.slane %v3707_v36, 4  ;;  %v3714_v5 = vsel %vm3622_vm4, %v3352_v12, -inf  ;;  %v3721_v9 = vsel %vm3622_vm4, %v3351_v49, -inf  ;;  %v10467_v39 = vpop.f32.mrb[23].mxu0 }
 0x349   : > { %v3685_v57 = vmax.f32 %v3683_v2, %v3684_v29  ;;  %v3691_v42 = vrot.slane %v3690_v13, 1  ;;  %v3698_v3 = vrot.slane %v3697_v51, 1  ;;  %v3704_v62 = vmax.f32 %v3702_v15, %v3703_v22 }
 0x34a   : > { %v3715_v43 = vrot.slane %v3714_v5, 4  ;;  %v3709_v8 = vmax.f32 %v3707_v36, %v3708_v53  ;;  %v3722_v58 = vrot.slane %v3721_v9, 4  ;;  %v3728_v2 = vsel %vm3622_vm4, %v3353_v4, -inf }
 0x34b   : > { %v3692_v1 = vmax.f32 %v3690_v13, %v3691_v42  ;;  %v3699_v44 = vmax.f32 %v3697_v51, %v3698_v3  ;;  %v3705_v55 = vrot.slane %v3704_v62, 1  ;;  %v3729_v29 = vrot.slane %v3728_v2, 4 }
 0x34c   : > { %v3716_v14 = vmax.f32 %v3714_v5, %v3715_v43  ;;  %v3710_v12 = vrot.slane %v3709_v8, 2  ;;  %v3723_v49 = vmax.f32 %v3721_v9, %v3722_v58  ;;  %v3361_v10 = vrot.slane %v3258_v28, %v10370_v59 }
 0x34d   : > { %v3706_v15 = vmax.f32 %v3704_v62, %v3705_v55  ;;  %v4181_v11 = vsel %vm4167_vm5, %v3692_v1, %v3685_v57  ;;  %v3730_v51 = vmax.f32 %v3728_v2, %v3729_v29  ;;  %v3368_v36 = vrot.slane %v3354_v18, %v10370_v59  ;;  %v10475_v3 = vpop.f32.mrb[24].mxu0 }
 0x34e   : > { %v4182_v22 = vsel %vm4169_vm6, %v3699_v44, %v4181_v11  ;;  %v3717_v13 = vrot.slane %v3716_v14, 2  ;;  %v3711_v4 = vmax.f32 %v3709_v8, %v3710_v12  ;;  %v3724_v62 = vrot.slane %v3723_v49, 2  ;;  %v10478_v5 = vpop.f32.mrb[25].mxu0 }
 0x34f   : > { %v4183_v42 = vsel %vm4171_vm7, %v3706_v15, %v4182_v22  ;;  %v3369_v53 = vcombine.high %v3361_v10, %v3361_v10  ;;  %v3735_v57 = vsel %vm3622_vm4, %v3361_v10, -inf  ;;  %v3731_v44 = vrot.slane %v3730_v51, 2  ;;  %v10480_v28 = vpop.f32.mrb[26].mxu0 }
 0x350   : > { %v3718_v1 = vmax.f32 %v3716_v14, %v3717_v13  ;;  %v3370_v9 = vcombine.high %v3368_v36, %v3368_v36  ;;  %v3736_v55 = vrot.slane %v3735_v57, 4  ;;  %11274 = vst [vmem:[#allocation28_spill] sm:$0xff] %v10480_v28  ;;  %v3712_v43 = vrot.slane %v3711_v4, 1  ;;  %v10484_v15 = vpop.f32.mrb[27].mxu0 }
 0x351   : > { %v3725_v58 = vmax.f32 %v3723_v49, %v3724_v62  ;;  %v3742_v2 = vsel %vm3622_vm4, %v3369_v53, -inf  ;;  %v3749_v18 = vsel %vm3622_vm4, %v3368_v36, -inf  ;;  %11275 = vst [vmem:[#allocation29_spill] sm:$0xff] %v10484_v15  ;;  %v3732_v11 = vmax.f32 %v3730_v51, %v3731_v44 }
 0x352   : > { %v3719_v8 = vrot.slane %v3718_v1, 1  ;;  %v3737_v29 = vmax.f32 %v3735_v57, %v3736_v55  ;;  %v3743_v10 = vrot.slane %v3742_v2, 4  ;;  %v3713_v22 = vmax.f32 %v3711_v4, %v3712_v43 }
 0x353   : > { %v3726_v12 = vrot.slane %v3725_v58, 1  ;;  %v3750_v14 = vrot.slane %v3749_v18, 4  ;;  %v3756_v13 = vsel %vm3622_vm4, %v3370_v9, -inf  ;;  %v3733_v6 = vrot.slane %v3732_v11, 1 }
 0x354   : > { %v3720_v7 = vmax.f32 %v3718_v1, %v3719_v8  ;;  %v3738_v52 = vrot.slane %v3737_v29, 2  ;;  %v3744_v47 = vmax.f32 %v3742_v2, %v3743_v10  ;;  %v4184_v62 = vsel %vm4173_vm8, %v3713_v22, %v4183_v42 }
 0x355   : > { %v3727_v49 = vmax.f32 %v3725_v58, %v3726_v12  ;;  %v3751_v53 = vmax.f32 %v3749_v18, %v3750_v14  ;;  %v3757_v36 = vrot.slane %v3756_v13, 4  ;;  %v3734_v28 = vmax.f32 %v3732_v11, %v3733_v6  ;;  %v10489_v44 = vpop.f32.mrb[28].mxu0 }
 0x356   : > { %v4185_v15 = vsel %vm4175_vm9, %v3720_v7, %v4184_v62  ;;  %v3739_v51 = vmax.f32 %v3737_v29, %v3738_v52  ;;  %v3745_v57 = vrot.slane %v3744_v47, 2  ;;  %v3233_v1 = vmax.f32 %v10455_v50, 0.0  ;;  %v10493_v43 = vpop.f32.mrb[29].mxu0 }
 0x357   : > { %v4186_v4 = vsel %vm4177_vm10, %v3727_v49, %v4185_v15  ;;  %v3752_v55 = vrot.slane %v3751_v53, 2  ;;  %v3758_v9 = vmax.f32 %v3756_v13, %v3757_v36  ;;  %v8665_v6 = vadd.f32 %v10405_v23, %v10274_v19  ;;  %v10498_v7 = vpop.f32.mrb[30].mxu0 }
 0x358   : > { %v4187_v58 = vsel %vm4179_vm11, %v3734_v28, %v4186_v4  ;;  %v3740_v42 = vrot.slane %v3739_v51, 1  ;;  %v3746_v2 = vmax.f32 %v3744_v47, %v3745_v57  ;;  %v8666_v15 = vadd.f32 %v10407_v24, %v10276_v20  ;;  %v10505_v8 = vpop.f32.mrb[31].mxu0 }
 0x359   : > { %4240 = vst.msk [vmem:[#allocation3 + $0x38] sm:$0xff] %vm4071_vm3, %v4187_v58  ;;  %v3753_v52 = vmax.f32 %v3751_v53, %v3752_v55  ;;  %v3759_v18 = vrot.slane %v3758_v9, 2  ;;  %v8667_v50 = vadd.f32 %v10410_v21, %v10278_v25  ;;  %v3199_v47 = vadd.f32 %v8665_v6, %v10359_v26 }
 0x35a   : > { %v3741_v28 = vmax.f32 %v3739_v51, %v3740_v42  ;;  %v3747_v11 = vrot.slane %v3746_v2, 1  ;;  %v8668_v19 = vadd.f32 %v10412_v35, %v10280_v32  ;;  %v3204_v10 = vadd.f32 %v8666_v15, %v10359_v26 }
 0x35b   : > { %v3754_v23 = vrot.slane %v3753_v52, 1  ;;  %v3760_v29 = vmax.f32 %v3758_v9, %v3759_v18  ;;  %v3202_v22 = vadd.f32 %v8667_v50, %v10359_v26  ;;  %v3231_v20 = vmax.f32 %v3199_v47, 0.0  ;;  %v10534_v18 = vld [vmem:[#allocation6] sm:$0xff]  }
 0x35c   : > { %v3748_v12 = vmax.f32 %v3746_v2, %v3747_v11  ;;  %v3205_v24 = vadd.f32 %v8668_v19, %v10359_v26  ;;  %v8669_v25 = vadd.f32 %v10419_v45, %v10282_v33  ;;  %v3236_v13 = vmax.f32 %v3204_v10, 0.0  ;;  %8500 = vmatprep.subr.bf16.mxu1 %v10534_v18 }
 0x35d   : > { %v3755_v21 = vmax.f32 %v3753_v52, %v3754_v23  ;;  %v3761_v14 = vrot.slane %v3760_v29, 1  ;;  %v3234_v49 = vmax.f32 %v3202_v22, 0.0  ;;  %v3259_v32 = vmax.f32 %v3231_v20, %v3233_v1 }
 0x35e   : > { %v4188_v62 = vsel %vm4167_vm5, %v3748_v12, %v3741_v28  ;;  %v3237_v35 = vmax.f32 %v3205_v24, 0.0  ;;  %v3203_v53 = vadd.f32 %v8669_v25, %v10359_v26  ;;  %v8670_v4 = vadd.f32 %v10433_v31, %v10324_v40 }
 0x35f   : > { %v3762_v36 = vmax.f32 %v3760_v29, %v3761_v14  ;;  %v4189_v51 = vsel %vm4169_vm6, %v3755_v21, %v4188_v62  ;;  %v3260_v57 = vmax.f32 %v3234_v49, %v3236_v13  ;;  %v3371_v55 = vcombine.high %v3259_v32, %v3259_v32 }
 0x360   : > { %v3378_v33 = vrot.slane %v3259_v32, %v10370_v59  ;;  %v3235_v45 = vmax.f32 %v3203_v53, 0.0  ;;  %v10523_v9 = vadd.f32 %v10438_v34, %v10326_v41  ;;  %v10528_v2 = vadd.f32 %v8670_v4, %v10359_v26 }
 0x361   : > { %v4190_v1 = vsel %vm4171_vm7, %v3762_v36, %v4189_v51  ;;  %v3388_v58 = vcombine.high %v3260_v57, %v3260_v57  ;;  %v3395_v42 = vrot.slane %v3260_v57, %v10370_v59  ;;  %v3385_v6 = vrot.slane %v3371_v55, %v10370_v59 }
 0x362   : > { %v3386_v52 = vcombine.high %v3378_v33, %v3378_v33  ;;  %v3763_v40 = vsel %vm3622_vm4, %v3378_v33, -inf  ;;  %v10532_v31 = vmax.f32 %v3235_v45, %v3237_v35 }
 0x363   : > { %v3764_v15 = vrot.slane %v3763_v40, 4  ;;  %v3402_v41 = vrot.slane %v3388_v58, %v10370_v59  ;;  %v3403_v34 = vcombine.high %v3395_v42, %v3395_v42  ;;  %v3791_v50 = vsel %vm3622_vm4, %v3395_v42, -inf }
 0x364   : > { %v3387_v28 = vcombine.high %v3385_v6, %v3385_v6  ;;  %v3770_v11 = vsel %vm3622_vm4, %v3386_v52, -inf  ;;  %v3777_v47 = vsel %vm3622_vm4, %v3385_v6, -inf  ;;  %v3792_v19 = vrot.slane %v3791_v50, 4 }
 0x365   : > { %v3765_v23 = vmax.f32 %v3763_v40, %v3764_v15  ;;  %v3771_v29 = vrot.slane %v3770_v11, 4  ;;  %v3778_v10 = vrot.slane %v3777_v47, 4  ;;  %v3404_v22 = vcombine.high %v3402_v41, %v3402_v41 }
 0x366   : > { %v3784_v12 = vsel %vm3622_vm4, %v3387_v28, -inf  ;;  %v3793_v20 = vmax.f32 %v3791_v50, %v3792_v19  ;;  %v3798_v24 = vsel %vm3622_vm4, %v3403_v34, -inf  ;;  %v3805_v25 = vsel %vm3622_vm4, %v3402_v41, -inf }
 0x367   : > { %v3766_v21 = vrot.slane %v3765_v23, 2  ;;  %v3772_v14 = vmax.f32 %v3770_v11, %v3771_v29  ;;  %v3779_v13 = vmax.f32 %v3777_v47, %v3778_v10  ;;  %v3785_v49 = vrot.slane %v3784_v12, 4 }
 0x368   : > { %v3794_v62 = vrot.slane %v3793_v20, 2  ;;  %v3799_v32 = vrot.slane %v3798_v24, 4  ;;  %v3806_v35 = vrot.slane %v3805_v25, 4  ;;  %v3812_v53 = vsel %vm3622_vm4, %v3404_v22, -inf }
 0x369   : > { %v3767_v36 = vmax.f32 %v3765_v23, %v3766_v21  ;;  %v3773_v51 = vrot.slane %v3772_v14, 2  ;;  %v3780_v57 = vrot.slane %v3779_v13, 2  ;;  %v3786_v4 = vmax.f32 %v3784_v12, %v3785_v49 }
 0x36a   : > { %v3795_v55 = vmax.f32 %v3793_v20, %v3794_v62  ;;  %v3800_v33 = vmax.f32 %v3798_v24, %v3799_v32  ;;  %v3807_v45 = vmax.f32 %v3805_v25, %v3806_v35  ;;  %v3813_v58 = vrot.slane %v3812_v53, 4 }
 0x36b   : > { %v3768_v42 = vrot.slane %v3767_v36, 1  ;;  %v3774_v6 = vmax.f32 %v3772_v14, %v3773_v51  ;;  %v3781_v52 = vmax.f32 %v3779_v13, %v3780_v57  ;;  %v3787_v40 = vrot.slane %v3786_v4, 2 }
 0x36c   : > { %v3796_v15 = vrot.slane %v3795_v55, 1  ;;  %v3801_v41 = vrot.slane %v3800_v33, 2  ;;  %v3808_v34 = vrot.slane %v3807_v45, 2  ;;  %v3814_v50 = vmax.f32 %v3812_v53, %v3813_v58 }
 0x36d   : > { %v3769_v28 = vmax.f32 %v3767_v36, %v3768_v42  ;;  %v3775_v11 = vrot.slane %v3774_v6, 1  ;;  %v3782_v47 = vrot.slane %v3781_v52, 1  ;;  %v3788_v19 = vmax.f32 %v3786_v4, %v3787_v40 }
 0x36e   : > { %v3797_v23 = vmax.f32 %v3795_v55, %v3796_v15  ;;  %v3802_v29 = vmax.f32 %v3800_v33, %v3801_v41  ;;  %v3809_v10 = vmax.f32 %v3807_v45, %v3808_v34  ;;  %v3815_v22 = vrot.slane %v3814_v50, 2 }
 0x36f   : > { %v3776_v12 = vmax.f32 %v3774_v6, %v3775_v11  ;;  %v3783_v20 = vmax.f32 %v3781_v52, %v3782_v47  ;;  %v3789_v24 = vrot.slane %v3788_v19, 1  ;;  %v4191_v25 = vsel %vm4173_vm8, %v3769_v28, %v4190_v1 }
 0x370   : > { %v3803_v21 = vrot.slane %v3802_v29, 1  ;;  %v3810_v14 = vrot.slane %v3809_v10, 1  ;;  %v3816_v13 = vmax.f32 %v3814_v50, %v3815_v22  ;;  %v3405_v49 = vcombine.high %v10532_v31, %v10532_v31 }
 0x371   : > { %v3790_v62 = vmax.f32 %v3788_v19, %v3789_v24  ;;  %v4192_v32 = vsel %vm4175_vm9, %v3776_v12, %v4191_v25  ;;  %v3412_v35 = vrot.slane %v10532_v31, %v10370_v59  ;;  %v3240_v53 = vmax.f32 %v10528_v2, 0.0 }
 0x372   : > { %v4193_v36 = vsel %vm4177_vm10, %v3783_v20, %v4192_v32  ;;  %v3804_v51 = vmax.f32 %v3802_v29, %v3803_v21  ;;  %v3811_v57 = vmax.f32 %v3809_v10, %v3810_v14  ;;  %v3817_v4 = vrot.slane %v3816_v13, 1 }
 0x373   : > { %v4194_v1 = vsel %vm4179_vm11, %v3790_v62, %v4193_v36  ;;  %v3419_v55 = vrot.slane %v3405_v49, %v10370_v59  ;;  %v3420_v33 = vcombine.high %v3412_v35, %v3412_v35  ;;  %v3819_v45 = vsel %vm3622_vm4, %v3412_v35, -inf }
 0x374   : > { %4241 = vst.msk [vmem:[#allocation3 + $0x50] sm:$0xff] %vm4071_vm3, %v4194_v1  ;;  %v3818_v58 = vmax.f32 %v3816_v13, %v3817_v4  ;;  %v4195_v42 = vsel %vm4167_vm5, %v3804_v51, %v3797_v23  ;;  %v3820_v31 = vrot.slane %v3819_v45, 4  ;;  %v3206_v2 = vadd.f32 %v10523_v9, %v10359_v26 }
 0x375   : > { %v4196_v6 = vsel %vm4169_vm6, %v3811_v57, %v4195_v42  ;;  %v3421_v52 = vcombine.high %v3419_v55, %v3419_v55  ;;  %v3826_v40 = vsel %vm3622_vm4, %v3420_v33, -inf  ;;  %v3833_v15 = vsel %vm3622_vm4, %v3419_v55, -inf }
 0x376   : > { %v3821_v41 = vmax.f32 %v3819_v45, %v3820_v31  ;;  %v3827_v34 = vrot.slane %v3826_v40, 4  ;;  %v3834_v50 = vrot.slane %v3833_v15, 4  ;;  %v4197_v28 = vsel %vm4171_vm7, %v3818_v58, %v4196_v6 }
 0x377   : > { %v3840_v11 = vsel %vm3622_vm4, %v3421_v52, -inf  ;;  %v3238_v47 = vmax.f32 %v3206_v2, 0.0  ;;  %v8672_v19 = vadd.f32 %v10441_v30, %v10328_v48  ;;  %v8673_v9 = vadd.f32 %v10448_v0, %v10330_v60 }
 0x378   : > { %v3822_v23 = vrot.slane %v3821_v41, 2  ;;  %v3828_v29 = vmax.f32 %v3826_v40, %v3827_v34  ;;  %v3835_v10 = vmax.f32 %v3833_v15, %v3834_v50  ;;  %v3841_v22 = vrot.slane %v3840_v11, 4 }
 0x379   : > { %v3262_v12 = vmax.f32 %v3238_v47, %v3240_v53  ;;  %v3209_v20 = vadd.f32 %v8672_v19, %v10359_v26  ;;  %v3207_v24 = vadd.f32 %v8673_v9, %v10359_v26  ;;  %v8674_v25 = vadd.f32 %v10457_v63, %v10332_v61 }
 0x37a   : > { %v3823_v21 = vmax.f32 %v3821_v41, %v3822_v23  ;;  %v3829_v14 = vrot.slane %v3828_v29, 2  ;;  %v3836_v13 = vrot.slane %v3835_v10, 2  ;;  %v3842_v49 = vmax.f32 %v3840_v11, %v3841_v22 }
 0x37b   : > { %v3422_v48 = vcombine.high %v3262_v12, %v3262_v12  ;;  %v3429_v30 = vrot.slane %v3262_v12, %v10370_v59  ;;  %v3241_v60 = vmax.f32 %v3209_v20, 0.0  ;;  %v3239_v0 = vmax.f32 %v3207_v24, 0.0 }
 0x37c   : > { %v3824_v62 = vrot.slane %v3823_v21, 1  ;;  %v3830_v32 = vmax.f32 %v3828_v29, %v3829_v14  ;;  %v3837_v35 = vmax.f32 %v3835_v10, %v3836_v13  ;;  %v3843_v53 = vrot.slane %v3842_v49, 2 }
 0x37d   : > { %v3436_v36 = vrot.slane %v3422_v48, %v10370_v59  ;;  %v3437_v51 = vcombine.high %v3429_v30, %v3429_v30  ;;  %v3847_v57 = vsel %vm3622_vm4, %v3429_v30, -inf  ;;  %v3263_v4 = vmax.f32 %v3239_v0, %v3241_v60 }
 0x37e   : > { %v3825_v61 = vmax.f32 %v3823_v21, %v3824_v62  ;;  %v3831_v63 = vrot.slane %v3830_v32, 1  ;;  %v3838_v1 = vrot.slane %v3837_v35, 1  ;;  %v3844_v55 = vmax.f32 %v3842_v49, %v3843_v53 }
 0x37f   : > { %v3438_v33 = vcombine.high %v3436_v36, %v3436_v36  ;;  %v3848_v45 = vrot.slane %v3847_v57, 4  ;;  %v3854_v58 = vsel %vm3622_vm4, %v3437_v51, -inf  ;;  %v3861_v42 = vsel %vm3622_vm4, %v3436_v36, -inf }
 0x380   : > { %v3832_v31 = vmax.f32 %v3830_v32, %v3831_v63  ;;  %v3839_v2 = vmax.f32 %v3837_v35, %v3838_v1  ;;  %v3845_v6 = vrot.slane %v3844_v55, 1  ;;  %v4198_v52 = vsel %vm4173_vm8, %v3825_v61, %v4197_v28 }
 0x381   : > { %v3849_v40 = vmax.f32 %v3847_v57, %v3848_v45  ;;  %v3855_v15 = vrot.slane %v3854_v58, 4  ;;  %v3862_v41 = vrot.slane %v3861_v42, 4  ;;  %v3868_v34 = vsel %vm3622_vm4, %v3438_v33, -inf }
 0x382   : > { %v3846_v50 = vmax.f32 %v3844_v55, %v3845_v6  ;;  %v4199_v11 = vsel %vm4175_vm9, %v3832_v31, %v4198_v52  ;;  %v3869_v47 = vrot.slane %v3868_v34, 4  ;;  %v3439_v19 = vcombine.high %v3263_v4, %v3263_v4 }
 0x383   : > { %v4200_v9 = vsel %vm4177_vm10, %v3839_v2, %v4199_v11  ;;  %v3850_v23 = vrot.slane %v3849_v40, 2  ;;  %v3856_v29 = vmax.f32 %v3854_v58, %v3855_v15  ;;  %v3863_v10 = vmax.f32 %v3861_v42, %v3862_v41 }
 0x384   : > { %v4201_v22 = vsel %vm4179_vm11, %v3846_v50, %v4200_v9  ;;  %v3870_v12 = vmax.f32 %v3868_v34, %v3869_v47  ;;  %v3446_v28 = vrot.slane %v3263_v4, %v10370_v59  ;;  %v3453_v20 = vrot.slane %v3439_v19, %v10370_v59 }
 0x385   : > { %4242 = vst.msk [vmem:[#allocation3 + $0x68] sm:$0xff] %vm4071_vm3, %v4201_v22  ;;  %v3851_v24 = vmax.f32 %v3849_v40, %v3850_v23  ;;  %v3857_v21 = vrot.slane %v3856_v29, 2  ;;  %v3864_v14 = vrot.slane %v3863_v10, 2  ;;  %v3212_v13 = vadd.f32 %v8674_v25, %v10359_v26 }
 0x386   : > { %v3871_v49 = vrot.slane %v3870_v12, 2  ;;  %v3454_v48 = vcombine.high %v3446_v28, %v3446_v28  ;;  %v3455_v30 = vcombine.high %v3453_v20, %v3453_v20  ;;  %v3875_v60 = vsel %vm3622_vm4, %v3446_v28, -inf }
 0x387   : > { %v3852_v0 = vrot.slane %v3851_v24, 1  ;;  %v3858_v62 = vmax.f32 %v3856_v29, %v3857_v21  ;;  %v3865_v32 = vmax.f32 %v3863_v10, %v3864_v14  ;;  %v3876_v35 = vrot.slane %v3875_v60, 4  ;;  %v4261_v29 = vld [vmem:[#allocation3 + $0x8] sm:$0xff]  ;;  %v10597_v10 = vld [vmem:[#allocation3 + $0x20] sm:$0xff] }
 0x388   : > { %v3872_v53 = vmax.f32 %v3870_v12, %v3871_v49  ;;  %v3882_v36 = vsel %vm3622_vm4, %v3454_v48, -inf  ;;  %v3889_v51 = vsel %vm3622_vm4, %v3453_v20, -inf  ;;  %v3896_v57 = vsel %vm3622_vm4, %v3455_v30, -inf }
 0x389   : > { %v3853_v4 = vmax.f32 %v3851_v24, %v3852_v0  ;;  %v3859_v61 = vrot.slane %v3858_v62, 1  ;;  %v3866_v63 = vrot.slane %v3865_v32, 1  ;;  %v3877_v25 = vmax.f32 %v3875_v60, %v3876_v35 }
 0x38a   : > { %v3873_v1 = vrot.slane %v3872_v53, 1  ;;  %v3883_v55 = vrot.slane %v3882_v36, 4  ;;  %v3890_v33 = vrot.slane %v3889_v51, 4  ;;  %v3897_v45 = vrot.slane %v3896_v57, 4 }
 0x38b   : > { %v3860_v58 = vmax.f32 %v3858_v62, %v3859_v61  ;;  %v3867_v42 = vmax.f32 %v3865_v32, %v3866_v63  ;;  %v3878_v31 = vrot.slane %v3877_v25, 2  ;;  %v3244_v2 = vmax.f32 %v3212_v13, 0.0 }
 0x38c   : > { %v3874_v6 = vmax.f32 %v3872_v53, %v3873_v1  ;;  %v3884_v52 = vmax.f32 %v3882_v36, %v3883_v55  ;;  %v3891_v40 = vmax.f32 %v3889_v51, %v3890_v33  ;;  %v3898_v15 = vmax.f32 %v3896_v57, %v3897_v45 }
 0x38d   : > { %v4202_v41 = vsel %vm4167_vm5, %v3860_v58, %v3853_v4  ;;  %v3879_v34 = vmax.f32 %v3877_v25, %v3878_v31  ;;  %v8675_v50 = vadd.f32 %v10461_v56, %v10334_v16  ;;  %v8676_v11 = vadd.f32 %v10463_v46, %v10336_v17 }
 0x38e   : > { %v4203_v47 = vsel %vm4169_vm6, %v3867_v42, %v4202_v41  ;;  %v3885_v19 = vrot.slane %v3884_v52, 2  ;;  %v3892_v9 = vrot.slane %v3891_v40, 2  ;;  %v3899_v23 = vrot.slane %v3898_v15, 2 }
 0x38f   : > { %v3880_v22 = vrot.slane %v3879_v34, 1  ;;  %v4204_v12 = vsel %vm4171_vm7, %v3874_v6, %v4203_v47  ;;  %v3210_v28 = vadd.f32 %v8675_v50, %v10359_v26  ;;  %v3213_v20 = vadd.f32 %v8676_v11, %v10359_v26 }
 0x390   : > { %v3886_v24 = vmax.f32 %v3884_v52, %v3885_v19  ;;  %v3893_v16 = vmax.f32 %v3891_v40, %v3892_v9  ;;  %v3900_v56 = vmax.f32 %v3898_v15, %v3899_v23  ;;  %v8677_v17 = vadd.f32 %v10467_v39, %v10338_v27 }
 0x391   : > { %v3881_v46 = vmax.f32 %v3879_v34, %v3880_v22  ;;  %v3242_v21 = vmax.f32 %v3210_v28, 0.0  ;;  %v3245_v14 = vmax.f32 %v3213_v20, 0.0  ;;  %v4269_v13 = vpack.c.bf16 %v10597_v10, %v4261_v29 }
 0x392   : > { %v3887_v49 = vrot.slane %v3886_v24, 1  ;;  %v3894_v48 = vrot.slane %v3893_v16, 1  ;;  %v3901_v30 = vrot.slane %v3900_v56, 1  ;;  %v3211_v60 = vadd.f32 %v8677_v17, %v10359_v26 }
 0x393   : > { %v4205_v0 = vsel %vm4173_vm8, %v3881_v46, %v4204_v12  ;;  %v3264_v62 = vmax.f32 %v3242_v21, %v3244_v2  ;;  %8492 = vmatprep.mubr.msk.bf16.mxu1 %vm4071_vm3, %v4269_v13  ;;  %v8678_v32 = vadd.f32 %v10475_v3, %v10340_v54  ;;  %v8679_v27 = vadd.f32 %v10478_v5, %v10342_v37  ;;  %v11276_v54 = vld [vmem:[#allocation28_spill] sm:$0xff]  ;;  %v11277_v37 = vld [vmem:[#allocation22_spill] sm:$0xff]  ;;  %v11278_v5 = vld [vmem:[#allocation29_spill] sm:$0xff] }
 0x394   : > { %v3888_v39 = vmax.f32 %v3886_v24, %v3887_v49  ;;  %v3895_v35 = vmax.f32 %v3893_v16, %v3894_v48  ;;  %v3902_v53 = vmax.f32 %v3900_v56, %v3901_v30  ;;  %v3243_v36 = vmax.f32 %v3211_v60, 0.0 }
 0x395   : > { %v3456_v51 = vcombine.high %v3264_v62, %v3264_v62  ;;  %v3463_v57 = vrot.slane %v3264_v62, %v10370_v59  ;;  %v10614_v4 = vadd.f32 %v8678_v32, %v10359_v26  ;;  %v3214_v61 = vadd.f32 %v8679_v27, %v10359_v26 }
 0x396   : > { %v4206_v63 = vsel %vm4175_vm9, %v3888_v39, %v4205_v0  ;;  %v3265_v25 = vmax.f32 %v3243_v36, %v3245_v14  ;;  %v10620_v3 = vadd.f32 %v11276_v54, %v10344_v38  ;;  %v10624_v1 = vadd.f32 %v11278_v5, %v11277_v37 }
 0x397   : > { %v4207_v55 = vsel %vm4177_vm10, %v3895_v35, %v4206_v63  ;;  %v3470_v33 = vrot.slane %v3456_v51, %v10370_v59  ;;  %v3471_v45 = vcombine.high %v3463_v57, %v3463_v57  ;;  %v3903_v58 = vsel %vm3622_vm4, %v3463_v57, -inf }
 0x398   : > { %v4208_v26 = vsel %vm4179_vm11, %v3902_v53, %v4207_v55  ;;  %v3904_v42 = vrot.slane %v3903_v58, 4  ;;  %v3473_v31 = vcombine.high %v3265_v25, %v3265_v25  ;;  %v3480_v2 = vrot.slane %v3265_v25, %v10370_v59 }
 0x399   : > { %4243 = vst.msk [vmem:[#allocation3 + $0x80] sm:$0xff] %vm4071_vm3, %v4208_v26  ;;  %v3472_v38 = vcombine.high %v3470_v33, %v3470_v33  ;;  %v3910_v6 = vsel %vm3622_vm4, %v3471_v45, -inf  ;;  %v3917_v52 = vsel %vm3622_vm4, %v3470_v33, -inf  ;;  %v3248_v40 = vmax.f32 %v10614_v4, 0.0 }
 0x39a   : > { %v3905_v15 = vmax.f32 %v3903_v58, %v3904_v42  ;;  %v3911_v41 = vrot.slane %v3910_v6, 4  ;;  %v3918_v34 = vrot.slane %v3917_v52, 4  ;;  %v3487_v50 = vrot.slane %v3473_v31, %v10370_v59 }
 0x39b   : > { %v3924_v11 = vsel %vm3622_vm4, %v3472_v38, -inf  ;;  %v3488_v47 = vcombine.high %v3480_v2, %v3480_v2  ;;  %v3931_v19 = vsel %vm3622_vm4, %v3480_v2, -inf  ;;  %v3246_v9 = vmax.f32 %v3214_v61, 0.0 }
 0x39c   : > { %v3906_v23 = vrot.slane %v3905_v15, 2  ;;  %v3912_v29 = vmax.f32 %v3910_v6, %v3911_v41  ;;  %v3919_v22 = vmax.f32 %v3917_v52, %v3918_v34  ;;  %v3925_v12 = vrot.slane %v3924_v11, 4 }
 0x39d   : > { %v3489_v28 = vcombine.high %v3487_v50, %v3487_v50  ;;  %v3932_v20 = vrot.slane %v3931_v19, 4  ;;  %v3938_v24 = vsel %vm3622_vm4, %v3488_v47, -inf  ;;  %v3945_v16 = vsel %vm3622_vm4, %v3487_v50, -inf }
 0x39e   : > { %v3907_v56 = vmax.f32 %v3905_v15, %v3906_v23  ;;  %v3913_v17 = vrot.slane %v3912_v29, 2  ;;  %v3920_v46 = vrot.slane %v3919_v22, 2  ;;  %v3926_v21 = vmax.f32 %v3924_v11, %v3925_v12 }
 0x39f   : > { %v3933_v14 = vmax.f32 %v3931_v19, %v3932_v20  ;;  %v3939_v13 = vrot.slane %v3938_v24, 4  ;;  %v3946_v49 = vrot.slane %v3945_v16, 4  ;;  %v3952_v48 = vsel %vm3622_vm4, %v3489_v28, -inf }
 0x3a0   : > { %v3908_v30 = vrot.slane %v3907_v56, 1  ;;  %v3914_v60 = vmax.f32 %v3912_v29, %v3913_v17  ;;  %v3921_v0 = vmax.f32 %v3919_v22, %v3920_v46  ;;  %v3927_v62 = vrot.slane %v3926_v21, 2 }
 0x3a1   : > { %v3934_v32 = vrot.slane %v3933_v14, 2  ;;  %v3940_v27 = vmax.f32 %v3938_v24, %v3939_v13  ;;  %v3947_v39 = vmax.f32 %v3945_v16, %v3946_v49  ;;  %v3953_v35 = vrot.slane %v3952_v48, 4 }
 0x3a2   : > { %v3909_v53 = vmax.f32 %v3907_v56, %v3908_v30  ;;  %v3915_v36 = vrot.slane %v3914_v60, 1  ;;  %v3922_v51 = vrot.slane %v3921_v0, 1  ;;  %v3928_v57 = vmax.f32 %v3926_v21, %v3927_v62  ;;  %v10654_v56 = vld [vmem:[%s11226_s2] ss:$0 sm:$0xff] }
 0x3a3   : > { %v3935_v4 = vmax.f32 %v3933_v14, %v3934_v32  ;;  %v3941_v61 = vrot.slane %v3940_v27, 2  ;;  %v3948_v63 = vrot.slane %v3947_v39, 2  ;;  %v3954_v25 = vmax.f32 %v3952_v48, %v3953_v35  ;;  %v11279_v35 = vld [vmem:[#allocation23_spill] sm:$0xff] }
 0x3a4   : > { %v3916_v54 = vmax.f32 %v3914_v60, %v3915_v36  ;;  %v3923_v37 = vmax.f32 %v3921_v0, %v3922_v51  ;;  %v3929_v5 = vrot.slane %v3928_v57, 1  ;;  %v3266_v55 = vmax.f32 %v3246_v9, %v3248_v40  ;;  %v11280_v36 = vld [vmem:[#allocation24_spill] sm:$0xff] }
 0x3a5   : > { %v3936_v33 = vrot.slane %v3935_v4, 1  ;;  %v3942_v45 = vmax.f32 %v3940_v27, %v3941_v61  ;;  %v3949_v58 = vmax.f32 %v3947_v39, %v3948_v63  ;;  %v3955_v26 = vrot.slane %v3954_v25, 2  ;;  %v11281_v63 = vld [vmem:[#allocation25_spill] sm:$0xff] }
 0x3a6   : > { %v3930_v42 = vmax.f32 %v3928_v57, %v3929_v5  ;;  %v4209_v31 = vsel %vm4167_vm5, %v3916_v54, %v3909_v53  ;;  %v3490_v2 = vcombine.high %v3266_v55, %v3266_v55  ;;  %v3497_v38 = vrot.slane %v3266_v55, %v10370_v59 }
 0x3a7   : > { %v4210_v6 = vsel %vm4169_vm6, %v3923_v37, %v4209_v31  ;;  %v3937_v52 = vmax.f32 %v3935_v4, %v3936_v33  ;;  %v3943_v15 = vrot.slane %v3942_v45, 1  ;;  %v3950_v41 = vrot.slane %v3949_v58, 1 }
 0x3a8   : > { %v3956_v34 = vmax.f32 %v3954_v25, %v3955_v26  ;;  %v4211_v50 = vsel %vm4171_vm7, %v3930_v42, %v4210_v6  ;;  %v3504_v40 = vrot.slane %v3490_v2, %v10370_v59  ;;  %v3505_v11 = vcombine.high %v3497_v38, %v3497_v38 }
 0x3a9   : > { %v3944_v47 = vmax.f32 %v3942_v45, %v3943_v15  ;;  %v3951_v19 = vmax.f32 %v3949_v58, %v3950_v41  ;;  %v4212_v9 = vsel %vm4173_vm8, %v3937_v52, %v4211_v50  ;;  %v3959_v23 = vsel %vm3622_vm4, %v3497_v38, -inf }
 0x3aa   : > { %v3957_v29 = vrot.slane %v3956_v34, 1  ;;  %v3506_v22 = vcombine.high %v3504_v40, %v3504_v40  ;;  %v3960_v12 = vrot.slane %v3959_v23, 4  ;;  %v3966_v28 = vsel %vm3622_vm4, %v3505_v11, -inf }
 0x3ab   : > { %v4213_v20 = vsel %vm4175_vm9, %v3944_v47, %v4212_v9  ;;  %v3967_v24 = vrot.slane %v3966_v28, 4  ;;  %v3973_v16 = vsel %vm3622_vm4, %v3504_v40, -inf  ;;  %v3217_v17 = vadd.f32 %v10654_v56, %v10620_v3 }
 0x3ac   : > { %v3958_v46 = vmax.f32 %v3956_v34, %v3957_v29  ;;  %v4214_v21 = vsel %vm4177_vm10, %v3951_v19, %v4213_v20  ;;  %v3961_v14 = vmax.f32 %v3959_v23, %v3960_v12  ;;  %v3974_v13 = vrot.slane %v3973_v16, 4 }
 0x3ad   : > { %v3968_v49 = vmax.f32 %v3966_v28, %v3967_v24  ;;  %v3980_v48 = vsel %vm3622_vm4, %v3506_v22, -inf  ;;  %v3249_v30 = vmax.f32 %v3217_v17, 0.0  ;;  %v3215_v60 = vadd.f32 %v10654_v56, %v10624_v1 }
 0x3ae   : > { %v4215_v0 = vsel %vm4179_vm11, %v3958_v46, %v4214_v21  ;;  %v3962_v62 = vrot.slane %v3961_v14, 2  ;;  %v3975_v32 = vmax.f32 %v3973_v16, %v3974_v13  ;;  %v3981_v27 = vrot.slane %v3980_v48, 4 }
 0x3af   : > { %4244 = vst.msk [vmem:[#allocation3 + $0x98] sm:$0xff] %vm4071_vm3, %v4215_v0  ;;  %v3969_v3 = vrot.slane %v3968_v49, 2  ;;  %v3247_v39 = vmax.f32 %v3215_v60, 0.0  ;;  %v8682_v53 = vadd.f32 %v10489_v44, %v11279_v35  ;;  %v8683_v51 = vadd.f32 %v10493_v43, %v11280_v36 }
 0x3b0   : > { %v3963_v57 = vmax.f32 %v3961_v14, %v3962_v62  ;;  %v3976_v4 = vrot.slane %v3975_v32, 2  ;;  %v3982_v61 = vmax.f32 %v3980_v48, %v3981_v27  ;;  %v10670_v1 = vadd.f32 %v10498_v7, %v11281_v63 }
 0x3b1   : > { %v3970_v25 = vmax.f32 %v3968_v49, %v3969_v3  ;;  %v3267_v54 = vmax.f32 %v3247_v39, %v3249_v30  ;;  %v3220_v37 = vadd.f32 %v10654_v56, %v8682_v53  ;;  %v3218_v5 = vadd.f32 %v10654_v56, %v8683_v51 }
 0x3b2   : > { %v3964_v55 = vrot.slane %v3963_v57, 1  ;;  %v3977_v33 = vmax.f32 %v3975_v32, %v3976_v4  ;;  %v3983_v45 = vrot.slane %v3982_v61, 2 }
 0x3b3   : > { %v3971_v44 = vrot.slane %v3970_v25, 1  ;;  %v3507_v58 = vcombine.high %v3267_v54, %v3267_v54  ;;  %v3514_v43 = vrot.slane %v3267_v54, %v10370_v59  ;;  %v3252_v26 = vmax.f32 %v3220_v37, 0.0 }
 0x3b4   : > { %v3965_v42 = vmax.f32 %v3963_v57, %v3964_v55  ;;  %v3978_v31 = vrot.slane %v3977_v33, 1  ;;  %v3984_v2 = vmax.f32 %v3982_v61, %v3983_v45  ;;  %v3250_v38 = vmax.f32 %v3218_v5, 0.0 }
 0x3b5   : > { %v3972_v7 = vmax.f32 %v3970_v25, %v3971_v44  ;;  %v3521_v6 = vrot.slane %v3507_v58, %v10370_v59  ;;  %v3522_v52 = vcombine.high %v3514_v43, %v3514_v43  ;;  %v3987_v15 = vsel %vm3622_vm4, %v3514_v43, -inf }
 0x3b6   : > { %v3979_v41 = vmax.f32 %v3977_v33, %v3978_v31  ;;  %v3985_v34 = vrot.slane %v3984_v2, 1  ;;  %v3988_v50 = vrot.slane %v3987_v15, 4  ;;  %v3268_v40 = vmax.f32 %v3250_v38, %v3252_v26 }
 0x3b7   : > { %v4216_v11 = vsel %vm4167_vm5, %v3972_v7, %v3965_v42  ;;  %v3523_v47 = vcombine.high %v3521_v6, %v3521_v6  ;;  %v3994_v19 = vsel %vm3622_vm4, %v3522_v52, -inf  ;;  %v4001_v9 = vsel %vm3622_vm4, %v3521_v6, -inf  ;;  %v10695_v52 = vld [vmem:[#allocation3 + $0x80] sm:$0xff] }
 0x3b8   : > { %v3986_v23 = vmax.f32 %v3984_v2, %v3985_v34  ;;  %v3989_v29 = vmax.f32 %v3987_v15, %v3988_v50  ;;  %v3995_v22 = vrot.slane %v3994_v19, 4  ;;  %v4002_v12 = vrot.slane %v4001_v9, 4  ;;  %v10690_v2 = vld [vmem:[#allocation3 + $0x50] sm:$0xff]  ;;  %v10698_v50 = vld [vmem:[#allocation3 + $0x38] sm:$0xff] }
 0x3b9   : > { %v4008_v28 = vsel %vm3622_vm4, %v3523_v47, -inf  ;;  %v3524_v20 = vcombine.high %v3268_v40, %v3268_v40  ;;  %v3531_v24 = vrot.slane %v3268_v40, %v10370_v59  ;;  %v4217_v16 = vsel %vm4169_vm6, %v3979_v41, %v4216_v11  ;;  %v11282_v47 = vld [vmem:[#allocation26_spill] sm:$0xff] }
 0x3ba   : > { %v3990_v17 = vrot.slane %v3989_v29, 2  ;;  %v3996_v46 = vmax.f32 %v3994_v19, %v3995_v22  ;;  %v4009_v21 = vrot.slane %v4008_v28, 4  ;;  %v4003_v14 = vmax.f32 %v4001_v9, %v4002_v12 }
 0x3bb   : > { %v3538_v13 = vrot.slane %v3524_v20, %v10370_v59  ;;  %v3539_v49 = vcombine.high %v3531_v24, %v3531_v24  ;;  %v4015_v48 = vsel %vm3622_vm4, %v3531_v24, -inf  ;;  %v4218_v51 = vsel %vm4171_vm7, %v3986_v23, %v4217_v16  ;;  %v10707_v23 = vld [vmem:[#allocation3 + $0x68] sm:$0xff] }
 0x3bc   : > { %v3991_v30 = vmax.f32 %v3989_v29, %v3990_v17  ;;  %v3997_v60 = vrot.slane %v3996_v46, 2  ;;  %v4010_v0 = vmax.f32 %v4008_v28, %v4009_v21  ;;  %v4016_v62 = vrot.slane %v4015_v48, 4 }
 0x3bd   : > { %v4004_v32 = vrot.slane %v4003_v14, 2  ;;  %v3540_v27 = vcombine.high %v3538_v13, %v3538_v13  ;;  %v4022_v3 = vsel %vm3622_vm4, %v3539_v49, -inf  ;;  %v4029_v39 = vsel %vm3622_vm4, %v3538_v13, -inf  ;;  %v4247_v13 = vld [vmem:[#allocation3 + $0x7] sm:$0xff]  ;;  %v10735_v49 = vld [vmem:[#allocation3 + $0x1f] sm:$0xff] }
 0x3be   : > { %v3992_v35 = vrot.slane %v3991_v30, 1  ;;  %v3998_v53 = vmax.f32 %v3996_v46, %v3997_v60  ;;  %v4011_v36 = vrot.slane %v4010_v0, 2  ;;  %v4023_v4 = vrot.slane %v4022_v3, 4 }
 0x3bf   : > { %v4005_v57 = vmax.f32 %v4003_v14, %v4004_v32  ;;  %v4030_v61 = vrot.slane %v4029_v39, 4  ;;  %v4036_v63 = vsel %vm3622_vm4, %v3540_v27, -inf  ;;  %v4017_v55 = vmax.f32 %v4015_v48, %v4016_v62 }
 0x3c0   : > { %v3993_v25 = vmax.f32 %v3991_v30, %v3992_v35  ;;  %v3999_v54 = vrot.slane %v3998_v53, 1  ;;  %v4012_v37 = vmax.f32 %v4010_v0, %v4011_v36  ;;  %v4024_v33 = vmax.f32 %v4022_v3, %v4023_v4  ;;  %v10738_v0 = vld [vmem:[#allocation3 + $0x98] sm:$0xff] }
 0x3c1   : > { %v4006_v5 = vrot.slane %v4005_v57, 1  ;;  %v4031_v45 = vmax.f32 %v4029_v39, %v4030_v61  ;;  %v4037_v26 = vrot.slane %v4036_v63, 4  ;;  %v3221_v6 = vadd.f32 %v10654_v56, %v10670_v1  ;;  %v10709_v1 = vld [vmem:[#allocation6 + $0x10] sm:$0xff]  }
 0x3c2   : > { %v4000_v44 = vmax.f32 %v3998_v53, %v3999_v54  ;;  %v4013_v58 = vrot.slane %v4012_v37, 1  ;;  %v4219_v43 = vsel %vm4173_vm8, %v3993_v25, %v4218_v51  ;;  %v4025_v31 = vrot.slane %v4024_v33, 2 }
 0x3c3   : > { %v4007_v42 = vmax.f32 %v4005_v57, %v4006_v5  ;;  %v4018_v41 = vrot.slane %v4017_v55, 2  ;;  %v4032_v34 = vrot.slane %v4031_v45, 2  ;;  %v4038_v11 = vmax.f32 %v4036_v63, %v4037_v26 }
 0x3c4   : > { %v4014_v38 = vmax.f32 %v4012_v37, %v4013_v58  ;;  %v4220_v7 = vsel %vm4175_vm9, %v4000_v44, %v4219_v43  ;;  %v8685_v19 = vadd.f32 %v10505_v8, %v11282_v47  ;;  %v10705_v9 = vpack.c.bf16 %v10690_v2, %v10698_v50  ;;  %v9063_v47 = vld [vmem:[#allocation6 + $0x18] sm:$0xff]  }
 0x3c5   : > { %v4221_v15 = vsel %vm4177_vm10, %v4007_v42, %v4220_v7  ;;  %v4026_v29 = vmax.f32 %v4024_v33, %v4025_v31  ;;  %v10714_v22 = vpack.c.bf16 %v10695_v52, %v10707_v23  ;;  %v3253_v12 = vmax.f32 %v3221_v6, 0.0  ;;  %v10755_v33 = vld [vmem:[#allocation3 + $0x4f] sm:$0xff]  ;;  %v4249_v42 = vld [vmem:[#allocation3 + $0x37] sm:$0xff]  ;;  %v10758_v31 = vld [vmem:[#allocation3 + $0x7f] sm:$0xff] }
 0x3c6   : > { %v4222_v40 = vsel %vm4179_vm11, %v4014_v38, %v4221_v15  ;;  %v3219_v28 = vadd.f32 %v10654_v56, %v8685_v19  ;;  %8493 = vmatmul.mubr.msk.bf16.vlgmr.msra.gmra.mrb[32].mxu1 %vm4071_vm3, %v10705_v9  ;;  %v4019_v8 = vmax.f32 %v4017_v55, %v4018_v41  ;;  %v4033_v20 = vmax.f32 %v4031_v45, %v4032_v34 }
 0x3c7   : > { %4245 = vst.msk [vmem:[#allocation3 + $0xb0] sm:$0xff] %vm4071_vm3, %v4222_v40  ;;  %8496 = vmatprep.mubr.msk.bf16.mxu1 %vm4071_vm3, %v10714_v22  ;;  %8501 = vmatpush3.bf16.msra.mxu1 %v10534_v18  ;;  %v4039_v24 = vrot.slane %v4038_v11, 2  ;;  %v11283_v17 = vmov 0.0   ;;  %v4027_v18 = vrot.slane %v4026_v29, 1  ;;  %v4663_v56 = vpack.c.bf16 %v10707_v23, %v10690_v2 }
 0x3c8   : > { %v3251_v16 = vmax.f32 %v3219_v28, 0.0  ;;  %8510 = vmatprep.subr.bf16.mxu1 %v10709_v1  ;;  %4075 = vst.msk [vmem:[#allocation3 + $0x10] sm:$0x1] %vm4074_vm12, %v11283_v17  ;;  %4078 = vst.msk [vmem:[#allocation3 + $0x28] sm:$0x1] %vm4074_vm12, %v11283_v17  ;;  %v4020_v21 = vrot.slane %v4019_v8, 1  ;;  %v4255_v53 = vpack.c.bf16 %v10735_v49, %v4247_v13  ;;  %v10762_v6 = vpack.c.bf16 %v10755_v33, %v4249_v42 }
 0x3c9   : > { %4081 = vst.msk [vmem:[#allocation3 + $0x40] sm:$0x1] %vm4074_vm12, %v11283_v17  ;;  %4084 = vst.msk [vmem:[#allocation3 + $0x58] sm:$0x1] %vm4074_vm12, %v11283_v17  ;;  %v4034_v14 = vrot.slane %v4033_v20, 1  ;;  %v4040_v48 = vmax.f32 %v4038_v11, %v4039_v24  ;;  %v4028_v32 = vmax.f32 %v4026_v29, %v4027_v18  ;;  %v4251_v11 = vld [vmem:[#allocation3 + $0x67] sm:$0xff] }
 0x3ca   : > { %4087 = vst.msk [vmem:[#allocation3 + $0x70] sm:$0x1] %vm4074_vm12, %v11283_v17  ;;  %4090 = vst.msk [vmem:[#allocation3 + $0x88] sm:$0x1] %vm4074_vm12, %v11283_v17  ;;  %v3269_v46 = vmax.f32 %v3251_v16, %v3253_v12  ;;  %v4021_v36 = vmax.f32 %v4019_v8, %v4020_v21  ;;  %v10765_v19 = vpack.c.bf16 %v10758_v31, %v4251_v11 }
 0x3cb   : > { %4093 = vst.msk [vmem:[#allocation3 + $0xa0] sm:$0x1] %vm4074_vm12, %v11283_v17  ;;  %4096 = vst.msk [vmem:[#allocation3 + $0xb8] sm:$0x1] %vm4074_vm12, %v11283_v17  ;;  %v4035_v51 = vmax.f32 %v4033_v20, %v4034_v14  ;;  %v4041_v4 = vrot.slane %v4040_v48, 1 }
 0x3cc   : > { %4099 = vst.msk [vmem:[#allocation3 + $0xd0] sm:$0x1] %vm4074_vm12, %v11283_v17  ;;  %4102 = vst.msk [vmem:[#allocation3 + $0xe8] sm:$0x1] %vm4074_vm12, %v11283_v17  ;;  %v3541_v30 = vcombine.high %v3269_v46, %v3269_v46  ;;  %v3548_v60 = vrot.slane %v3269_v46, %v10370_v59  ;;  %v4223_v54 = vsel %vm4167_vm5, %v4028_v32, %v4021_v36 }
 0x3cd   : > { %v4042_v38 = vmax.f32 %v4040_v48, %v4041_v4  ;;  %v4224_v7 = vsel %vm4169_vm6, %v4035_v51, %v4223_v54  ;;  %v9064_v54 = vld [vmem:[#allocation6 + $0x20] sm:$0xff]   ;;  %5416 = vst.msk [vmem:[#allocation4 + $0x8] sm:$0x1f] %vm5415_vm13, %v11283_v17  ;;  %5420 = vst.msk [vmem:[#allocation4 + $0x28] sm:$0x1f] %vm5415_vm13, %v11283_v17 }
 0x3ce   : > { %v10740_v62 = vld [vmem:[#allocation3 + $0xb0] sm:$0xff]  ;;  %v3555_v3 = vrot.slane %v3541_v30, %v10370_v59  ;;  %v3556_v39 = vcombine.high %v3548_v60, %v3548_v60  ;;  %v4043_v35 = vsel %vm3622_vm4, %v3548_v60, -inf  ;;  %5426 = vst.msk [vmem:[#allocation4 + $0x58] sm:$0x1f] %vm5415_vm13, %v11283_v17  ;;  %5418 = vst.msk [vmem:[#allocation4 + $0x18] sm:$0x1f] %vm5415_vm13, %v11283_v17 }
 0x3cf   : > { %v10744_v27 = vpack.c.bf16 %v10740_v62, %v10738_v0  ;;  %v4044_v57 = vrot.slane %v4043_v35, 4  ;;  %v4225_v20 = vsel %vm4171_vm7, %v4042_v38, %v4224_v7  ;;  %v4254_v21 = vld [vmem:[#allocation3 + $0xaf] sm:$0xff]  ;;  %v4443_v60 = vld [vmem:[#allocation3 + $0x21] sm:$0xff]  ;;  %5422 = vst.msk [vmem:[#allocation4 + $0x38] sm:$0x1f] %vm5415_vm13, %v11283_v17 }
 0x3d0   : > { %v3557_v61 = vcombine.high %v3555_v3, %v3555_v3  ;;  %v4050_v63 = vsel %vm3622_vm4, %v3556_v39, -inf  ;;  %v4057_v25 = vsel %vm3622_vm4, %v3555_v3, -inf  ;;  %v4442_v30 = vld [vmem:[#allocation3 + $0x9] sm:$0xff]  ;;  %v4253_v3 = vld [vmem:[#allocation3 + $0x97] sm:$0xff]  ;;  %5424 = vst.msk [vmem:[#allocation4 + $0x48] sm:$0x1f] %vm5415_vm13, %v11283_v17 }
 0x3d1   : > { %8497 = vmatmul.mubr.msk.bf16.gmra.mrb[36].mxu1 %vm4071_vm3, %v10744_v27  ;;  %v4045_v37 = vmax.f32 %v4043_v35, %v4044_v57  ;;  %v4051_v5 = vrot.slane %v4050_v63, 4  ;;  %v4058_v55 = vrot.slane %v4057_v25, 4  ;;  %v4258_v35 = vpack.c.bf16 %v4254_v21, %v4253_v3  ;;  %v4445_v57 = vld [vmem:[#allocation3 + $0x51] sm:$0xff]  ;;  %v4447_v4 = vld [vmem:[#allocation3 + $0x81] sm:$0xff]  ;;  %5414 = vst.msk [vmem:[#allocation4] sm:$0xff] %vm5413_vm14, %v11283_v17  ;;  %5417 = vst.msk [vmem:[#allocation4 + $0x10] sm:$0xff] %vm5413_vm14, %v11283_v17 }
 0x3d2   : > { %8502 = vmatprep.mubr.msk.bf16.mxu1 %vm4071_vm3, %v4255_v53  ;;  %v4064_v45 = vsel %vm3622_vm4, %v3557_v61, -inf  ;;  %v4450_v36 = vpack.c.bf16 %v4443_v60, %v4442_v30  ;;  %v4444_v61 = vld [vmem:[#allocation3 + $0x39] sm:$0xff]  ;;  %5419 = vst.msk [vmem:[#allocation4 + $0x20] sm:$0xff] %vm5413_vm14, %v11283_v17  ;;  %5421 = vst.msk [vmem:[#allocation4 + $0x30] sm:$0xff] %vm5413_vm14, %v11283_v17 }
 0x3d3   : > { %v4046_v44 = vrot.slane %v4045_v37, 2  ;;  %v4052_v58 = vmax.f32 %v4050_v63, %v4051_v5  ;;  %v4059_v43 = vmax.f32 %v4057_v25, %v4058_v55  ;;  %v4065_v26 = vrot.slane %v4064_v45, 4  ;;  %v4446_v25 = vld [vmem:[#allocation3 + $0x69] sm:$0xff]  ;;  %v4449_v5 = vld [vmem:[#allocation3 + $0xb1] sm:$0xff]  ;;  %v4448_v55 = vld [vmem:[#allocation3 + $0x99] sm:$0xff]  ;;  %5423 = vst.msk [vmem:[#allocation4 + $0x40] sm:$0xff] %vm5413_vm14, %v11283_v17 }
 0x3d4   : > { %v10780_v63 = vpack.c.bf16 %v4445_v57, %v4444_v61  ;;  %5425 = vst.msk [vmem:[#allocation4 + $0x50] sm:$0xff] %vm5413_vm14, %v11283_v17 }
 0x3d5   : > { %v4047_v15 = vmax.f32 %v4045_v37, %v4046_v44  ;;  %v4053_v41 = vrot.slane %v4052_v58, 2  ;;  %v4060_v34 = vrot.slane %v4059_v43, 2  ;;  %v4066_v40 = vmax.f32 %v4064_v45, %v4065_v26 }
 0x3d6   : > { %v4452_v37 = vpack.c.bf16 %v4447_v4, %v4446_v25  ;;  %v4453_v45 = vpack.c.bf16 %v4449_v5, %v4448_v55  ;;  %v4556_v44 = vpack.c.bf16 %v4249_v42, %v10735_v49  ;;  %v4558_v26 = vpack.c.bf16 %v4253_v3, %v10758_v31  ;;  %v9066_v42 = vld [vmem:[#allocation6 + $0x30] sm:$0xff]  }
 0x3d7   : > { %v4048_v29 = vrot.slane %v4047_v15, 1  ;;  %v4054_v12 = vmax.f32 %v4052_v58, %v4053_v41  ;;  %v4061_v28 = vmax.f32 %v4059_v43, %v4060_v34  ;;  %v4067_v8 = vrot.slane %v4066_v40, 2  ;;  %v9065_v43 = vld [vmem:[#allocation6 + $0x28] sm:$0xff]   ;;  %v9067_v41 = vld [vmem:[#allocation6 + $0x38] sm:$0xff]  }
 0x3d8   : > { %v4557_v58 = vpack.c.bf16 %v4251_v11, %v10755_v33  ;;  %v4662_v49 = vpack.c.bf16 %v10698_v50, %v10597_v10  ;;  %v4664_v33 = vpack.c.bf16 %v10738_v0, %v10695_v52  ;;  %v4768_v50 = vpack.c.bf16 %v4444_v61, %v4443_v60  ;;  %v4874_v0 = vld [vmem:[#allocation3 + $0xdf] sm:$0xff] }
 0x3d9   : > { %8503 = vmatmul.mubr.msk.bf16.vlgmr.msra.gmra.mrb[32].mxu1 %vm4071_vm3, %v10762_v6  ;;  %v4049_v24 = vmax.f32 %v4047_v15, %v4048_v29  ;;  %v4055_v16 = vrot.slane %v4054_v12, 1  ;;  %v4062_v18 = vrot.slane %v4061_v28, 1  ;;  %v4068_v46 = vmax.f32 %v4066_v40, %v4067_v8  ;;  %v10853_v11 = vld [vmem:[%s11228_s4] ss:$0 sm:$0xff] }
 0x3da   : > { %8511 = vmatpush3.bf16.msra.mxu1 %v10709_v1  ;;  %8506 = vmatprep.mubr.msk.bf16.mxu1 %vm4071_vm3, %v10765_v19  ;;  %v4769_v15 = vpack.c.bf16 %v4446_v25, %v4445_v57  ;;  %v4770_v52 = vpack.c.bf16 %v4448_v55, %v4447_v4 }
 0x3db   : > { %8520 = vmatprep.subr.bf16.mxu1 %v9063_v47  ;;  %v4056_v14 = vmax.f32 %v4054_v12, %v4055_v16  ;;  %v4069_v13 = vrot.slane %v4068_v46, 1  ;;  %v4226_v48 = vsel %vm4173_vm8, %v4049_v24, %v4225_v20  ;;  %v4063_v32 = vmax.f32 %v4061_v28, %v4062_v18 }
 0x3dd   : > { %v4070_v39 = vmax.f32 %v4068_v46, %v4069_v13  ;;  %v4227_v1 = vsel %vm4175_vm9, %v4056_v14, %v4226_v48 }
 0x3de   : > { %v4228_v53 = vsel %vm4177_vm10, %v4063_v32, %v4227_v1 }
 0x3df   : > { %v4229_v51 = vsel %vm4179_vm11, %v4070_v39, %v4228_v53 }
 0x3e0   : > { %4246 = vst.msk [vmem:[#allocation3 + $0xc8] sm:$0xff] %vm4071_vm3, %v4229_v51 }
 0x3e1   : > { %8507 = vmatmul.mubr.msk.bf16.gmra.mrb[36].mxu1 %vm4071_vm3, %v4258_v35 }
 0x3e2   : > { %8512 = vmatprep.mubr.msk.bf16.mxu1 %vm4071_vm3, %v4450_v36 }
 0x3e7   : > { %v4555_v38 = vld [vmem:[#allocation3 + $0xc7] sm:$0xff] }
 0x3e8   : > { %v4559_v7 = vpack.c.bf16 %v4555_v38, %v4254_v21  ;;  %v4661_v31 = vld [vmem:[#allocation3 + $0xc8] sm:$0xff] }
 0x3e9   : > { %8513 = vmatmul.mubr.msk.bf16.vlgmr.msra.gmra.mrb[32].mxu1 %vm4071_vm3, %v10780_v63  ;;  %v4665_v10 = vpack.c.bf16 %v4661_v31, %v10740_v62  ;;  %v4767_v2 = vld [vmem:[#allocation3 + $0xc9] sm:$0xff]  ;;  %v4878_v62 = vpack.c.bf16 %v4874_v0, %v4555_v38 }
 0x3ea   : > { %8521 = vmatpush3.bf16.msra.mxu1 %v9063_v47  ;;  %8516 = vmatprep.mubr.msk.bf16.mxu1 %vm4071_vm3, %v4452_v37  ;;  %v4771_v23 = vpack.c.bf16 %v4767_v2, %v4449_v5 }
 0x3eb   : > { %8530 = vmatprep.subr.bf16.mxu1 %v9064_v54 }
 0x3f1   : > { %8517 = vmatmul.mubr.msk.bf16.gmra.mrb[36].mxu1 %vm4071_vm3, %v4453_v45 }
 0x3f2   : > { %8522 = vmatprep.mubr.msk.bf16.mxu1 %vm4071_vm3, %v4556_v44 }
 0x3f9   : > { %8523 = vmatmul.mubr.msk.bf16.vlgmr.msra.gmra.mrb[32].mxu1 %vm4071_vm3, %v4557_v58 }
 0x3fa   : > { %8531 = vmatpush3.bf16.msra.mxu1 %v9064_v54  ;;  %8526 = vmatprep.mubr.msk.bf16.mxu1 %vm4071_vm3, %v4558_v26 }
 0x3fb   : > { %8540 = vmatprep.subr.bf16.mxu1 %v9065_v43 }
 0x401   : > { %8527 = vmatmul.mubr.msk.bf16.gmra.mrb[36].mxu1 %vm4071_vm3, %v4559_v7 }
 0x402   : > { %8532 = vmatprep.mubr.msk.bf16.mxu1 %vm4071_vm3, %v4662_v49 }
 0x409   : > { %8533 = vmatmul.mubr.msk.bf16.vlgmr.msra.gmra.mrb[32].mxu1 %vm4071_vm3, %v4663_v56  ;;  %v9068_v56 = vld [vmem:[#allocation6 + $0x40] sm:$0xff]  }
 0x40a   : > { %8541 = vmatpush3.bf16.msra.mxu1 %v9065_v43  ;;  %8536 = vmatprep.mubr.msk.bf16.mxu1 %vm4071_vm3, %v4664_v33 }
 0x40b   : > { %8550 = vmatprep.subr.bf16.mxu1 %v9066_v42 }
 0x411   : > { %8537 = vmatmul.mubr.msk.bf16.gmra.mrb[36].mxu1 %vm4071_vm3, %v4665_v10 }
 0x412   : > { %8542 = vmatprep.mubr.msk.bf16.mxu1 %vm4071_vm3, %v4768_v50 }
 0x419   : > { %8543 = vmatmul.mubr.msk.bf16.vlgmr.msra.gmra.mrb[32].mxu1 %vm4071_vm3, %v4769_v15 }
 0x41a   : > { %8551 = vmatpush3.bf16.msra.mxu1 %v9066_v42  ;;  %8546 = vmatprep.mubr.msk.bf16.mxu1 %vm4071_vm3, %v4770_v52 }
 0x41b   : > { %8560 = vmatprep.subr.bf16.mxu1 %v9067_v41 }
 0x421   : > { %8547 = vmatmul.mubr.msk.bf16.gmra.mrb[36].mxu1 %vm4071_vm3, %v4771_v23 }
 0x422   : > { %8552 = vmatprep.mubr.msk.bf16.mxu1 %vm4071_vm3, %v10762_v6  ;;  %v4980_v6 = vld [vmem:[#allocation3 + $0xe0] sm:$0xff] }
 0x423   : > { %v4984_v34 = vpack.c.bf16 %v4980_v6, %v4661_v31 }
 0x429   : > { %8553 = vmatmul.mubr.msk.bf16.vlgmr.msra.gmra.mrb[32].mxu1 %vm4071_vm3, %v10765_v19 }
 0x42a   : > { %8561 = vmatpush3.bf16.msra.mxu1 %v9067_v41  ;;  %8556 = vmatprep.mubr.msk.bf16.mxu1 %vm4071_vm3, %v4258_v35 }
 0x42b   : > { %8570 = vmatprep.subr.bf16.mxu1 %v9068_v56 }
 0x431   : > { %8557 = vmatmul.mubr.msk.bf16.gmra.mrb[36].mxu1 %vm4071_vm3, %v4878_v62 }
 0x432   : > { %8562 = vmatprep.mubr.msk.bf16.mxu1 %vm4071_vm3, %v10705_v9  ;;  %v5086_v9 = vld [vmem:[#allocation3 + $0xe1] sm:$0xff] }
 0x433   : > { %v5090_v40 = vpack.c.bf16 %v5086_v9, %v4767_v2 }
 0x439   : > { %8563 = vmatmul.mubr.msk.bf16.vlgmr.msra.gmra.mrb[32].mxu1 %vm4071_vm3, %v10714_v22  ;;  %v9069_v22 = vld [vmem:[#allocation9 + $0x10] sm:$0xff]  }
 0x43a   : > { %8571 = vmatpush3.bf16.msra.mxu1 %v9068_v56  ;;  %8566 = vmatprep.mubr.msk.bf16.mxu1 %vm4071_vm3, %v10744_v27  ;;  %v9070_v27 = vld [vmem:[#allocation9 + $0x18] sm:$0xff]  }
 0x43b   : > { %8580 = vmatprep.subr.bf16.mxu1 %v11283_v17 }
 0x441   : > { %8567 = vmatmul.mubr.msk.bf16.gmra.mrb[36].mxu1 %vm4071_vm3, %v4984_v34 }
 0x442   : > { %8572 = vmatprep.mubr.msk.bf16.mxu1 %vm4071_vm3, %v10780_v63 }
 0x449   : > { %8573 = vmatmul.mubr.msk.bf16.vlgmr.msra.gmra.mrb[32].mxu1 %vm4071_vm3, %v4452_v37 }
 0x44a   : > { %8576 = vmatprep.mubr.msk.bf16.mxu1 %vm4071_vm3, %v4453_v45  ;;  %8581 = vmatpush3.bf16.msra.mxu1 %v9069_v22 }
 0x44b   : > { %8582 = vmatprep.subr.bf16.mxu1 %v11283_v17 }
 0x44e   : > { %8583 = vmatpush3.bf16.msra.mxu1 %v9070_v27 }
 0x44f   : > { %8588 = vmatprep.subr.bf16.mxu1 %v11283_v17 }
 0x451   : > { %8577 = vmatmul.mubr.msk.bf16.gmra.mrb[36].mxu1 %vm4071_vm3, %v5090_v40  ;;  %vm6342_vm3 = vcmask 523264  }
 0x452   : > { %8584 = vmatprep.mubr.msk.bf16.mxu1 %vm9398_vm15, %v11283_v17 }
 0x51c   : > { %v8574_v47 = vpop.f32.mrb[32].mxu1 }
 0x51d   : > { %v5194_v19 = vadd.f32 %v8574_v47, %v10853_v11  ;;  %v5146_v29 = vpop.f32.mrb[33].mxu1 }
 0x51e   : > { %v5192_v12 = vadd.f32 %v10853_v11, %v5146_v29  ;;  %v8575_v28 = vpop.f32.mrb[34].mxu1 }
 0x51f   : > { %v5195_v8 = vadd.f32 %v8575_v28, %v10853_v11  ;;  %v5149_v20 = vpop.f32.mrb[35].mxu1  ;;  %v5202_v16 = vmax.f32 %v5194_v19, 0.0 }
 0x520   : > { %v5193_v24 = vadd.f32 %v10853_v11, %v5149_v20  ;;  %v5200_v46 = vmax.f32 %v5192_v12, 0.0 }
 0x521   : > { %v5203_v18 = vmax.f32 %v5195_v8, 0.0 }
 0x522   : > { %v5201_v21 = vmax.f32 %v5193_v24, 0.0 }
 0x523   : > { %v5209_v14 = vmax.f32 %v5202_v16, %v5203_v18 }
 0x524   : > { %v5208_v13 = vmax.f32 %v5200_v46, %v5201_v21  ;;  %v8578_v48 = vpop.f32.mrb[36].mxu1 }
 0x525   : > { %v5233_v30 = vcombine.high %v5209_v14, %v5209_v14  ;;  %v5240_v60 = vrot.slane %v5209_v14, %v10370_v59  ;;  %v5162_v32 = vpop.f32.mrb[37].mxu1  ;;  %v10864_v51 = vadd.f32 %v8578_v48, %v10853_v11 }
 0x526   : > { %v5216_v3 = vcombine.high %v5208_v13, %v5208_v13  ;;  %v5223_v39 = vrot.slane %v5208_v13, %v10370_v59  ;;  %v8579_v1 = vpop.f32.mrb[38].mxu1  ;;  %v5196_v28 = vadd.f32 %v10853_v11, %v5162_v32 }
 0x527   : > { %v5247_v35 = vrot.slane %v5233_v30, %v10370_v59  ;;  %v5248_v53 = vcombine.high %v5240_v60, %v5240_v60  ;;  %v5329_v36 = vsel %vm5300_vm0, %v5240_v60, -inf  ;;  %v5165_v57 = vpop.f32.mrb[39].mxu1  ;;  %v5206_v14 = vmax.f32 %v10864_v51, 0.0 }
 0x528   : > { %v5330_v4 = vrot.slane %v5329_v36, 4  ;;  %v5230_v61 = vrot.slane %v5216_v3, %v10370_v59  ;;  %v5231_v63 = vcombine.high %v5223_v39, %v5223_v39  ;;  %v5301_v25 = vsel %vm5300_vm0, %v5223_v39, -inf }
 0x529   : > { %v5249_v54 = vcombine.high %v5247_v35, %v5247_v35  ;;  %v5336_v37 = vsel %vm5300_vm0, %v5248_v53, -inf  ;;  %v5343_v5 = vsel %vm5300_vm0, %v5247_v35, -inf  ;;  %v5302_v55 = vrot.slane %v5301_v25, 4 }
 0x52a   : > { %v5331_v45 = vmax.f32 %v5329_v36, %v5330_v4  ;;  %v5337_v44 = vrot.slane %v5336_v37, 4  ;;  %v5344_v58 = vrot.slane %v5343_v5, 4  ;;  %v5232_v43 = vcombine.high %v5230_v61, %v5230_v61 }
 0x52b   : > { %v5350_v26 = vsel %vm5300_vm0, %v5249_v54, -inf  ;;  %v5303_v38 = vmax.f32 %v5301_v25, %v5302_v55  ;;  %v5308_v7 = vsel %vm5300_vm0, %v5231_v63, -inf  ;;  %v5315_v49 = vsel %vm5300_vm0, %v5230_v61, -inf }
 0x52c   : > { %v5332_v42 = vrot.slane %v5331_v45, 2  ;;  %v5338_v33 = vmax.f32 %v5336_v37, %v5337_v44  ;;  %v5345_v31 = vmax.f32 %v5343_v5, %v5344_v58  ;;  %v5351_v10 = vrot.slane %v5350_v26, 4 }
 0x52d   : > { %v5304_v50 = vrot.slane %v5303_v38, 2  ;;  %v5309_v15 = vrot.slane %v5308_v7, 4  ;;  %v5316_v41 = vrot.slane %v5315_v49, 4  ;;  %v5322_v52 = vsel %vm5300_vm0, %v5232_v43, -inf }
 0x52e   : > { %v5333_v2 = vmax.f32 %v5331_v45, %v5332_v42  ;;  %v5339_v23 = vrot.slane %v5338_v33, 2  ;;  %v5346_v56 = vrot.slane %v5345_v31, 2  ;;  %v5352_v0 = vmax.f32 %v5350_v26, %v5351_v10 }
 0x52f   : > { %v5305_v62 = vmax.f32 %v5303_v38, %v5304_v50  ;;  %v5310_v6 = vmax.f32 %v5308_v7, %v5309_v15  ;;  %v5317_v34 = vmax.f32 %v5315_v49, %v5316_v41  ;;  %v5323_v9 = vrot.slane %v5322_v52, 4 }
 0x530   : > { %v5334_v40 = vrot.slane %v5333_v2, 1  ;;  %v5340_v22 = vmax.f32 %v5338_v33, %v5339_v23  ;;  %v5347_v27 = vmax.f32 %v5345_v31, %v5346_v56  ;;  %v5353_v47 = vrot.slane %v5352_v0, 2 }
 0x531   : > { %v5311_v19 = vrot.slane %v5310_v6, 2  ;;  %v5318_v29 = vrot.slane %v5317_v34, 2  ;;  %v5324_v12 = vmax.f32 %v5322_v52, %v5323_v9  ;;  %v5306_v16 = vrot.slane %v5305_v62, 1 }
 0x532   : > { %v5341_v8 = vrot.slane %v5340_v22, 1  ;;  %v5348_v20 = vrot.slane %v5347_v27, 1  ;;  %v5354_v24 = vmax.f32 %v5352_v0, %v5353_v47  ;;  %v5335_v13 = vmax.f32 %v5333_v2, %v5334_v40 }
 0x533   : > { %v5312_v18 = vmax.f32 %v5310_v6, %v5311_v19  ;;  %v5319_v46 = vmax.f32 %v5317_v34, %v5318_v29  ;;  %v5325_v21 = vrot.slane %v5324_v12, 2  ;;  %v5199_v53 = vadd.f32 %v8579_v1, %v10853_v11 }
 0x534   : > { %v5342_v48 = vmax.f32 %v5340_v22, %v5341_v8  ;;  %v5349_v30 = vmax.f32 %v5347_v27, %v5348_v20  ;;  %v5355_v60 = vrot.slane %v5354_v24, 1  ;;  %v5307_v4 = vmax.f32 %v5305_v62, %v5306_v16 }
 0x535   : > { %v5313_v3 = vrot.slane %v5312_v18, 1  ;;  %v5320_v39 = vrot.slane %v5319_v46, 1  ;;  %v5326_v35 = vmax.f32 %v5324_v12, %v5325_v21  ;;  %v5197_v61 = vadd.f32 %v10853_v11, %v5165_v57 }
 0x536   : > { %v5356_v36 = vmax.f32 %v5354_v24, %v5355_v60  ;;  %v5446_v32 = vsel %vm4167_vm5, %v5342_v48, %v5335_v13  ;;  %v5204_v5 = vmax.f32 %v5196_v28, 0.0  ;;  %v5207_v55 = vmax.f32 %v5199_v53, 0.0 }
 0x537   : > { %v5447_v63 = vsel %vm4169_vm6, %v5349_v30, %v5446_v32  ;;  %v5314_v25 = vmax.f32 %v5312_v18, %v5313_v3  ;;  %v5321_v54 = vmax.f32 %v5319_v46, %v5320_v39  ;;  %v5327_v51 = vrot.slane %v5326_v35, 1 }
 0x538   : > { %v5448_v37 = vsel %vm4171_vm7, %v5356_v36, %v5447_v63  ;;  %v5205_v45 = vmax.f32 %v5197_v61, 0.0  ;;  %v5211_v43 = vmax.f32 %v5206_v14, %v5207_v55 }
 0x539   : > { %5462 = vst.msk [vmem:[#allocation4 + $0x28] sm:$0xf] %vm5460_vm1, %v5448_v37  ;;  %v5328_v44 = vmax.f32 %v5326_v35, %v5327_v51  ;;  %v5443_v1 = vsel %vm4167_vm5, %v5314_v25, %v5307_v4 }
 0x53a   : > { %v5444_v58 = vsel %vm4169_vm6, %v5321_v54, %v5443_v1  ;;  %v5210_v26 = vmax.f32 %v5204_v5, %v5205_v45  ;;  %v5267_v57 = vcombine.high %v5211_v43, %v5211_v43  ;;  %v5274_v38 = vrot.slane %v5211_v43, %v10370_v59 }
 0x53b   : > { %v5445_v11 = vsel %vm4171_vm7, %v5328_v44, %v5444_v58 }
 0x53c   : > { %5461 = vst.msk [vmem:[#allocation4 + $0x18] sm:$0xf] %vm5460_vm1, %v5445_v11  ;;  %v5250_v7 = vcombine.high %v5210_v26, %v5210_v26  ;;  %v5257_v49 = vrot.slane %v5210_v26, %v10370_v59  ;;  %v5281_v42 = vrot.slane %v5267_v57, %v10370_v59  ;;  %v5282_v33 = vcombine.high %v5274_v38, %v5274_v38 }
 0x53d   : > { %v5385_v31 = vsel %vm5300_vm0, %v5274_v38, -inf }
 0x53e   : > { %v5264_v10 = vrot.slane %v5250_v7, %v10370_v59  ;;  %v5386_v50 = vrot.slane %v5385_v31, 4  ;;  %v5265_v15 = vcombine.high %v5257_v49, %v5257_v49  ;;  %v5357_v41 = vsel %vm5300_vm0, %v5257_v49, -inf }
 0x53f   : > { %v5283_v52 = vcombine.high %v5281_v42, %v5281_v42  ;;  %v5392_v2 = vsel %vm5300_vm0, %v5282_v33, -inf  ;;  %v5399_v23 = vsel %vm5300_vm0, %v5281_v42, -inf  ;;  %v5358_v34 = vrot.slane %v5357_v41, 4 }
 0x540   : > { %v5266_v56 = vcombine.high %v5264_v10, %v5264_v10  ;;  %v5387_v0 = vmax.f32 %v5385_v31, %v5386_v50  ;;  %v5393_v62 = vrot.slane %v5392_v2, 4  ;;  %v5400_v6 = vrot.slane %v5399_v23, 4 }
 0x541   : > { %v5406_v9 = vsel %vm5300_vm0, %v5283_v52, -inf  ;;  %v5364_v40 = vsel %vm5300_vm0, %v5265_v15, -inf  ;;  %v5371_v22 = vsel %vm5300_vm0, %v5264_v10, -inf  ;;  %v5359_v28 = vmax.f32 %v5357_v41, %v5358_v34 }
 0x542   : > { %v5378_v27 = vsel %vm5300_vm0, %v5266_v56, -inf  ;;  %v5388_v47 = vrot.slane %v5387_v0, 2  ;;  %v5394_v19 = vmax.f32 %v5392_v2, %v5393_v62  ;;  %v5401_v29 = vmax.f32 %v5399_v23, %v5400_v6  ;;  %v9073_v2 = vld [vmem:[#allocation9] sm:$0xff]   ;;  %v9074_v56 = vld [vmem:[#allocation9 + $0x8] sm:$0xff]  }
 0x543   : > { %v5407_v12 = vrot.slane %v5406_v9, 4  ;;  %v5365_v8 = vrot.slane %v5364_v40, 4  ;;  %v5372_v20 = vrot.slane %v5371_v22, 4  ;;  %v5379_v24 = vrot.slane %v5378_v27, 4  ;;  %v9071_v41 = vld [vmem:[#allocation4 + $0x8] ss:$16 sps:$4 sm:$0xff]  }
 0x544   : > { %v5389_v16 = vmax.f32 %v5387_v0, %v5388_v47  ;;  %v5395_v18 = vrot.slane %v5394_v19, 2  ;;  %v5402_v46 = vrot.slane %v5401_v29, 2  ;;  %v5360_v14 = vrot.slane %v5359_v28, 2  ;;  %v9075_v62 = vld [vmem:[#allocation4 + $0x7] ss:$16 sps:$4 sm:$0xff]   ;;  %v9077_v6 = vld [vmem:[#allocation9 + $0x20] sm:$0xff]  }
 0x545   : > { %v5408_v21 = vmax.f32 %v5406_v9, %v5407_v12  ;;  %v5366_v13 = vmax.f32 %v5364_v40, %v5365_v8  ;;  %v5373_v48 = vmax.f32 %v5371_v22, %v5372_v20  ;;  %v5380_v30 = vmax.f32 %v5378_v27, %v5379_v24  ;;  %v9078_v9 = vld [vmem:[#allocation9 + $0x28] sm:$0xff]   ;;  %v9081_v27 = vld [vmem:[#allocation9 + $0x30] sm:$0xff]  }
 0x546   : > { %v5390_v60 = vrot.slane %v5389_v16, 1  ;;  %v5396_v3 = vmax.f32 %v5394_v19, %v5395_v18  ;;  %v5403_v39 = vmax.f32 %v5401_v29, %v5402_v46  ;;  %v5361_v53 = vmax.f32 %v5359_v28, %v5360_v14  ;;  %v9079_v22 = vld [vmem:[#allocation4 + $0x9] ss:$16 sps:$4 sm:$0xff]  }
 0x547   : > { %v5409_v35 = vrot.slane %v5408_v21, 2  ;;  %v5367_v36 = vrot.slane %v5366_v13, 2  ;;  %v5374_v32 = vrot.slane %v5373_v48, 2  ;;  %v5381_v4 = vrot.slane %v5380_v30, 2  ;;  %v9082_v19 = vld [vmem:[#allocation9 + $0x38] sm:$0xff]   ;;  %v9085_v28 = vld [vmem:[#allocation9 + $0x40] sm:$0xff]  }
 0x548   : > { %v5397_v61 = vrot.slane %v5396_v3, 1  ;;  %v5404_v63 = vrot.slane %v5403_v39, 1  ;;  %v5362_v54 = vrot.slane %v5361_v53, 1  ;;  %v5391_v55 = vmax.f32 %v5389_v16, %v5390_v60  ;;  %v9083_v12 = vld [vmem:[#allocation4 + $0x17] ss:$16 sps:$4 sm:$0xff]   ;;  %v9089_v18 = vld [vmem:[#allocation9 + $0x50] sm:$0xff]  }
 0x549   : > { %v5410_v25 = vmax.f32 %v5408_v21, %v5409_v35  ;;  %v5368_v51 = vmax.f32 %v5366_v13, %v5367_v36  ;;  %v5375_v37 = vmax.f32 %v5373_v48, %v5374_v32  ;;  %v5382_v5 = vmax.f32 %v5380_v30, %v5381_v4  ;;  %v9086_v20 = vld [vmem:[#allocation9 + $0x48] sm:$0xff]   ;;  %v9090_v21 = vld [vmem:[#allocation9 + $0x58] sm:$0xff]   ;;  %v9093_v48 = vld [vmem:[#allocation9 + $0x60] sm:$0xff]  }
 0x54a   : > { %v5398_v45 = vmax.f32 %v5396_v3, %v5397_v61  ;;  %v5405_v44 = vmax.f32 %v5403_v39, %v5404_v63  ;;  %v5363_v38 = vmax.f32 %v5361_v53, %v5362_v54  ;;  %v9087_v16 = vld [vmem:[#allocation4 + $0x18] ss:$16 sps:$4 sm:$0xff]   ;;  %v9097_v35 = vld [vmem:[#allocation9 + $0x70] sm:$0xff]   ;;  %v9101_v61 = vld [vmem:[#allocation9 + $0x80] sm:$0xff]  }
 0x54b   : > { %v5411_v1 = vrot.slane %v5410_v25, 1  ;;  %v5369_v58 = vrot.slane %v5368_v51, 1  ;;  %v5376_v43 = vrot.slane %v5375_v37, 1  ;;  %v5383_v26 = vrot.slane %v5382_v5, 1  ;;  %v9091_v13 = vld [vmem:[#allocation4 + $0x19] ss:$16 sps:$4 sm:$0xff]  }
 0x54c   : > { %v5452_v57 = vsel %vm4167_vm5, %v5398_v45, %v5391_v55  ;;  %v9094_v60 = vld [vmem:[#allocation9 + $0x68] sm:$0xff]   ;;  %v9098_v36 = vld [vmem:[#allocation9 + $0x78] sm:$0xff]  }
 0x54d   : > { %v5412_v11 = vmax.f32 %v5410_v25, %v5411_v1  ;;  %v5453_v7 = vsel %vm4169_vm6, %v5405_v44, %v5452_v57  ;;  %v5370_v49 = vmax.f32 %v5368_v51, %v5369_v58  ;;  %v5377_v42 = vmax.f32 %v5375_v37, %v5376_v43  ;;  %v9102_v25 = vld [vmem:[#allocation9 + $0x88] sm:$0xff]   ;;  %v9111_v58 = vld [vmem:[%s11231_s7 + $0xc0] ss:$16 sps:$4 sm:$0xff]  }
 0x54e   : > { %v5384_v33 = vmax.f32 %v5382_v5, %v5383_v26  ;;  %v9105_v5 = vld [vmem:[%s11231_s7 + $0x80] ss:$16 sps:$4 sm:$0xff]   ;;  %v9107_v55 = vld [vmem:[%s11231_s7 + $0x84] ss:$16 sps:$4 sm:$0xff]   ;;  %v9399_v44 = vmov 0  }
 0x54f   : > { %v5454_v31 = vsel %vm4171_vm7, %v5412_v11, %v5453_v7  ;;  %v5449_v10 = vsel %vm4167_vm5, %v5370_v49, %v5363_v38  ;;  %v9110_v45 = vld [vmem:[%s11231_s7 + $0xa4] ss:$16 sps:$4 sm:$0xff]   ;;  %v9114_v26 = vld [vmem:[%s11231_s7 + $0xe0] ss:$16 sps:$4 sm:$0xff]   ;;  %v9119_v11 = vld [vmem:[%s11231_s7 + $0x8c] ss:$16 sps:$4 sm:$0xff]  }
 0x550   : > { %5464 = vst.msk [vmem:[#allocation4 + $0x48] sm:$0xf] %vm5460_vm1, %v5454_v31  ;;  %v5450_v50 = vsel %vm4169_vm6, %v5377_v42, %v5449_v10  ;;  %v9113_v1 = vld [vmem:[%s11231_s7 + $0xc4] ss:$16 sps:$4 sm:$0xff]  }
 0x551   : > { %v5451_v15 = vsel %vm4171_vm7, %v5384_v33, %v5450_v50  ;;  %v9116_v43 = vld [vmem:[%s11231_s7 + $0xe4] ss:$16 sps:$4 sm:$0xff]  }
 0x552   : > { %5463 = vst.msk [vmem:[#allocation4 + $0x38] sm:$0xf] %vm5460_vm1, %v5451_v15 }
 0x557   : > { %v9096_v39 = vld [vmem:[#allocation4 + $0x47] ss:$16 sps:$4 sm:$0xff]  }
 0x558   : > { %v9100_v4 = vld [vmem:[#allocation4 + $0x48] ss:$16 sps:$4 sm:$0xff]  }
 0x559   : > { %v9072_v52 = vld [vmem:[#allocation4 + $0x28] ss:$16 sps:$4 sm:$0xff]  }
 0x55a   : > { %v5494_v23 = vpack.c.bf16 %v9072_v52, %v9071_v41  ;;  %v9076_v0 = vld [vmem:[#allocation4 + $0x27] ss:$16 sps:$4 sm:$0xff]  }
 0x55b   : > { %v5477_v34 = vpack.c.bf16 %v9076_v0, %v9075_v62  ;;  %v9080_v40 = vld [vmem:[#allocation4 + $0x29] ss:$16 sps:$4 sm:$0xff]  }
 0x55c   : > { %8585 = vmatmul.mubr.msk.bf16.vlgmr.msra.gmra.mrb[40].mxu1 %vm5413_vm14, %v5494_v23  ;;  %v5624_v47 = vpack.c.bf16 %v9080_v40, %v9079_v22  ;;  %v9084_v29 = vld [vmem:[#allocation4 + $0x37] ss:$16 sps:$4 sm:$0xff]  }
 0x55d   : > { %8589 = vmatpush3.bf16.msra.mxu1 %v9073_v2  ;;  %8592 = vmatprep.mubr.msk.bf16.mxu1 %vm9398_vm15, %v11283_v17  ;;  %v5700_v8 = vpack.c.bf16 %v9084_v29, %v9083_v12  ;;  %v9088_v24 = vld [vmem:[#allocation4 + $0x38] ss:$16 sps:$4 sm:$0xff]  }
 0x55e   : > { %8590 = vmatprep.subr.bf16.mxu1 %v11283_v17  ;;  %v5776_v46 = vpack.c.bf16 %v9088_v24, %v9087_v16  ;;  %v9092_v14 = vld [vmem:[#allocation4 + $0x39] ss:$16 sps:$4 sm:$0xff]  }
 0x55f   : > { %v5852_v30 = vpack.c.bf16 %v9092_v14, %v9091_v13  ;;  %v9095_v3 = vld [vmem:[#allocation4 + $0x27] ss:$16 sps:$4 sm:$0xff]  }
 0x560   : > { %v5929_v53 = vpack.c.bf16 %v9096_v39, %v9095_v3  ;;  %v9099_v32 = vld [vmem:[#allocation4 + $0x28] ss:$16 sps:$4 sm:$0xff]  }
 0x561   : > { %8591 = vmatpush3.bf16.msra.mxu1 %v9074_v56  ;;  %v6005_v63 = vpack.c.bf16 %v9100_v4, %v9099_v32  ;;  %v9103_v54 = vld [vmem:[#allocation4 + $0x29] ss:$16 sps:$4 sm:$0xff]  }
 0x562   : > { %8596 = vmatprep.subr.bf16.mxu1 %v11283_v17  ;;  %v9104_v51 = vld [vmem:[#allocation4 + $0x49] ss:$16 sps:$4 sm:$0xff]  }
 0x563   : > { %v6081_v37 = vpack.c.bf16 %v9104_v51, %v9103_v54 }
 0x564   : > { %8593 = vmatmul.mubr.msk.bf16.vlgmr.msra.gmra.mrb[44].mxu1 %vm5413_vm14, %v5477_v34 }
 0x565   : > { %8597 = vmatpush3.bf16.msra.mxu1 %v9077_v6  ;;  %8600 = vmatprep.mubr.msk.bf16.mxu1 %vm9398_vm15, %v11283_v17 }
 0x566   : > { %8598 = vmatprep.subr.bf16.mxu1 %v11283_v17 }
 0x569   : > { %8599 = vmatpush3.bf16.msra.mxu1 %v9078_v9 }
 0x56a   : > { %8604 = vmatprep.subr.bf16.mxu1 %v11283_v17 }
 0x56c   : > { %8601 = vmatmul.mubr.msk.bf16.vlgmr.msra.gmra.mrb[48].mxu1 %vm5413_vm14, %v5624_v47 }
 0x56d   : > { %8605 = vmatpush3.bf16.msra.mxu1 %v9081_v27  ;;  %8608 = vmatprep.mubr.msk.bf16.mxu1 %vm9398_vm15, %v11283_v17 }
 0x56e   : > { %8606 = vmatprep.subr.bf16.mxu1 %v11283_v17 }
 0x571   : > { %8607 = vmatpush3.bf16.msra.mxu1 %v9082_v19 }
 0x572   : > { %8612 = vmatprep.subr.bf16.mxu1 %v11283_v17 }
 0x574   : > { %8609 = vmatmul.mubr.msk.bf16.vlgmr.msra.gmra.mrb[52].mxu1 %vm5413_vm14, %v5700_v8 }
 0x575   : > { %8613 = vmatpush3.bf16.msra.mxu1 %v9085_v28  ;;  %8616 = vmatprep.mubr.msk.bf16.mxu1 %vm9398_vm15, %v11283_v17 }
 0x576   : > { %8614 = vmatprep.subr.bf16.mxu1 %v11283_v17 }
 0x579   : > { %8615 = vmatpush3.bf16.msra.mxu1 %v9086_v20 }
 0x57a   : > { %8620 = vmatprep.subr.bf16.mxu1 %v11283_v17 }
 0x57c   : > { %8617 = vmatmul.mubr.msk.bf16.vlgmr.msra.gmra.mrb[56].mxu1 %vm5413_vm14, %v5776_v46 }
 0x57d   : > { %8621 = vmatpush3.bf16.msra.mxu1 %v9089_v18  ;;  %8624 = vmatprep.mubr.msk.bf16.mxu1 %vm9398_vm15, %v11283_v17 }
 0x57e   : > { %8622 = vmatprep.subr.bf16.mxu1 %v11283_v17 }
 0x581   : > { %8623 = vmatpush3.bf16.msra.mxu1 %v9090_v21 }
 0x582   : > { %8628 = vmatprep.subr.bf16.mxu1 %v11283_v17 }
 0x584   : > { %8625 = vmatmul.mubr.msk.bf16.vlgmr.msra.gmra.mrb[60].mxu1 %vm5413_vm14, %v5852_v30 }
 0x585   : > { %8629 = vmatpush3.bf16.msra.mxu1 %v9093_v48  ;;  %8632 = vmatprep.mubr.msk.bf16.mxu1 %vm9398_vm15, %v11283_v17 }
 0x586   : > { %8630 = vmatprep.subr.bf16.mxu1 %v11283_v17 }
 0x589   : > { %8631 = vmatpush3.bf16.msra.mxu1 %v9094_v60 }
 0x58a   : > { %8636 = vmatprep.subr.bf16.mxu1 %v11283_v17 }
 0x58c   : > { %8633 = vmatmul.mubr.msk.bf16.vlgmr.msra.gmra.mrb[64].mxu1 %vm5413_vm14, %v5929_v53 }
 0x58d   : > { %8637 = vmatpush3.bf16.msra.mxu1 %v9097_v35  ;;  %8640 = vmatprep.mubr.msk.bf16.mxu1 %vm9398_vm15, %v11283_v17 }
 0x58e   : > { %8638 = vmatprep.subr.bf16.mxu1 %v11283_v17 }
 0x591   : > { %8639 = vmatpush3.bf16.msra.mxu1 %v9098_v36 }
 0x592   : > { %8644 = vmatprep.subr.bf16.mxu1 %v11283_v17 }
 0x594   : > { %8641 = vmatmul.mubr.msk.bf16.vlgmr.msra.gmra.mrb[68].mxu1 %vm5413_vm14, %v6005_v63 }
 0x595   : > { %8645 = vmatpush3.bf16.msra.mxu1 %v9101_v61  ;;  %8648 = vmatprep.mubr.msk.bf16.mxu1 %vm9398_vm15, %v11283_v17  ;;  %v7679_v61 = vld [vmem:[%s11230_s6] ss:$0 sm:$0xff] }
 0x596   : > { %8646 = vmatprep.subr.bf16.mxu1 %v11283_v17  ;;  %v9108_v17 = vld [vmem:[%s11231_s7 + $0xa0] ss:$16 sps:$4 sm:$0xff]  }
 0x599   : > { %8647 = vmatpush3.bf16.msra.mxu1 %v9102_v25 }
 0x59a   : > { %6346 = vmatprep.subr.bf16.mxu1 %v9107_v55 }
 0x59c   : > { %8649 = vmatmul.mubr.msk.bf16.vlgmr.msra.gmra.mrb[72].mxu1 %vm5413_vm14, %v6081_v37 }
 0x59d   : > { %6347 = vmatpush1.bf16.msra.mxu1 %v9105_v5  ;;  %6378 = vmatprep.mubr.bf16.mxu1 %v9399_v44 }
 0x59e   : > { %6348 = vmatprep.subr.bf16.mxu1 %v9110_v45 }
 0x5a1   : > { %6349 = vmatpush1.bf16.msra.mxu1 %v9108_v17 }
 0x5a2   : > { %6350 = vmatprep.subr.bf16.mxu1 %v9113_v1 }
 0x5a5   : > { %6351 = vmatpush1.bf16.msra.mxu1 %v9111_v58 }
 0x5a6   : > { %6352 = vmatprep.subr.bf16.mxu1 %v9116_v43 }
 0x5a9   : > { %6353 = vmatpush1.bf16.msra.mxu1 %v9114_v26 }
 0x5aa   : > { %6387 = vmatprep.subr.bf16.mxu1 %v9119_v11 }
 0x62f   : > { %v5549_v57 = vpop.f32.mrb[40].mxu1 }
 0x630   : > { %v8586_v38 = vpop.f32.mrb[41].mxu1 }
 0x631   : > { %v5552_v7 = vpop.f32.mrb[42].mxu1 }
 0x632   : > { %v8587_v49 = vpop.f32.mrb[43].mxu1 }
 0x637   : > { %v5605_v42 = vpop.f32.mrb[44].mxu1 }
 0x638   : > { %v5606_v33 = vadd.f32 %v5605_v42, %v5549_v57  ;;  %v8594_v31 = vpop.f32.mrb[45].mxu1 }
 0x639   : > { %v5608_v10 = vpop.f32.mrb[46].mxu1 }
 0x63a   : > { %v5609_v50 = vadd.f32 %v5608_v10, %v5552_v7  ;;  %v8595_v15 = vpop.f32.mrb[47].mxu1 }
 0x63f   : > { %v5679_v41 = vpop.f32.mrb[48].mxu1 }
 0x640   : > { %v5686_v52 = vadd.f32 %v5679_v41, %v5606_v33  ;;  %v8602_v2 = vpop.f32.mrb[49].mxu1 }
 0x641   : > { %v5682_v23 = vpop.f32.mrb[50].mxu1 }
 0x642   : > { %v5687_v56 = vadd.f32 %v5682_v23, %v5609_v50  ;;  %v8603_v0 = vpop.f32.mrb[51].mxu1 }
 0x647   : > { %v5755_v62 = vpop.f32.mrb[52].mxu1 }
 0x648   : > { %v5762_v6 = vadd.f32 %v5755_v62, %v5686_v52  ;;  %v8610_v34 = vpop.f32.mrb[53].mxu1 }
 0x649   : > { %v5758_v9 = vpop.f32.mrb[54].mxu1 }
 0x64a   : > { %v5763_v40 = vadd.f32 %v5758_v9, %v5687_v56  ;;  %v8611_v22 = vpop.f32.mrb[55].mxu1 }
 0x64f   : > { %v5831_v27 = vpop.f32.mrb[56].mxu1 }
 0x650   : > { %v5838_v47 = vadd.f32 %v5831_v27, %v5762_v6  ;;  %v8618_v19 = vpop.f32.mrb[57].mxu1 }
 0x651   : > { %v5834_v29 = vpop.f32.mrb[58].mxu1 }
 0x652   : > { %v5839_v12 = vadd.f32 %v5834_v29, %v5763_v40  ;;  %v8619_v28 = vpop.f32.mrb[59].mxu1 }
 0x657   : > { %v5907_v8 = vpop.f32.mrb[60].mxu1 }
 0x658   : > { %v5914_v20 = vadd.f32 %v5907_v8, %v5838_v47  ;;  %v8626_v24 = vpop.f32.mrb[61].mxu1 }
 0x659   : > { %v5910_v16 = vpop.f32.mrb[62].mxu1 }
 0x65a   : > { %v5915_v18 = vadd.f32 %v5910_v16, %v5839_v12  ;;  %v8627_v46 = vpop.f32.mrb[63].mxu1 }
 0x65f   : > { %v5984_v21 = vpop.f32.mrb[64].mxu1 }
 0x660   : > { %v5991_v14 = vadd.f32 %v5984_v21, %v5914_v20  ;;  %v8634_v13 = vpop.f32.mrb[65].mxu1 }
 0x661   : > { %v5987_v48 = vpop.f32.mrb[66].mxu1  ;;  %v9120_v13 = vld [vmem:[%s11231_s7 + $0xa8] ss:$16 sps:$4 sm:$0xff]  }
 0x662   : > { %v5992_v30 = vadd.f32 %v5987_v48, %v5915_v18  ;;  %v8635_v60 = vpop.f32.mrb[67].mxu1  ;;  %v9117_v18 = vld [vmem:[%s11231_s7 + $0x88] ss:$16 sps:$4 sm:$0xff]   ;;  %v9125_v48 = vld [vmem:[%s11231_s7 + $0xcc] ss:$16 sps:$4 sm:$0xff]  }
 0x663   : > { %v9128_v60 = vld [vmem:[%s11231_s7 + $0xec] ss:$16 sps:$4 sm:$0xff]  }
 0x667   : > { %v6060_v3 = vpop.f32.mrb[68].mxu1 }
 0x668   : > { %v6067_v39 = vadd.f32 %v6060_v3, %v5991_v14  ;;  %v8642_v35 = vpop.f32.mrb[69].mxu1  ;;  %v9122_v14 = vld [vmem:[%s11231_s7 + $0xac] ss:$16 sps:$4 sm:$0xff]   ;;  %v9126_v3 = vld [vmem:[%s11231_s7 + $0xe8] ss:$16 sps:$4 sm:$0xff]  }
 0x669   : > { %v6063_v53 = vpop.f32.mrb[70].mxu1  ;;  %v9129_v35 = vld [vmem:[%s11231_s7] ss:$16 sps:$4 sm:$0xff]  }
 0x66a   : > { %v6068_v36 = vadd.f32 %v6063_v53, %v5992_v30  ;;  %v8643_v32 = vpop.f32.mrb[71].mxu1  ;;  %v9123_v30 = vld [vmem:[%s11231_s7 + $0xc8] ss:$16 sps:$4 sm:$0xff]   ;;  %v9134_v53 = vld [vmem:[%s11231_s7 + $0x24] ss:$16 sps:$4 sm:$0xff]  }
 0x66b   : > { %v9137_v32 = vld [vmem:[%s11231_s7 + $0x44] ss:$16 sps:$4 sm:$0xff]  }
 0x66f   : > { %v6136_v4 = vpop.f32.mrb[72].mxu1 }
 0x670   : > { %v6143_v63 = vadd.f32 %v6136_v4, %v6067_v39  ;;  %v8650_v25 = vpop.f32.mrb[73].mxu1  ;;  %v9131_v39 = vld [vmem:[%s11231_s7 + $0x4] ss:$16 sps:$4 sm:$0xff]   ;;  %v9135_v4 = vld [vmem:[%s11231_s7 + $0x40] ss:$16 sps:$4 sm:$0xff]  }
 0x671   : > { %v6139_v54 = vpop.f32.mrb[74].mxu1  ;;  %v9143_v25 = vld [vmem:[%s11231_s7 + $0xc] ss:$16 sps:$4 sm:$0xff]  }
 0x672   : > { %v6152_v51 = vadd.f32 %v7679_v61, %v6143_v63  ;;  %v6144_v37 = vadd.f32 %v6139_v54, %v6068_v36  ;;  %v8651_v5 = vpop.f32.mrb[75].mxu1  ;;  %v9132_v36 = vld [vmem:[%s11231_s7 + $0x20] ss:$16 sps:$4 sm:$0xff]  }
 0x673   : > { %v9138_v63 = vld [vmem:[%s11231_s7 + $0x60] ss:$16 sps:$4 sm:$0xff]   ;;  %v9146_v5 = vld [vmem:[%s11231_s7 + $0x2c] ss:$16 sps:$4 sm:$0xff]  }
 0x674   : > { %v6154_v55 = vmax.f32 %v6152_v51, 0.0  ;;  %v6153_v45 = vadd.f32 %v7679_v61, %v6144_v37  ;;  %v9140_v61 = vld [vmem:[%s11231_s7 + $0x64] ss:$16 sps:$4 sm:$0xff]   ;;  %v9141_v51 = vld [vmem:[%s11231_s7 + $0x8] ss:$16 sps:$4 sm:$0xff]  }
 0x676   : > { %v6158_v17 = vcombine.high %v6154_v55, %v6154_v55  ;;  %v6155_v1 = vmax.f32 %v6153_v45, 0.0  ;;  %v9149_v45 = vld [vmem:[%s11231_s7 + $0x4c] ss:$16 sps:$4 sm:$0xff]  }
 0x678   : > { %v6162_v58 = vmax.f32 %v6154_v55, %v6158_v17  ;;  %v6159_v43 = vcombine.high %v6155_v1, %v6155_v1  ;;  %v9144_v55 = vld [vmem:[%s11231_s7 + $0x28] ss:$16 sps:$4 sm:$0xff]  }
 0x679   : > { %v9147_v17 = vld [vmem:[%s11231_s7 + $0x48] ss:$16 sps:$4 sm:$0xff]  }
 0x67a   : > { %v6172_v26 = vrot.slane %v6162_v58, %v10370_v59  ;;  %v6163_v11 = vmax.f32 %v6155_v1, %v6159_v43  ;;  %v9152_v1 = vld [vmem:[%s11231_s7 + $0x6c] ss:$16 sps:$4 sm:$0xff]   ;;  %v9150_v58 = vld [vmem:[%s11231_s7 + $0x68] ss:$16 sps:$4 sm:$0xff]   ;;  %v9155_v43 = vld [vmem:[%s11231_s7 + $0x104] ss:$16 sps:$4 sm:$0xff]  }
 0x67c   : > { %v6173_v57 = vcombine.high %v6172_v26, %v6172_v26  ;;  %v6187_v38 = vsel %vm6186_vm2, %v6172_v26, -inf  ;;  %v6180_v7 = vrot.slane %v6163_v11, %v10370_v59  ;;  %v9153_v26 = vld [vmem:[%s11231_s7 + $0x100] ss:$16 sps:$4 sm:$0xff]   ;;  %v9158_v11 = vld [vmem:[%s11231_s7 + $0x124] ss:$16 sps:$4 sm:$0xff]  }
 0x67d   : > { %v6188_v49 = vrot.slane %v6187_v38, 4 }
 0x67e   : > { %v6194_v42 = vsel %vm6186_vm2, %v6173_v57, -inf  ;;  %v6181_v33 = vcombine.high %v6180_v7, %v6180_v7  ;;  %v6201_v31 = vsel %vm6186_vm2, %v6180_v7, -inf  ;;  %v9156_v57 = vld [vmem:[%s11231_s7 + $0x120] ss:$16 sps:$4 sm:$0xff]  }
 0x67f   : > { %v6189_v10 = vmax.f32 %v6187_v38, %v6188_v49  ;;  %v6195_v50 = vrot.slane %v6194_v42, 4  ;;  %v6202_v15 = vrot.slane %v6201_v31, 4  ;;  %v9161_v38 = vld [vmem:[%s11231_s7 + $0x144] ss:$16 sps:$4 sm:$0xff]   ;;  %v9159_v7 = vld [vmem:[%s11231_s7 + $0x140] ss:$16 sps:$4 sm:$0xff]  }
 0x680   : > { %v6208_v41 = vsel %vm6186_vm2, %v6181_v33, -inf  ;;  %v9164_v49 = vld [vmem:[%s11231_s7 + $0x164] ss:$16 sps:$4 sm:$0xff]   ;;  %v9167_v33 = vld [vmem:[%s11231_s7 + $0x10c] ss:$16 sps:$4 sm:$0xff]  }
 0x681   : > { %v6190_v52 = vrot.slane %v6189_v10, 2  ;;  %v6196_v2 = vmax.f32 %v6194_v42, %v6195_v50  ;;  %v6203_v23 = vmax.f32 %v6201_v31, %v6202_v15  ;;  %v6209_v56 = vrot.slane %v6208_v41, 4  ;;  %v9162_v42 = vld [vmem:[%s11231_s7 + $0x160] ss:$16 sps:$4 sm:$0xff]   ;;  %v9170_v15 = vld [vmem:[%s11231_s7 + $0x12c] ss:$16 sps:$4 sm:$0xff]  }
 0x683   : > { %v6191_v0 = vmax.f32 %v6189_v10, %v6190_v52  ;;  %v6197_v62 = vrot.slane %v6196_v2, 2  ;;  %v6204_v6 = vrot.slane %v6203_v23, 2  ;;  %v6210_v34 = vmax.f32 %v6208_v41, %v6209_v56  ;;  %v9165_v10 = vld [vmem:[%s11231_s7 + $0x108] ss:$16 sps:$4 sm:$0xff]   ;;  %v9173_v52 = vld [vmem:[%s11231_s7 + $0x14c] ss:$16 sps:$4 sm:$0xff]  }
 0x684   : > { %v9168_v41 = vld [vmem:[%s11231_s7 + $0x128] ss:$16 sps:$4 sm:$0xff]  }
 0x685   : > { %v6192_v59 = vrot.slane %v6191_v0, 1  ;;  %v6198_v9 = vmax.f32 %v6196_v2, %v6197_v62  ;;  %v6205_v40 = vmax.f32 %v6203_v23, %v6204_v6  ;;  %v6211_v22 = vrot.slane %v6210_v34, 2  ;;  %v9171_v2 = vld [vmem:[%s11231_s7 + $0x148] ss:$16 sps:$4 sm:$0xff]   ;;  %v9176_v23 = vld [vmem:[%s11231_s7 + $0x16c] ss:$16 sps:$4 sm:$0xff]  }
 0x686   : > { %v9174_v56 = vld [vmem:[%s11231_s7 + $0x168] ss:$16 sps:$4 sm:$0xff]   ;;  %v9177_v62 = vld [vmem:[%s11231_s7 + $0x180] ss:$16 sps:$4 sm:$0xff]   ;;  %v9182_v6 = vld [vmem:[%s11231_s7 + $0x1a4] ss:$16 sps:$4 sm:$0xff]  }
 0x687   : > { %v6199_v27 = vrot.slane %v6198_v9, 1  ;;  %v6206_v47 = vrot.slane %v6205_v40, 1  ;;  %v6212_v19 = vmax.f32 %v6210_v34, %v6211_v22  ;;  %v6193_v29 = vmax.f32 %v6191_v0, %v6192_v59  ;;  %v9179_v0 = vld [vmem:[%s11231_s7 + $0x184] ss:$16 sps:$4 sm:$0xff]   ;;  %v9180_v34 = vld [vmem:[%s11231_s7 + $0x1a0] ss:$16 sps:$4 sm:$0xff]  }
 0x688   : > { %v9185_v59 = vld [vmem:[%s11231_s7 + $0x1c4] ss:$16 sps:$4 sm:$0xff]   ;;  %v9186_v22 = vld [vmem:[%s11231_s7 + $0x1e0] ss:$16 sps:$4 sm:$0xff]  }
 0x689   : > { %v6200_v12 = vmax.f32 %v6198_v9, %v6199_v27  ;;  %v6213_v28 = vrot.slane %v6212_v19, 1  ;;  %v6207_v20 = vmax.f32 %v6205_v40, %v6206_v47  ;;  %v9183_v9 = vld [vmem:[%s11231_s7 + $0x1c0] ss:$16 sps:$4 sm:$0xff]   ;;  %v9188_v40 = vld [vmem:[%s11231_s7 + $0x1e4] ss:$16 sps:$4 sm:$0xff]  }
 0x68a   : > { %v9191_v27 = vld [vmem:[%s11231_s7 + $0x18c] ss:$16 sps:$4 sm:$0xff]  }
 0x68b   : > { %v6219_v8 = vsel %vm4167_vm5, %v6200_v12, %v6193_v29  ;;  %v6214_v24 = vmax.f32 %v6212_v19, %v6213_v28  ;;  %v9189_v19 = vld [vmem:[%s11231_s7 + $0x188] ss:$16 sps:$4 sm:$0xff]   ;;  %v9194_v12 = vld [vmem:[%s11231_s7 + $0x1ac] ss:$16 sps:$4 sm:$0xff]  }
 0x68c   : > { %6223 = vst.msk [vmem:[#allocation5] sm:$0x3] %vm6186_vm2, %v6219_v8  ;;  %v9192_v28 = vld [vmem:[%s11231_s7 + $0x1a8] ss:$16 sps:$4 sm:$0xff]   ;;  %v9197_v8 = vld [vmem:[%s11231_s7 + $0x1cc] ss:$16 sps:$4 sm:$0xff]  }
 0x68d   : > { %v6220_v16 = vsel %vm4167_vm5, %v6214_v24, %v6207_v20  ;;  %v9195_v20 = vld [vmem:[%s11231_s7 + $0x1c8] ss:$16 sps:$4 sm:$0xff]   ;;  %v9200_v24 = vld [vmem:[%s11231_s7 + $0x1ec] ss:$16 sps:$4 sm:$0xff]  }
 0x68e   : > { %6224 = vst.msk [vmem:[#allocation5 + $0x2] sm:$0x3] %vm6186_vm2, %v6220_v16  ;;  %v9201_v16 = vld [vmem:[#allocation11 + $0x40] sm:$0xff]  }
 0x693   : > { %v6243_v46 = vld [vmem:[#allocation5 + $0x1] sm:$0x1]  ;;  %v6225_v54 = vld [vmem:[#allocation5] sm:$0x1] }
 0x694   : > { %v6244_v21 = vpack.c.bf16 %v6243_v46, %v6243_v46  ;;  %v6226_v37 = vpack.c.bf16 %v6225_v54, %v6225_v54  ;;  %v9203_v46 = vld [vmem:[#allocation11 + $0x48] sm:$0xff]  }
 0x695   : > { %v6594_v31 = vld [vmem:[#allocation5 + $0x2] sm:$0x1]  ;;  %v6782_v47 = vld [vmem:[#allocation5 + $0x3] sm:$0x1] }
 0x696   : > { %7712 = vmatmul.mubr.msk.bf16.vlgmr.msra.gmra.mrb[76].mxu1 %vm6342_vm3, %v6244_v21  ;;  %v6595_v50 = vpack.c.bf16 %v6594_v31, %v6594_v31  ;;  %v6783_v29 = vpack.c.bf16 %v6782_v47, %v6782_v47 }
 0x697   : > { %6388 = vmatpush1.bf16.msra.mxu1 %v9117_v18  ;;  %6419 = vmatprep.mubr.bf16.mxu1 %v9399_v44  ;;  %v9202_v18 = vld [vmem:[#allocation11] sm:$0xff]  }
 0x698   : > { %6389 = vmatprep.subr.bf16.mxu1 %v9122_v14  ;;  %v9205_v14 = vld [vmem:[#allocation11 + $0x50] sm:$0xff]  }
 0x69b   : > { %6390 = vmatpush1.bf16.msra.mxu1 %v9120_v13  ;;  %v9206_v13 = vld [vmem:[#allocation11 + $0x10] sm:$0xff]  }
 0x69c   : > { %6391 = vmatprep.subr.bf16.mxu1 %v9125_v48  ;;  %v9207_v48 = vld [vmem:[#allocation11 + $0x58] sm:$0xff]  }
 0x69f   : > { %6392 = vmatpush1.bf16.msra.mxu1 %v9123_v30  ;;  %v9208_v30 = vld [vmem:[#allocation11 + $0x18] sm:$0xff]  }
 0x6a0   : > { %6393 = vmatprep.subr.bf16.mxu1 %v9128_v60  ;;  %v9209_v60 = vld [vmem:[#allocation11 + $0x60] sm:$0xff]  }
 0x6a3   : > { %6394 = vmatpush1.bf16.msra.mxu1 %v9126_v3  ;;  %v9210_v3 = vld [vmem:[#allocation11 + $0x20] sm:$0xff]  }
 0x6a4   : > { %6511 = vmatprep.subr.bf16.mxu1 %v9131_v39  ;;  %v9211_v39 = vld [vmem:[#allocation11 + $0x68] sm:$0xff]  }
 0x6a6   : > { %7713 = vmatmul.mubr.msk.bf16.vlgmr.msra.gmra.mrb[80].mxu1 %vm6342_vm3, %v6244_v21  ;;  %v9204_v21 = vld [vmem:[#allocation11 + $0x8] sm:$0xff]  }
 0x6a7   : > { %6512 = vmatpush1.bf16.msra.mxu1 %v9129_v35  ;;  %6543 = vmatprep.mubr.bf16.mxu1 %v9399_v44  ;;  %v9212_v35 = vld [vmem:[#allocation11 + $0x28] sm:$0xff]  }
 0x6a8   : > { %6513 = vmatprep.subr.bf16.mxu1 %v9134_v53  ;;  %v9213_v53 = vld [vmem:[#allocation11 + $0x70] sm:$0xff]  }
 0x6ab   : > { %6514 = vmatpush1.bf16.msra.mxu1 %v9132_v36  ;;  %v9214_v36 = vld [vmem:[#allocation11 + $0x30] sm:$0xff]  }
 0x6ac   : > { %6515 = vmatprep.subr.bf16.mxu1 %v9137_v32  ;;  %v9215_v32 = vld [vmem:[#allocation11 + $0x78] sm:$0xff]  }
 0x6af   : > { %6516 = vmatpush1.bf16.msra.mxu1 %v9135_v4  ;;  %v9216_v4 = vld [vmem:[#allocation11 + $0x38] sm:$0xff]  }
 0x6b0   : > { %6517 = vmatprep.subr.bf16.mxu1 %v9140_v61  ;;  %v9217_v61 = vld [vmem:[#allocation11 + $0xc0] sm:$0xff]  }
 0x6b3   : > { %6518 = vmatpush1.bf16.msra.mxu1 %v9138_v63 }
 0x6b4   : > { %6552 = vmatprep.subr.bf16.mxu1 %v9143_v25 }
 0x6b6   : > { %7730 = vmatmul.mubr.msk.bf16.vlgmr.msra.gmra.mrb[84].mxu1 %vm6342_vm3, %v6226_v37 }
 0x6b7   : > { %6553 = vmatpush1.bf16.msra.mxu1 %v9141_v51  ;;  %6584 = vmatprep.mubr.bf16.mxu1 %v9399_v44 }
 0x6b8   : > { %6554 = vmatprep.subr.bf16.mxu1 %v9146_v5 }
 0x6bb   : > { %6555 = vmatpush1.bf16.msra.mxu1 %v9144_v55 }
 0x6bc   : > { %6556 = vmatprep.subr.bf16.mxu1 %v9149_v45 }
 0x6bf   : > { %6557 = vmatpush1.bf16.msra.mxu1 %v9147_v17 }
 0x6c0   : > { %6558 = vmatprep.subr.bf16.mxu1 %v9152_v1 }
 0x6c3   : > { %6559 = vmatpush1.bf16.msra.mxu1 %v9150_v58 }
 0x6c4   : > { %6696 = vmatprep.subr.bf16.mxu1 %v9155_v43 }
 0x6c6   : > { %7731 = vmatmul.mubr.msk.bf16.vlgmr.msra.gmra.mrb[88].mxu1 %vm6342_vm3, %v6226_v37 }
 0x6c7   : > { %6697 = vmatpush1.bf16.msra.mxu1 %v9153_v26  ;;  %6728 = vmatprep.mubr.bf16.mxu1 %v9399_v44 }
 0x6c8   : > { %6698 = vmatprep.subr.bf16.mxu1 %v9158_v11 }
 0x6cb   : > { %6699 = vmatpush1.bf16.msra.mxu1 %v9156_v57 }
 0x6cc   : > { %6700 = vmatprep.subr.bf16.mxu1 %v9161_v38 }
 0x6cf   : > { %6701 = vmatpush1.bf16.msra.mxu1 %v9159_v7 }
 0x6d0   : > { %6702 = vmatprep.subr.bf16.mxu1 %v9164_v49 }
 0x6d3   : > { %6703 = vmatpush1.bf16.msra.mxu1 %v9162_v42 }
 0x6d4   : > { %6737 = vmatprep.subr.bf16.mxu1 %v9167_v33 }
 0x6d6   : > { %7764 = vmatmul.mubr.msk.bf16.vlgmr.msra.gmra.mrb[92].mxu1 %vm6342_vm3, %v6595_v50 }
 0x6d7   : > { %6738 = vmatpush1.bf16.msra.mxu1 %v9165_v10  ;;  %6769 = vmatprep.mubr.bf16.mxu1 %v9399_v44 }
 0x6d8   : > { %6739 = vmatprep.subr.bf16.mxu1 %v9170_v15 }
 0x6db   : > { %6740 = vmatpush1.bf16.msra.mxu1 %v9168_v41 }
 0x6dc   : > { %6741 = vmatprep.subr.bf16.mxu1 %v9173_v52 }
 0x6df   : > { %6742 = vmatpush1.bf16.msra.mxu1 %v9171_v2 }
 0x6e0   : > { %6743 = vmatprep.subr.bf16.mxu1 %v9176_v23 }
 0x6e3   : > { %6744 = vmatpush1.bf16.msra.mxu1 %v9174_v56 }
 0x6e4   : > { %6884 = vmatprep.subr.bf16.mxu1 %v9179_v0 }
 0x6e6   : > { %7765 = vmatmul.mubr.msk.bf16.vlgmr.msra.gmra.mrb[96].mxu1 %vm6342_vm3, %v6595_v50 }
 0x6e7   : > { %6885 = vmatpush1.bf16.msra.mxu1 %v9177_v62  ;;  %6916 = vmatprep.mubr.bf16.mxu1 %v9399_v44 }
 0x6e8   : > { %6886 = vmatprep.subr.bf16.mxu1 %v9182_v6 }
 0x6eb   : > { %6887 = vmatpush1.bf16.msra.mxu1 %v9180_v34  ;;  %v11284_v34 = vld [vmem:[#allocation27_spill] sm:$0xff] }
 0x6ec   : > { %6888 = vmatprep.subr.bf16.mxu1 %v9185_v59  ;;  %v6974_v59 = vsub.s32 0, %v11284_v34 }
 0x6ef   : > { %6889 = vmatpush1.bf16.msra.mxu1 %v9183_v9  ;;  %v6970_v9 = vld [vmem:[%s11232_s8] sm:$0xf] }
 0x6f0   : > { %6890 = vmatprep.subr.bf16.mxu1 %v9188_v40  ;;  %v6978_v40 = vsub.s32 1, %v11284_v34 }
 0x6f2   : > { %v6979_v47 = vrot.slane %v6970_v9, %v6978_v40 }
 0x6f3   : > { %6891 = vmatpush1.bf16.msra.mxu1 %v9186_v22  ;;  %v6975_v22 = vrot.slane %v6970_v9, %v6974_v59 }
 0x6f4   : > { %6925 = vmatprep.subr.bf16.mxu1 %v9191_v27 }
 0x6f6   : > { %7798 = vmatmul.mubr.msk.bf16.vlgmr.msra.gmra.mrb[100].mxu1 %vm6342_vm3, %v6783_v29 }
 0x6f7   : > { %6926 = vmatpush1.bf16.msra.mxu1 %v9189_v19  ;;  %6957 = vmatprep.mubr.bf16.mxu1 %v9399_v44  ;;  %v9198_v44 = vld [vmem:[%s11231_s7 + $0x1e8] ss:$16 sps:$4 sm:$0xff]  }
 0x6f8   : > { %6927 = vmatprep.subr.bf16.mxu1 %v9194_v12 }
 0x6fb   : > { %6928 = vmatpush1.bf16.msra.mxu1 %v9192_v28 }
 0x6fc   : > { %6929 = vmatprep.subr.bf16.mxu1 %v9197_v8 }
 0x6ff   : > { %6930 = vmatpush1.bf16.msra.mxu1 %v9195_v20 }
 0x700   : > { %6931 = vmatprep.subr.bf16.mxu1 %v9200_v24 }
 0x703   : > { %6932 = vmatpush1.bf16.msra.mxu1 %v9198_v44 }
 0x704   : > { %8140 = vmatprep.subr.bf16.mxu1 %v9201_v16 }
 0x706   : > { %7799 = vmatmul.mubr.msk.bf16.vlgmr.msra.gmra.mrb[104].mxu1 %vm6342_vm3, %v6783_v29 }
 0x707   : > { %8141 = vmatpush3.bf16.msra.mxu1 %v9202_v18 }
 0x708   : > { %8142 = vmatprep.subr.bf16.mxu1 %v9203_v46  ;;  %v9218_v46 = vld [vmem:[#allocation11 + $0x80] sm:$0xff]  }
 0x70b   : > { %8143 = vmatpush3.bf16.msra.mxu1 %v9204_v21 }
 0x70c   : > { %8144 = vmatprep.subr.bf16.mxu1 %v9205_v14  ;;  %v9219_v14 = vld [vmem:[#allocation11 + $0xc8] sm:$0xff]  }
 0x70f   : > { %8145 = vmatpush3.bf16.msra.mxu1 %v9206_v13  ;;  %v9220_v13 = vld [vmem:[#allocation11 + $0x88] sm:$0xff]  }
 0x710   : > { %8146 = vmatprep.subr.bf16.mxu1 %v9207_v48  ;;  %v6986_v48 = vsub.s32 3, %v11284_v34 }
 0x713   : > { %8147 = vmatpush3.bf16.msra.mxu1 %v9208_v30  ;;  %v9221_v30 = vld [vmem:[#allocation11 + $0xd0] sm:$0xff]  }
 0x714   : > { %8148 = vmatprep.subr.bf16.mxu1 %v9209_v60 }
 0x717   : > { %8149 = vmatpush3.bf16.msra.mxu1 %v9210_v3  ;;  %v6987_v3 = vrot.slane %v6970_v9, %v6986_v48 }
 0x718   : > { %8150 = vmatprep.subr.bf16.mxu1 %v9211_v39  ;;  %v9222_v39 = vld [vmem:[#allocation11 + $0x90] sm:$0xff]  }
 0x71b   : > { %8151 = vmatpush3.bf16.msra.mxu1 %v9212_v35 }
 0x71c   : > { %8152 = vmatprep.subr.bf16.mxu1 %v9213_v53 }
 0x71f   : > { %8153 = vmatpush3.bf16.msra.mxu1 %v9214_v36  ;;  %v9223_v36 = vld [vmem:[#allocation11 + $0xd8] sm:$0xff]  }
 0x720   : > { %8154 = vmatprep.subr.bf16.mxu1 %v9215_v32 }
 0x723   : > { %8155 = vmatpush3.bf16.msra.mxu1 %v9216_v4 }
 0x724   : > { %8162 = vmatprep.subr.bf16.mxu1 %v9217_v61 }
 0x769   : > { %v6380_v63 = vpop.f32.mrb[76].mxu1 }
 0x76a   : > { %v6382_v25 = vpop.f32.mrb[77].mxu1 }
 0x76b   : > { %v6384_v54 = vpop.f32.mrb[78].mxu1 }
 0x76c   : > { %v6385_v51 = vpop.f32.mrb[79].mxu1  ;;  %v9225_v54 = vld [vmem:[#allocation11 + $0xe0] sm:$0xff]  }
 0x779   : > { %v6421_v37 = vpop.f32.mrb[80].mxu1 }
 0x77a   : > { %v6423_v5 = vpop.f32.mrb[81].mxu1 }
 0x77b   : > { %v6425_v55 = vpop.f32.mrb[82].mxu1 }
 0x77c   : > { %v6426_v45 = vpop.f32.mrb[83].mxu1  ;;  %v6982_v55 = vsub.s32 2, %v11284_v34 }
 0x77d   : > { %v9227_v45 = vld [vmem:[#allocation11 + $0xe8] sm:$0xff]  }
 0x789   : > { %v6545_v17 = vpop.f32.mrb[84].mxu1 }
 0x78a   : > { %v6546_v1 = vadd.f32 %v6545_v17, %v6380_v63  ;;  %v6547_v58 = vpop.f32.mrb[85].mxu1  ;;  %v9228_v17 = vld [vmem:[#allocation11 + $0xa8] sm:$0xff]  }
 0x78b   : > { %v6548_v43 = vadd.f32 %v6547_v58, %v6382_v25  ;;  %v6549_v26 = vpop.f32.mrb[86].mxu1  ;;  %v9224_v25 = vld [vmem:[#allocation11 + $0x98] sm:$0xff]   ;;  %v9229_v58 = vld [vmem:[#allocation11 + $0xf0] sm:$0xff]  }
 0x78c   : > { %v6550_v11 = vpop.f32.mrb[87].mxu1 }
 0x78d   : > { %v9231_v11 = vld [vmem:[#allocation11 + $0xf8] sm:$0xff]  }
 0x799   : > { %v6586_v57 = vpop.f32.mrb[88].mxu1 }
 0x79a   : > { %v6587_v38 = vadd.f32 %v6586_v57, %v6421_v37  ;;  %v6588_v7 = vpop.f32.mrb[89].mxu1  ;;  %v9232_v57 = vld [vmem:[#allocation11 + $0xb8] sm:$0xff]  }
 0x79b   : > { %v6589_v49 = vadd.f32 %v6588_v7, %v6423_v5  ;;  %v6590_v42 = vpop.f32.mrb[90].mxu1  ;;  %v9226_v5 = vld [vmem:[#allocation11 + $0xa0] sm:$0xff]  }
 0x79c   : > { %v6591_v33 = vpop.f32.mrb[91].mxu1 }
 0x7a9   : > { %v6730_v31 = vpop.f32.mrb[92].mxu1 }
 0x7aa   : > { %v6778_v10 = vadd.f32 %v6730_v31, %v6546_v1  ;;  %v6732_v50 = vpop.f32.mrb[93].mxu1  ;;  %v6983_v1 = vrot.slane %v6970_v9, %v6982_v55 }
 0x7ab   : > { %v6779_v15 = vadd.f32 %v6732_v50, %v6548_v43  ;;  %v6734_v41 = vpop.f32.mrb[94].mxu1  ;;  %v9230_v43 = vld [vmem:[#allocation11 + $0xb0] sm:$0xff]  }
 0x7ac   : > { %v6735_v52 = vpop.f32.mrb[95].mxu1  ;;  %v7068_v50 = vld [vmem:[%s11234_s10] sm:$0x1] }
 0x7b9   : > { %v6771_v2 = vpop.f32.mrb[96].mxu1 }
 0x7ba   : > { %v6780_v23 = vadd.f32 %v6771_v2, %v6587_v38  ;;  %v6773_v56 = vpop.f32.mrb[97].mxu1 }
 0x7bb   : > { %v6781_v0 = vadd.f32 %v6773_v56, %v6589_v49  ;;  %v6775_v62 = vpop.f32.mrb[98].mxu1 }
 0x7bc   : > { %v6776_v6 = vpop.f32.mrb[99].mxu1 }
 0x7c9   : > { %v6918_v27 = vpop.f32.mrb[100].mxu1 }
 0x7ca   : > { %v6966_v19 = vadd.f32 %v6918_v27, %v6778_v10  ;;  %v6920_v29 = vpop.f32.mrb[101].mxu1 }
 0x7cb   : > { %v6967_v12 = vadd.f32 %v6920_v29, %v6779_v15  ;;  %v6922_v28 = vpop.f32.mrb[102].mxu1 }
 0x7cc   : > { %v6992_v8 = vadd.f32 %v6975_v22, %v6966_v19  ;;  %v6923_v20 = vpop.f32.mrb[103].mxu1 }
 0x7cd   : > { %v6993_v24 = vadd.f32 %v6979_v47, %v6967_v12 }
 0x7ce   : > { %v6996_v44 = vmax.f32 %v6992_v8, 0.0 }
 0x7cf   : > { %v6997_v16 = vmax.f32 %v6993_v24, 0.0 }
 0x7d0   : > { %v7000_v21 = vpack.c.bf16 %v6996_v44, %v6996_v44 }
 0x7d1   : > { %v7001_v18 = vpack.c.bf16 %v6997_v16, %v6997_v16 }
 0x7d3   : > { %7293 = vmatprep.mubr.bf16.mxu1 %v7001_v18 }
 0x7d4   : > { %7294 = vmatmul.mubr.bf16.vlgmr.msra.gmra.mrb[108].mxu1 %v7000_v21 }
 0x7d5   : > { %8163 = vmatpush3.bf16.msra.mxu1 %v9218_v46 }
 0x7d6   : > { %8164 = vmatprep.subr.bf16.mxu1 %v9219_v14 }
 0x7d9   : > { %8165 = vmatpush3.bf16.msra.mxu1 %v9220_v13  ;;  %v6959_v60 = vpop.f32.mrb[104].mxu1 }
 0x7da   : > { %v6968_v35 = vadd.f32 %v6959_v60, %v6780_v23  ;;  %v6961_v53 = vpop.f32.mrb[105].mxu1  ;;  %8166 = vmatprep.subr.bf16.mxu1 %v9221_v30 }
 0x7db   : > { %v6969_v32 = vadd.f32 %v6961_v53, %v6781_v0  ;;  %v6963_v4 = vpop.f32.mrb[106].mxu1 }
 0x7dc   : > { %v6964_v61 = vpop.f32.mrb[107].mxu1  ;;  %v6994_v26 = vadd.f32 %v6983_v1, %v6968_v35 }
 0x7dd   : > { %v6995_v63 = vadd.f32 %v6987_v3, %v6969_v32  ;;  %8167 = vmatpush3.bf16.msra.mxu1 %v9222_v39 }
 0x7de   : > { %8168 = vmatprep.subr.bf16.mxu1 %v9223_v36  ;;  %v6998_v38 = vmax.f32 %v6994_v26, 0.0 }
 0x7df   : > { %v6999_v51 = vmax.f32 %v6995_v63, 0.0 }
 0x7e0   : > { %v7002_v7 = vpack.c.bf16 %v6998_v38, %v6998_v38 }
 0x7e1   : > { %v7003_v37 = vpack.c.bf16 %v6999_v51, %v6999_v51  ;;  %8169 = vmatpush3.bf16.msra.mxu1 %v9224_v25 }
 0x7e2   : > { %8170 = vmatprep.subr.bf16.mxu1 %v9225_v54 }
 0x7e3   : > { %7333 = vmatprep.mubr.bf16.mxu1 %v7003_v37 }
 0x7e5   : > { %8171 = vmatpush3.bf16.msra.mxu1 %v9226_v5 }
 0x7e6   : > { %8172 = vmatprep.subr.bf16.mxu1 %v9227_v45 }
 0x7e9   : > { %8173 = vmatpush3.bf16.msra.mxu1 %v9228_v17 }
 0x7ea   : > { %8174 = vmatprep.subr.bf16.mxu1 %v9229_v58 }
 0x7ed   : > { %8175 = vmatpush3.bf16.msra.mxu1 %v9230_v43 }
 0x7ee   : > { %8176 = vmatprep.subr.bf16.mxu1 %v9231_v11 }
 0x7f1   : > { %8177 = vmatpush3.bf16.msra.mxu1 %v9232_v57 }
 0x7f4   : > { %7334 = vmatmul.mubr.bf16.vlgmr.msra.gmra.mrb[112].mxu1 %v7002_v7 }
 0x8a7   : > { %v8156_v49 = vpop.f32.mrb[108].mxu1 }
 0x8a8   : > { %v8157_v42 = vpop.f32.mrb[109].mxu1 }
 0x8a9   : > { %v8158_v33 = vadd.f32 %v8157_v42, %v8156_v49  ;;  %v8159_v31 = vpop.f32.mrb[110].mxu1 }
 0x8aa   : > { %v8160_v10 = vpop.f32.mrb[111].mxu1 }
 0x8ab   : > { %v7296_v52 = vadd.f32 %v8158_v33, %v7068_v50 }
 0x8c7   : > { %v8178_v15 = vpop.f32.mrb[112].mxu1 }
 0x8c8   : > { %v8179_v41 = vpop.f32.mrb[113].mxu1 }
 0x8c9   : > { %v8180_v2 = vadd.f32 %v8179_v41, %v8178_v15  ;;  %v8181_v23 = vpop.f32.mrb[114].mxu1 }
 0x8ca   : > { %v8182_v56 = vpop.f32.mrb[115].mxu1 }
 0x8cb   : > { %v7336_v0 = vadd.f32 %v8180_v2, %v7296_v52 }
 0x8cd   : > { %7341 = vst [vmem:[%s422_s12] sm:$0x1] %v7336_v0 }
 0x8ce   : > { %9332 = shalt.err (!%p9329_p9)
}
 0x8cf   : > { %s9333_s20 = scalar_lea.hbm %s11182_s13, 16  ;;  %s9337_s30 = scalar_lea.hbm %s11285_s29, 32 }
 0x8d0   : > { %p9334_p2 = scmp.ne.s32.totalorder %s11182_s13, %s9333_s20  ;;  %p9338_p5 = scmp.lt.u32.totalorder %s11182_s13, %s11285_s29 }
 0x8d1   : > { %p9339_p10 = scmp.lt.u32.totalorder %s9337_s30, %s9333_s20  ;;  %p9341_p12 = scmp.lt.u32.totalorder %s9333_s20, %s11182_s13 }
 0x8d2   : > { %p9335_p0 = pnand %p9334_p2, %p11286_p7 }
 0x8d3   : > { %p9340_p4 = por %p9339_p10, %p9338_p5 }
 0x8d4   : > { %p9336_p3 = pneg %p9335_p0 }
 0x8d5   : > { %p9342_p8 = por %p9341_p12, %p9340_p4 }
 0x8d7   : > { %p9343_p11 = pnand %p9342_p8, %p9336_p3 }
 0x8d9   : > { %9346 = shalt.err (!%p9343_p11)
}
 0x8da   : > { %8996 = dma.vmem_to_hbm [thread:$0]  (%p11286_p7), %s11184_s15, 16, %s11182_s13, %s7343_s22  }
 0x8db PF: > { %s11287_s19 = sld [smem:[#allocation18_spill]]  ;;  %s11288_s12 = sld [smem:[#allocation16_spill]] }
 0x8dc   : > { %s11289_s11 = sld [smem:[#allocation21_spill]] }
 0x8e1   : > { %p9018_p13 = scmp.ge.s32.totalorder %s11287_s19, 2  ;;  %s7367_s23 = sand.u32 1, %s11288_s12  }
 0x8e2   : > { %p11290_p1 = scmp.ne.s32.totalorder %s11289_s11, 0  ;;  %s7368_s21 = scalar_lea.sflag [#allocation8], %s7367_s23 }
 0x8e4   : > { %p9009_p6 = pnand %p9018_p13, %p11290_p1 }
 0x8e6   : > { %9372 = dma.done.wait (!%p9009_p6), %s7368_s21, 16  }
 0x8e7   : > { %9374 = vsyncadd (!%p9009_p6), %s7368_s21, 4294967280  ;;  %s11291_s20 = sld [smem:[#allocation19_spill]]  ;;  %s11292_s24 = sld [smem:[#allocation17_spill]] }
 0x8e8   : > { %s11293_s19 = sld [smem:[#allocation20_spill]]  ;;  %s11294_s17 = smov %s9381_s18 }
 0x8ed   : > { %p23_p9 = scmp.ge.s32.totalorder %s11291_s20, 4   ;;  %s11295_s18 = smov %s11292_s24 }
 0x8ef   :  { %25 = sbr.rel (!%p23_p9) target bundleno = 7 (0x7), region = 146 }
 0x8f6   :  { %7372 = vsyncpa [#allocation7], 1 }
 0x8f7   :  { %7374 = vsyncpa [#allocation7 + $0x1], 1 }
 0x8f8   :  { %7375 = vsyncpa [#allocation10], 1 }
 0x8f9   :  { %7376 = vsyncpa [#allocation8], 1 }
 0x8fa   :  { %7378 = vsyncpa [#allocation8 + $0x1], 1 }

</bundles_post_ra>
